<compile_context>
chip_gen: v7x
topology: tpu7x:2x2x1
jax: 0.10.0
libtpu: 0.0.40
codegen_flags: <defaults>
</compile_context>

<pallas_src>
import functools
import math

import jax
import jax.numpy as jnp
from jax.experimental import pallas as pl
from jax.experimental.pallas import tpu as pltpu


def _round_up(x, m):
    return ((x + m - 1) // m) * m


def _spatial_gcn_kernel(x_ref, a_ref, w_ref, b_ref, o_ref, *, tm, c_in, vp, k):
    # x_ref: (V, tm*C_in)       lane-dense activation block, columns ordered (m, c)
    # a_ref: (K*Vp, V)          masked adjacency, transposed, partition stride Vp (8-aligned)
    # w_ref: (K, C_in, C_out)   1x1 conv weights
    # b_ref: (1, C_out)         sum_k bias_k (f32)
    # o_ref: (tm*Vp, C_out)     rows ordered (m, v')

    # --- Matmul 1: graph mixing with swapped operands.  Only K*Vp rows go through the
    # MXU; the big tm*C_in axis is the lane/output dimension.
    xa = jnp.dot(a_ref[...], x_ref[...],
                 preferred_element_type=jnp.float32)          # (K*Vp, tm*C_in) f32
    # Cast to the weight dtype BEFORE the relayout so all relayout traffic is 16-bit
    # when the weights are bf16 (identical numerics to casting just before matmul 2).
    xa = xa.astype(w_ref.dtype)

    # --- Relayout between the two contractions:
    #       (k*Vp + v', m*C_in + c)  ->  (m, k*Vp + v', c)
    # expressed with layout-friendly ops only: 2-D transpose, second-minor split
    # (lane dim unchanged), batched last-two-dims swap.
    xat = jnp.swapaxes(xa.T.reshape(tm, c_in, k * vp), 1, 2)   # (tm, K*Vp, C_in)

    # --- Matmul 2: the K 1x1 convolutions, accumulated in f32.  Per-partition slices
    # start on 8-aligned sublane offsets (Vp % 8 == 0) so slice + merge is cheap, and
    # there is no concat buffer.  Contraction = C_in fills the MXU tile at real widths.
    z = None
    for i in range(k):
        lhs = xat[:, i * vp:(i + 1) * vp, :].reshape(tm * vp, c_in)
        zi = jnp.dot(lhs, w_ref[i], preferred_element_type=jnp.float32)
        z = zi if z is None else z + zi

    # Hoisted bias (sum over partitions) added once, then ReLU; epilogue stays in f32.
    z = z + b_ref[...]
    o_ref[...] = jnp.maximum(z, 0.0).astype(o_ref.dtype)


def _choose_tm(M, c_in, c_out, v, k, x_bytes, w_bytes, budget, tm_hint):
    """Pick the row-tile size tm from a VMEM budget (double-buffered I/O + temporaries)."""
    vp = _round_up(v, 8)
    co = _round_up(max(c_out, 1), 128)     # output lanes pad to 128 in VMEM

    def footprint(tm):
        x_tile = vp * tm * c_in * x_bytes * 2            # double-buffered input block
        o_tile = tm * vp * co * x_bytes * 2              # double-buffered output block
        xa_f32 = k * vp * tm * c_in * 4                  # matmul-1 f32 result
        xa_rel = 2 * k * vp * tm * c_in * w_bytes        # cast + relayout copies (w dtype)
        z_f32 = tm * vp * co * 4                         # matmul-2 accumulator
        resid = 2 * (k * vp * 128 * 4 + k * c_in * co * w_bytes + co * 4)
        return x_tile + o_tile + xa_f32 + xa_rel + z_f32 + resid

    # Alignment: x block lane dim (tm*C_in) must be a multiple of 128 when tiling.
    align = 128 // math.gcd(c_in, 128)
    align *= 8 // math.gcd(align, 8)

    tm = max(1, min(tm_hint, M))
    if tm >= M and footprint(M) <= budget:
        return M                                          # one tile covers everything
    tm = max(align, (tm // align) * align)
    while tm > align and footprint(tm) > budget:
        tm -= align
    # Prefer a tile that divides M (avoids padded-tail work), if one is nearby.
    if tm < M and M % tm:
        t = tm
        while t >= max(align, tm // 2):
            if M % t == 0:
                return t
            t -= align
    return tm


def spatial_gcn(x, A, mask, weights, biases, *, tm=512):
    """x: (N, C_in, T, V);  A, mask: (K, V, V);  weights: (K, C_out, C_in);
    biases: (K, C_out).  Returns ReLU(sum_k Conv1x1_k(x @ (A_k*mask_k))) of shape
    (N, C_out, T, V).  (bf16 inputs use a bf16 inter-matmul intermediate — standard
    mixed precision; loosen tolerances vs. an f32 reference in that case.)"""
    N, C_in, T, V = x.shape
    K, C_out, _ = weights.shape
    M = N * T
    Vp = _round_up(V, 8)

    # --- VMEM budget: derive from the chip (v7x has 64 MiB, v5e/v6e 128 MiB). ---
    try:
        phys = int(pltpu.get_tpu_info().vmem_capacity_bytes)
    except Exception:
        phys = 128 * 1024 * 1024
    vmem_limit = max(16 << 20, min(phys * 3 // 4, 96 << 20))
    budget = int(vmem_limit * 0.85)

    x_bytes = jnp.dtype(x.dtype).itemsize
    w_bytes = jnp.dtype(weights.dtype).itemsize
    tm = _choose_tm(M, C_in, C_out, V, K, x_bytes, w_bytes, budget, tm)
    Mp = _round_up(M, tm)

    # --- Small parameter prep (wrapper-side glue, tiny vs. activation traffic). ---
    Am = (A * mask).astype(x.dtype)                                # (K, V, V)
    # aT[k*Vp + v', w] = Am[k, w, v']; partition stride padded to Vp so per-k slices of
    # the intermediate start on sublane-tile boundaries.
    aT = jnp.transpose(Am, (0, 2, 1))                              # (K, V, V) [k, v', w]
    aT = jnp.pad(aT, ((0, 0), (0, Vp - V), (0, 0))).reshape(K * Vp, V)
    # w3[k, c, o] = weights[k, o, c]
    w3 = jnp.transpose(weights, (0, 2, 1))                         # (K, C_in, C_out)
    # Bias hoist: sum over partitions, added once in-kernel (f32).
    b_sum = jnp.sum(biases.astype(jnp.float32), axis=0).reshape(1, C_out)

    # Lane-dense activation layout: (N, C_in, T, V) -> (V, M*C_in), columns (m, c).
    x2 = jnp.transpose(x, (3, 0, 2, 1)).reshape(V, M * C_in)
    if Mp != M:
        x2 = jnp.pad(x2, ((0, 0), (0, (Mp - M) * C_in)))

    kernel = functools.partial(_spatial_gcn_kernel, tm=tm, c_in=C_in, vp=Vp, k=K)

    out2d = pl.pallas_call(
        kernel,
        out_shape=jax.ShapeDtypeStruct((Mp * Vp, C_out), x.dtype),
        grid_spec=pltpu.PrefetchScalarGridSpec(
            num_scalar_prefetch=0,
            grid=(Mp // tm,),
            in_specs=[
                pl.BlockSpec((V, tm * C_in), lambda m: (0, m)),        # activations
                pl.BlockSpec((K * Vp, V), lambda m: (0, 0)),           # adjacency (resident)
                pl.BlockSpec((K, C_in, C_out), lambda m: (0, 0, 0)),   # weights (resident)
                pl.BlockSpec((1, C_out), lambda m: (0, 0)),            # bias sum (resident)
            ],
            out_specs=pl.BlockSpec((tm * Vp, C_out), lambda m: (m, 0)),
        ),
        compiler_params=pltpu.CompilerParams(
            dimension_semantics=("parallel",),     # row tiles split across TCs (v7x)
            vmem_limit_bytes=vmem_limit,
        ),
    )(x2, aT, w3, b_sum)

    # (Mp*Vp, C_out) -> (N, C_out, T, V), dropping row/joint padding.
    out = out2d.reshape(Mp, Vp, C_out)[:M, :V, :].reshape(N, T, V, C_out)
    return jnp.transpose(out, (0, 3, 1, 2))


def _reference(x, A, mask, weights, biases):
    Am = A * mask
    xa = jnp.einsum('nctw,kwv->knctv', x, Am)
    z = jnp.einsum('knctv,koc->notv', xa, weights)
    z = z + jnp.sum(biases, axis=0)[None, :, None, None]
    return jnp.maximum(z, 0.0)


if __name__ == "__main__":
    # Small deterministic example: N=2, C_in=4, C_out=8, T=64, V=16, K=3 partitions.
    # tm=64 so the grid has 2 steps and the tiled path is exercised.
    N, C_in, C_out, T, V, K = 2, 4, 8, 64, 16, 3
    key = jax.random.PRNGKey(0)
    kx, ka, kw, kb = jax.random.split(key, 4)

    x = jax.random.normal(kx, (N, C_in, T, V), dtype=jnp.float32)
    A = jax.random.uniform(ka, (K, V, V), dtype=jnp.float32)       # register_buffer A
    mask = jnp.ones((K, V, V), dtype=jnp.float32)                  # nn.Parameter ones
    # Conv2d(C_in, C_out, kernel_size=(1,1)) weights/biases, deterministic init.
    weights = 0.1 * jax.random.normal(kw, (K, C_out, C_in), dtype=jnp.float32)
    biases = 0.1 * jax.random.normal(kb, (K, C_out), dtype=jnp.float32)

    out = spatial_gcn(x, A, mask, weights, biases, tm=64)
    out = jax.block_until_ready(out)

    ref = _reference(x, A, mask, weights, biases)
    assert out.shape == (N, C_out, T, V)
    assert jnp.allclose(out, ref, atol=1e-4, rtol=1e-4), "mismatch vs reference"

    print("KERNEL_OK")
</pallas_src>

<mosaic_0001>
module attributes {stable_mosaic.version = 11 : i64} {
  func.func @_spatial_gcn_kernel(%arg0: i32, %arg1: memref<16x256xf32, #tpu.memory_space<vmem>>, %arg2: memref<48x16xf32, #tpu.memory_space<vmem>>, %arg3: memref<3x4x8xf32, #tpu.memory_space<vmem>>, %arg4: memref<1x8xf32, #tpu.memory_space<vmem>>, %arg5: memref<1024x8xf32, #tpu.memory_space<vmem>>) attributes {dimension_semantics = [#tpu.dimension_semantics<parallel>], iteration_bounds = array<i64: 2>, scalar_prefetch = 0 : i64, scratch_operands = 0 : i64, tpu.core_type = #tpu.core_type<tc>, window_params = [{transform_indices = @transform_0, window_bounds = array<i64: 16, 256>}, {pipeline_mode = #tpu.pipeline_mode<synchronous>, transform_indices = @transform_1, window_bounds = array<i64: 48, 16>}, {pipeline_mode = #tpu.pipeline_mode<synchronous>, transform_indices = @transform_2, window_bounds = array<i64: 3, 4, 8>}, {pipeline_mode = #tpu.pipeline_mode<synchronous>, transform_indices = @transform_3, window_bounds = array<i64: 1, 8>}, {transform_indices = @transform_4, window_bounds = array<i64: 1024, 8>}]} {
    %c0 = arith.constant 0 : index
    %c0_0 = arith.constant 0 : index
    %0 = vector.load %arg2[%c0, %c0_0] : memref<48x16xf32, #tpu.memory_space<vmem>>, vector<48x16xf32>
    %c0_1 = arith.constant 0 : index
    %c0_2 = arith.constant 0 : index
    %1 = vector.load %arg1[%c0_1, %c0_2] : memref<16x256xf32, #tpu.memory_space<vmem>>, vector<16x256xf32>
    %cst = arith.constant dense<0.000000e+00> : vector<48x256xf32>
    %2 = tpu.matmul %0, %1, %cst {dimension_numbers = #tpu.dot_dimension_numbers<[1], [0], [0], [1], [0, 0, 1, 1], [], []>} : vector<48x16xf32>, vector<16x256xf32>, vector<48x256xf32> -> vector<48x256xf32>
    %3 = tpu.transpose %2, [1, 0] : vector<48x256xf32> -> vector<256x48xf32>
    %4 = vector.shape_cast %3 : vector<256x48xf32> to vector<64x4x48xf32>
    %5 = tpu.transpose %4, [0, 2, 1] : vector<64x4x48xf32> -> vector<64x48x4xf32>
    %6 = vector.extract_strided_slice %5 {offsets = [0, 0, 0], sizes = [64, 16, 4], strides = [1, 1, 1]} : vector<64x48x4xf32> to vector<64x16x4xf32>
    %7 = vector.shape_cast %6 : vector<64x16x4xf32> to vector<1024x4xf32>
    %c0_3 = arith.constant 0 : index
    %c0_4 = arith.constant 0 : index
    %c0_5 = arith.constant 0 : index
    %8 = vector.load %arg3[%c0_3, %c0_4, %c0_5] : memref<3x4x8xf32, #tpu.memory_space<vmem>>, vector<1x4x8xf32>
    %9 = vector.shape_cast %8 : vector<1x4x8xf32> to vector<4x8xf32>
    %cst_6 = arith.constant dense<0.000000e+00> : vector<1024x8xf32>
    %10 = tpu.matmul %7, %9, %cst_6 {dimension_numbers = #tpu.dot_dimension_numbers<[1], [0], [0], [1], [0, 0, 1, 1], [], []>} : vector<1024x4xf32>, vector<4x8xf32>, vector<1024x8xf32> -> vector<1024x8xf32>
    %11 = vector.extract_strided_slice %5 {offsets = [0, 16, 0], sizes = [64, 16, 4], strides = [1, 1, 1]} : vector<64x48x4xf32> to vector<64x16x4xf32>
    %12 = vector.shape_cast %11 : vector<64x16x4xf32> to vector<1024x4xf32>
    %c1 = arith.constant 1 : index
    %c0_7 = arith.constant 0 : index
    %c0_8 = arith.constant 0 : index
    %13 = vector.load %arg3[%c1, %c0_7, %c0_8] : memref<3x4x8xf32, #tpu.memory_space<vmem>>, vector<1x4x8xf32>
    %14 = vector.shape_cast %13 : vector<1x4x8xf32> to vector<4x8xf32>
    %cst_9 = arith.constant dense<0.000000e+00> : vector<1024x8xf32>
    %15 = tpu.matmul %12, %14, %cst_9 {dimension_numbers = #tpu.dot_dimension_numbers<[1], [0], [0], [1], [0, 0, 1, 1], [], []>} : vector<1024x4xf32>, vector<4x8xf32>, vector<1024x8xf32> -> vector<1024x8xf32>
    %16 = arith.addf %10, %15 : vector<1024x8xf32>
    %17 = vector.extract_strided_slice %5 {offsets = [0, 32, 0], sizes = [64, 16, 4], strides = [1, 1, 1]} : vector<64x48x4xf32> to vector<64x16x4xf32>
    %18 = vector.shape_cast %17 : vector<64x16x4xf32> to vector<1024x4xf32>
    %c2 = arith.constant 2 : index
    %c0_10 = arith.constant 0 : index
    %c0_11 = arith.constant 0 : index
    %19 = vector.load %arg3[%c2, %c0_10, %c0_11] : memref<3x4x8xf32, #tpu.memory_space<vmem>>, vector<1x4x8xf32>
    %20 = vector.shape_cast %19 : vector<1x4x8xf32> to vector<4x8xf32>
    %cst_12 = arith.constant dense<0.000000e+00> : vector<1024x8xf32>
    %21 = tpu.matmul %18, %20, %cst_12 {dimension_numbers = #tpu.dot_dimension_numbers<[1], [0], [0], [1], [0, 0, 1, 1], [], []>} : vector<1024x4xf32>, vector<4x8xf32>, vector<1024x8xf32> -> vector<1024x8xf32>
    %22 = arith.addf %16, %21 : vector<1024x8xf32>
    %c0_13 = arith.constant 0 : index
    %c0_14 = arith.constant 0 : index
    %23 = vector.load %arg4[%c0_13, %c0_14] : memref<1x8xf32, #tpu.memory_space<vmem>>, vector<1x8xf32>
    %24 = vector.broadcast %23 : vector<1x8xf32> to vector<1024x8xf32>
    %25 = arith.addf %22, %24 : vector<1024x8xf32>
    %cst_15 = arith.constant 0.000000e+00 : f32
    %26 = vector.broadcast %cst_15 : f32 to vector<1024x8xf32>
    %27 = arith.maximumf %25, %26 : vector<1024x8xf32>
    %c0_16 = arith.constant 0 : index
    %c0_17 = arith.constant 0 : index
    %28 = vector.load %arg5[%c0_16, %c0_17] : memref<1024x8xf32, #tpu.memory_space<vmem>>, vector<1024x8xf32>
    tpu.vector_store %arg5[%c0_16, %c0_17], %27 {strides = array<i32>} : memref<1024x8xf32, #tpu.memory_space<vmem>>, vector<1024x8xf32>,
    return
  }
  func.func @transform_0(%arg0: i32) -> (i32, i32) {
    %c0_i32 = arith.constant 0 : i32
    %c0_i32_0 = arith.constant 0 : i32
    return %c0_i32, %arg0 : i32, i32
  }
  func.func @transform_1(%arg0: i32) -> (i32, i32) {
    %c0_i32 = arith.constant 0 : i32
    %c0_i32_0 = arith.constant 0 : i32
    %c0_i32_1 = arith.constant 0 : i32
    return %c0_i32, %c0_i32_0 : i32, i32
  }
  func.func @transform_2(%arg0: i32) -> (i32, i32, i32) {
    %c0_i32 = arith.constant 0 : i32
    %c0_i32_0 = arith.constant 0 : i32
    %c0_i32_1 = arith.constant 0 : i32
    %c0_i32_2 = arith.constant 0 : i32
    return %c0_i32, %c0_i32_0, %c0_i32_1 : i32, i32, i32
  }
  func.func @transform_3(%arg0: i32) -> (i32, i32) {
    %c0_i32 = arith.constant 0 : i32
    %c0_i32_0 = arith.constant 0 : i32
    %c0_i32_1 = arith.constant 0 : i32
    return %c0_i32, %c0_i32_0 : i32, i32
  }
  func.func @transform_4(%arg0: i32) -> (i32, i32) {
    %c0_i32 = arith.constant 0 : i32
    %c0_i32_0 = arith.constant 0 : i32
    return %arg0, %c0_i32 : i32, i32
  }
}

</mosaic_0001>

<bundles_post_ra>
// kernel: tpu_custom_call.1
= control target key start
LH: loop header
LB: loop body
LE: loop exit
PB: predicated region body
PF: predicated region fallthrough
CT: control target
= control target key end

     0   :  { %s10863_s0 = inlined_call_operand.hbm [shape: f32[16,512], index: 0, kind: input, shape index: {}]   ;;  %s10864_s1 = inlined_call_operand.hbm [shape: f32[48,16], index: 1, kind: input, shape index: {}]   ;;  %s10865_s2 = inlined_call_operand.hbm [shape: f32[3,4,8], index: 2, kind: input, shape index: {}]   ;;  %s10866_s3 = inlined_call_operand.hbm [shape: f32[1,8], index: 3, kind: input, shape index: {}]   ;;  %s10867_s4 = inlined_call_operand.hbm [shape: f32[2048,8], index: 4, kind: output, shape index: {}]  }
   0x1   :  { %10875 = sst [smem:[#allocation202_spill]] %s10864_s1 }
   0x2   :  { %9 = vsyncpa [#allocation3], 0 }
   0x3   :  { %11 = vsyncpa [#allocation3 + $0x1], 0 }
   0x4   :  { %12 = vsyncpa [#allocation6], 0 }
   0x5   :  { %13 = vsyncpa [#allocation9], 0 }
   0x6   :  { %14 = vsyncpa [#allocation4], 0 }
   0x7   :  { %16 = vsyncpa [#allocation4 + $0x1], 0  ;;  %s8482_s15 = smov 0   ;;  %s8484_s16 = smov 0  }
   0x8   :  { %s8486_s17 = smov 0   ;;  %s8488_s18 = smov 0  }
   0x9 LB: > { %s8503_s19 = sadd.s32 4294967295, %s8440_s18   ;;  %s6517_s20 = sadd.s32 4294967294, %s8440_s18   ;;  %s8440_s18 = sphi %s8488_s18, %s11417_s18   ;;  %s8436_s17 = sphi %s8486_s17, %s11421_s17   ;;  %s8432_s16 = sphi %s8484_s16, %s11420_s16   ;;  %s8428_s15 = sphi %s8482_s15, %s11419_s15  }
   0xa   : > { %s8507_s21 = sadd.s32 1, %s8440_s18   ;;  %s29_s22 = sadd.s32 1, %s8436_s17 }
   0xb   : > { %10876 = sst [smem:[#allocation15_spill]] %s8507_s21  ;;  %s26_s23 = ssub.s32 %s8440_s18, %s8507_s21 }
   0xc   : > { %p36_p0 = scmp.ne.s32.totalorder %s8436_s17, %s8432_s16  ;;  %p27_p1 = scmp.eq.s32.totalorder %s26_s23, 0 }
   0xd   : > { %p37_p2 = scmp.eq.s32.totalorder %s8440_s18, 0  ;;  %p42_p3 = scmp.ne.s32.totalorder %s8432_s16, %s8428_s15 }
   0xe   : > { %p10868_p4 = scmp.eq.s32.totalorder %s8503_s19, 0  ;;  %p129_p7 = scmp.eq.s32.totalorder %s8503_s19, 1 }
   0xf   : > { %s8519_s24 = scalar_select %p27_p1, %s8436_s17, %s29_s22  }
  0x10   : > { %p8521_p5 = por %p37_p2, %p36_p0  ;;  %p8527_p6 = por %p10868_p4, %p42_p3 }
  0x11   : > { %10877 = sst [smem:[#allocation16_spill]] %s8519_s24  ;;  %p135_p8 = scmp.eq.s32.totalorder %s6517_s20, 1 }
  0x12   : > { %s10878_s25 = scalar_select %p8521_p5, 1, 0 }
  0x13   : > { %s10879_s26 = scalar_select %p8527_p6, 1, 0 }
  0x14   : > { %p6518_p9 = scmp.ge.s32.totalorder %s8440_s18, 1  ;;  %p142_p10 = scmp.lt.s32.totalorder %s8440_s18, 3 }
  0x15   : > { %p8534_p11 = por %p129_p7, %p36_p0  ;;  %p8538_p12 = por %p135_p8, %p42_p3 }
  0x16   : > { %p8542_p13 = pnand %p6518_p9, %p142_p10  ;;  %s8442_s30 = smov [#allocation5]  }
  0x17   : > { %s10880_s27 = scalar_select %p8534_p11, 1, 0 }
  0x18   : > { %s10881_s28 = scalar_select %p8538_p12, 1, 0 }
  0x19   : > { %s10882_s29 = scalar_select %p8542_p13, 1, 0 }
  0x1a   : > { %p8180_p1 = pneg %p8542_p13  ;;  %s154_s5 = sshll.u32 %s8442_s30, 4  ;;  %s155_s5 = int_to_ptr.vmem [resolvable:$true] %s154_s5 }
  0x1b   : > { %s8443_s7 = smov [#allocation7]   ;;  %s10884_s1 = sld [smem:[#allocation202_spill]] }
  0x1c   : > { %p8550_p2 = pnand %p8180_p1, %p10868_p4  ;;  %s167_s8 = sshll.u32 %s8443_s7, 4  ;;  %s168_s8 = int_to_ptr.vmem [resolvable:$true] %s167_s8 }
  0x1e   : > { %p8564_p8 = pneg %p8550_p2 }
  0x21   : > { %s8252_s11 = scalar_lea.hbm %s10884_s1, 768 }
  0x22   : > { %p8253_p7 = scmp.ne.s32.totalorder %s10884_s1, %s8252_s11  ;;  %p8259_p1 = scmp.lt.u32.totalorder %s8252_s11, %s10884_s1 }
  0x24   : > { %p8255_p9 = pnand %p8564_p8, %p8253_p7 }
  0x26   : > { %p8256_p10 = pneg %p8255_p9 }
  0x28   : > { %p8261_p0 = pnand %p8259_p1, %p8256_p10 }
  0x2a   : > { %8264 = shalt.err (!%p8261_p0)
}
  0x2b   : > { %s8265_s23 = scalar_lea.vmem %s155_s5, 768  ;;  %p8273_p11 = scmp.lt.s32.totalorder %s155_s5, %s155_s5 }
  0x2c   : > { %p8266_p4 = scmp.ne.s32.totalorder %s155_s5, %s8265_s23  ;;  %p8274_p6 = scmp.lt.s32.totalorder %s8265_s23, %s8265_s23 }
  0x2e   : > { %p8268_p3 = pnand %p8266_p4, %p8564_p8  ;;  %p8275_p13 = por %p8274_p6, %p8273_p11 }
  0x30   : > { %p8269_p12 = pneg %p8268_p3 }
  0x32   : > { %p8276_p5 = pnand %p8275_p13, %p8269_p12 }
  0x34   : > { %8279 = shalt.err (!%p8276_p5)
}
  0x35   : > { %s8444_s30 = smov 128   ;;  %s8445_s7 = smov 8  }
  0x36   : > { %8183 = dma.hbm_to_vmem [thread:$0]  (!%p8550_p2), %s10884_s1, 768, %s155_s5, [#allocation6], %s8444_s30, %s8444_s30, %s8445_s7  }
  0x37   : > { %p10886_p0 = scmp.ne.s32.totalorder %s10878_s25, 0  ;;  %p10887_p7 = scmp.lt.s32.totalorder %s8440_s18, 2 }
  0x38   : > { %s8280_s20 = scalar_lea.hbm %s10865_s2, 192 }
  0x39   : > { %p8584_p4 = pnand %p10887_p7, %p10886_p0  ;;  %p8281_p5 = scmp.ne.s32.totalorder %s10865_s2, %s8280_s20 }
  0x3a   : > { %p8287_p12 = scmp.lt.u32.totalorder %s8280_s20, %s10865_s2 }
  0x3b   : > { %s10888_s11 = scalar_select %p8584_p4, 1, 0 }
  0x3c   : > { %p8283_p6 = pnand %p8281_p5, %p8564_p8 }
  0x3e   : > { %p8284_p11 = pneg %p8283_p6 }
  0x40   : > { %p8289_p13 = pnand %p8287_p12, %p8284_p11 }
  0x42   : > { %8292 = shalt.err (!%p8289_p13)
}
  0x43   : > { %s8293_s25 = scalar_lea.vmem %s168_s8, 192  ;;  %p8301_p1 = scmp.lt.s32.totalorder %s168_s8, %s168_s8 }
  0x44   : > { %p8294_p3 = scmp.ne.s32.totalorder %s168_s8, %s8293_s25  ;;  %p8302_p0 = scmp.lt.s32.totalorder %s8293_s25, %s8293_s25 }
  0x46   : > { %p8296_p9 = pnand %p8294_p3, %p8564_p8  ;;  %p8303_p7 = por %p8302_p0, %p8301_p1 }
  0x48   : > { %p8297_p10 = pneg %p8296_p9 }
  0x4a   : > { %p8304_p4 = pnand %p8303_p7, %p8297_p10 }
  0x4c   : > { %8307 = shalt.err (!%p8304_p4)
}
  0x4d   : > { %s8446_s30 = smov 64   ;;  %s8447_s7 = smov 4  }
  0x4e   : > { %8186 = dma.hbm_to_vmem [thread:$0]  (!%p8550_p2), %s10865_s2, 192, %s168_s8, [#allocation6], %s8446_s30, %s8446_s30, %s8447_s7  }
  0x4f   : > { %s8448_s13 = smov [#allocation8]   ;;  %s192_s22 = sand.u32 1, %s8436_s17  }
  0x50   : > { %s181_s20 = sshll.u32 %s8448_s13, 4  ;;  %s8308_s5 = scalar_lea.hbm %s10866_s3, 16  ;;  %s182_s20 = int_to_ptr.vmem [resolvable:$true] %s181_s20 }
  0x51   : > { %p8309_p4 = scmp.ne.s32.totalorder %s10866_s3, %s8308_s5  ;;  %p8315_p11 = scmp.lt.u32.totalorder %s8308_s5, %s10866_s3 }
  0x53   : > { %p8311_p5 = pnand %p8309_p4, %p8564_p8 }
  0x55   : > { %p8312_p6 = pneg %p8311_p5 }
  0x57   : > { %p8317_p12 = pnand %p8315_p11, %p8312_p6 }
  0x59   : > { %8320 = shalt.err (!%p8317_p12)
}
  0x5a   : > { %s8321_s8 = scalar_lea.vmem %s182_s20, 16  ;;  %s8328_s30 = scalar_lea.vmem %s182_s20, 32 }
  0x5b   : > { %p8322_p13 = scmp.ne.s32.totalorder %s182_s20, %s8321_s8  ;;  %p8329_p10 = scmp.lt.s32.totalorder %s182_s20, %s182_s20 }
  0x5c   : > { %p8330_p1 = scmp.lt.s32.totalorder %s8328_s30, %s8321_s8 }
  0x5d   : > { %p8324_p3 = pnand %p8322_p13, %p8564_p8 }
  0x5e   : > { %p8331_p0 = por %p8330_p1, %p8329_p10 }
  0x5f   : > { %p8325_p9 = pneg %p8324_p3 }
  0x61   : > { %p8332_p7 = pnand %p8331_p0, %p8325_p9 }
  0x63   : > { %8335 = shalt.err (!%p8332_p7)
}
  0x64   : > { %8189 = dma.hbm_to_vmem [thread:$0]  (!%p8550_p2), %s10866_s3, 16, %s182_s20, [#allocation9]  }
  0x65   : > { %s6523_s21 = sshll.u32 %s192_s22, 5  ;;  %s6931_s24 = sshll.u32 %s8440_s18, 8 }
  0x66   : > { %s8629_s12 = scalar_lea.hbm %s10863_s0, %s6931_s24  ;;  %s196_s13 = scalar_lea.vmem [#allocation2], %s6523_s21 }
  0x67   : > { %s203_s6 = sshll.u32 %s196_s13, 4  ;;  %s8633_s23 = scalar_lea.sflag [#allocation3], %s192_s22  ;;  %s8631_s6 = int_to_ptr.vmem [resolvable:$true] %s203_s6 }
  0x68   : > { %s8336_s9 = scalar_lea.hbm %s8629_s12, 512  ;;  %p10889_p2 = scmp.ne.s32.totalorder %s10888_s11, 0 }
  0x69   : > { %p8337_p8 = scmp.ne.s32.totalorder %s8629_s12, %s8336_s9  ;;  %s8341_s25 = scalar_lea.hbm %s10863_s0, 1024 }
  0x6a   : > { %p8338_p4 = pneg %p10889_p2  ;;  %p8342_p11 = scmp.lt.u32.totalorder %s8629_s12, %s10863_s0 }
  0x6b   : > { %p8343_p12 = scmp.lt.u32.totalorder %s8341_s25, %s8336_s9  ;;  %p8345_p3 = scmp.lt.u32.totalorder %s8336_s9, %s8629_s12 }
  0x6c   : > { %p8339_p5 = pnand %p8338_p4, %p8337_p8 }
  0x6d   : > { %p8344_p13 = por %p8343_p12, %p8342_p11 }
  0x6e   : > { %p8340_p6 = pneg %p8339_p5 }
  0x6f   : > { %p8346_p9 = por %p8345_p3, %p8344_p13 }
  0x71   : > { %p8347_p10 = pnand %p8346_p9, %p8340_p6 }
  0x73   : > { %8350 = shalt.err (!%p8347_p10)
}
  0x74   : > { %s8351_s22 = scalar_lea.vmem %s8631_s6, 512  ;;  %s8449_s1 = smov [#allocation2]  }
  0x75   : > { %p8352_p1 = scmp.ne.s32.totalorder %s8631_s6, %s8351_s22  ;;  %s8356_s7 = sshll.u32 %s8449_s1, 4  ;;  %s8357_s7 = int_to_ptr.vmem [resolvable:$false] %s8356_s7 }
  0x76   : > { %s8358_s21 = scalar_lea.vmem %s8357_s7, 1024  ;;  %p8359_p8 = scmp.lt.s32.totalorder %s8631_s6, %s8357_s7 }
  0x77   : > { %p8354_p0 = pnand %p8352_p1, %p8338_p4  ;;  %p8360_p5 = scmp.lt.s32.totalorder %s8358_s21, %s8351_s22 }
  0x79   : > { %p8355_p7 = pneg %p8354_p0  ;;  %p8361_p11 = por %p8360_p5, %p8359_p8 }
  0x7b   : > { %p8362_p12 = pnand %p8361_p11, %p8355_p7 }
  0x7d   : > { %8365 = shalt.err (!%p8362_p12)
}
  0x7e   : > { %s8450_s24 = smov 512   ;;  %s8451_s14 = smov 256  }
  0x7f   : > { %s8452_s10 = smov 16   ;;  %p10890_p4 = scmp.ne.s32.totalorder %s10882_s29, 0 }
  0x80   : > { %8193 = dma.hbm_to_vmem [thread:$0]  (!%p10889_p2), %s8629_s12, 512, %s8631_s6, %s8633_s23, %s8450_s24, %s8451_s14, %s8452_s10  }
  0x81   : > { %215 = sbr.rel (%p10890_p4) target bundleno = 1866 (0x74a), region = 36 }
  0x88   : > { %s8664_s13 = sand.u32 1, %s8432_s16   ;;  %p10891_p6 = scmp.ne.s32.totalorder %s10879_s26, 0 }
  0x89   : > { %s6527_s9 = sshll.u32 %s8664_s13, 5  ;;  %s218_s20 = scalar_lea.sflag [#allocation3], %s8664_s13 }
  0x8a   : > { %s221_s5 = scalar_lea.vmem [#allocation2], %s6527_s9 }
  0x8b   : > { %8411 = dma.done.wait (%p10891_p6), %s218_s20, 512  }
  0x8c   : > { %8413 = vsyncadd (%p10891_p6), %s218_s20, 4294966784  ;;  %p10892_p13 = scmp.eq.s32.totalorder %s8503_s19, 0 }
  0x8e   : > { %8415 = dma.done.wait (%p10892_p13), [#allocation6], 960   ;;  %p10893_p2 = pmov %p10892_p13 }
  0x90   : > { %8417 = vsyncadd (%p10893_p2), [#allocation6], 4294966336  ;;  %p10894_p3 = pmov %p10893_p2 }
  0x91   : > { %p10895_p9 = pmov %p10893_p2 }
  0x92   : > { %8419 = dma.done.wait (%p10894_p3), [#allocation9], 16  }
  0x93   : > { %8421 = vsyncadd (%p10895_p9), [#allocation9], 4294967280  ;;  %v8453_v0 = vmov 0.0   ;;  %v267_v1 = vld [vmem:[%s221_s5 + $0x8] sm:$0xff]  ;;  %v269_v2 = vld [vmem:[%s221_s5 + $0x18] sm:$0xff]  ;;  %vm270_vm0 = vcmask 130048  }
  0x94   : > { %353 = vmatprep.mubr.f32.mxu0 %v8453_v0  ;;  %v266_v3 = vld [vmem:[%s221_s5] sm:$0xff]  ;;  %v7902_v4 = vpack.c.bf16 %v269_v2, %v267_v1  ;;  %v268_v5 = vld [vmem:[%s221_s5 + $0x10] sm:$0xff]  ;;  %v261_v8 = vld [vmem:[#allocation5 + $0x8] sm:$0xff]  ;;  %vm2986_vm1 = vcmask 1043456   ;;  %vm2601_vm2 = vcmask 31744   ;;  %s6531_s26 = sshll.u32 %s8664_s13, 10 }
  0x95   : > { %v7904_v6 = vpack.c.bf16 %v268_v5, %v266_v3  ;;  %v260_v7 = vld [vmem:[#allocation5] sm:$0xff]  ;;  %v262_v9 = vld [vmem:[#allocation5 + $0x10] sm:$0xff]  ;;  %v263_v10 = vld [vmem:[#allocation5 + $0x18] sm:$0xff]  ;;  %vm6272_vm3 = vcmask 64512   ;;  %s10298_s29 = scalar_lea.vmem [#allocation10], %s6531_s26  ;;  %s6932_s11 = sshll.u32 %s8503_s19, 14 }
  0x96   : > { %7903 = vmatprep.subr.bf16.mxu0 %v7902_v4  ;;  %v264_v11 = vld [vmem:[#allocation5 + $0x20] sm:$0xff]  ;;  %v265_v12 = vld [vmem:[#allocation5 + $0x28] sm:$0xff]  ;;  %v2600_v27 = vld [vmem:[#allocation7 + $0x4] sm:$0xf]  ;;  %s6415_s12 = sshll.u32 %s10298_s29, 4  ;;  %s10813_s25 = scalar_lea.hbm %s10867_s4, %s6932_s11  ;;  %s10815_s12 = int_to_ptr.vmem [resolvable:$true] %s6415_s12 }
  0x97   : > { %7905 = vmatpush1.bf16.msra.mxu0 %v7904_v6  ;;  %s6402_s19 = scalar_lea.sflag [#allocation4], %s8664_s13  ;;  %s8366_s8 = scalar_lea.vmem %s10815_s12, 16384 }
  0x98   : > { %7320 = vmatprep.subr.msk.mxu0 %vm2986_vm1, %v2600_v27  ;;  %p8367_p10 = scmp.ne.s32.totalorder %s10815_s12, %s8366_s8  ;;  %p11414_p1 = scmp.ne.s32.totalorder %s10880_s27, 0 }
  0x99   : > { %s8454_s30 = smov [#allocation10]  }
  0x9a   : > { %6532 = vmatmul.mubr.msk.f32.vlgmr.msra.gmra.mrb[0].mxu0 %vm270_vm0, %v260_v7  ;;  %p8368_p0 = pnand %p8367_p10, %p11414_p1  ;;  %s8370_s22 = sshll.u32 %s8454_s30, 4  ;;  %s8371_s22 = int_to_ptr.vmem [resolvable:$false] %s8370_s22 }
  0x9b   : > { %359 = vmatprep.mubr.f32.mxu0 %v8453_v0  ;;  %7321 = vmatpush3.msk.msra.mxu0 %vm2986_vm1, %v2600_v27  ;;  %s8372_s1 = scalar_lea.vmem %s8371_s22, 32768  ;;  %p8373_p8 = scmp.lt.s32.totalorder %s10815_s12, %s8371_s22 }
  0x9c   : > { %p8369_p7 = pneg %p8368_p0  ;;  %p8374_p5 = scmp.lt.s32.totalorder %s8372_s1, %s8366_s8 }
  0x9e   : > { %6533 = vmatmul.mubr.msk.f32.gmra.mrb[2].mxu0 %vm270_vm0, %v261_v8  ;;  %p8375_p11 = por %p8374_p5, %p8373_p8 }
  0x9f   : > { %365 = vmatprep.mubr.f32.mxu0 %v8453_v0 }
  0xa0   : > { %p8376_p12 = pnand %p8375_p11, %p8369_p7 }
  0xa2   : > { %6534 = vmatmul.mubr.msk.f32.gmra.mrb[4].mxu0 %vm270_vm0, %v262_v9 }
  0xa3   : > { %371 = vmatprep.mubr.f32.mxu0 %v8453_v0 }
  0xa6   : > { %6535 = vmatmul.mubr.msk.f32.gmra.mrb[6].mxu0 %vm270_vm0, %v263_v10 }
  0xa7   : > { %377 = vmatprep.mubr.f32.mxu0 %v8453_v0 }
  0xaa   : > { %6536 = vmatmul.mubr.msk.f32.gmra.mrb[8].mxu0 %vm270_vm0, %v264_v11 }
  0xab   : > { %383 = vmatprep.mubr.f32.mxu0 %v8453_v0 }
  0xae   : > { %6537 = vmatmul.mubr.msk.f32.gmra.mrb[10].mxu0 %vm270_vm0, %v265_v12 }
 0x16d   : > { %v355_v13 = vpop.f32.mrb[0].mxu0 }
 0x16e   : > { %390 = vxpose.xlu0.b32.start [1/6] (short) %v355_v13, 128  ;;  %v357_v14 = vpop.f32.mrb[1].mxu0 }
 0x16f   : > { %422 = vxpose.xlu1.b32.start [1/6] (short) %v357_v14, 128 }
 0x171   : > { %v361_v15 = vpop.f32.mrb[2].mxu0 }
 0x172   : > { %391 = vxpose.xlu0.b32.cont [2/6] (short) %v361_v15, 128  ;;  %v363_v16 = vpop.f32.mrb[3].mxu0 }
 0x173   : > { %423 = vxpose.xlu1.b32.cont [2/6] (short) %v363_v16, 128 }
 0x175   : > { %v367_v17 = vpop.f32.mrb[4].mxu0 }
 0x176   : > { %392 = vxpose.xlu0.b32.cont [3/6] (short) %v367_v17, 128  ;;  %v369_v18 = vpop.f32.mrb[5].mxu0 }
 0x177   : > { %424 = vxpose.xlu1.b32.cont [3/6] (short) %v369_v18, 128 }
 0x179   : > { %v373_v19 = vpop.f32.mrb[6].mxu0 }
 0x17a   : > { %393 = vxpose.xlu0.b32.cont [4/6] (short) %v373_v19, 128  ;;  %v375_v20 = vpop.f32.mrb[7].mxu0 }
 0x17b   : > { %425 = vxpose.xlu1.b32.cont [4/6] (short) %v375_v20, 128 }
 0x17d   : > { %v379_v21 = vpop.f32.mrb[8].mxu0 }
 0x17e   : > { %394 = vxpose.xlu0.b32.cont [5/6] (short) %v379_v21, 128  ;;  %v381_v22 = vpop.f32.mrb[9].mxu0 }
 0x17f   : > { %426 = vxpose.xlu1.b32.cont [5/6] (short) %v381_v22, 128 }
 0x181   : > { %v385_v23 = vpop.f32.mrb[10].mxu0 }
 0x182   : > { %395 = vxpose.xlu0.b32.end [6/6] (short) %v385_v23, 128  ;;  %v387_v24 = vpop.f32.mrb[11].mxu0 }
 0x183   : > { %427 = vxpose.xlu1.b32.end [6/6] (short) %v387_v24, 128 }
 0x1ee   : > { %v406_v25 = vpop.trf.xlu0 }
 0x1ef   : > { %550 = vxpose.xlu0.b32.start.end [1/1] (short) (narrow) %v406_v25, 48  ;;  %v438_v26 = vpop.trf.xlu1  ;;  %v486_v29 = vcombine.high %v406_v25, %v406_v25 }
 0x1f0   : > { %1574 = vxpose.xlu1.b32.start.end [1/1] (short) (narrow) %v438_v26, 48  ;;  %v502_v28 = vcombine.high %v438_v26, %v438_v26 }
 0x1f2   : > { %v407_v30 = vpop.trf.xlu0 }
 0x1f3   : > { %v439_v31 = vpop.trf.xlu1  ;;  %v487_v39 = vcombine.high %v407_v30, %v407_v30 }
 0x1f4   : > { %v503_v38 = vcombine.high %v439_v31, %v439_v31 }
 0x1f6   : > { %v408_v32 = vpop.trf.xlu0 }
 0x1f7   : > { %v440_v33 = vpop.trf.xlu1  ;;  %v488_v55 = vcombine.high %v408_v32, %v408_v32 }
 0x1f8   : > { %v504_v54 = vcombine.high %v440_v33, %v440_v33 }
 0x1fa   : > { %v8688_v34 = vpop.trf.xlu0 }
 0x1fb   : > { %v441_v35 = vpop.trf.xlu1  ;;  %v489_v22 = vcombine.high %v8688_v34, %v8688_v34 }
 0x1fc   : > { %v505_v0 = vcombine.high %v441_v35, %v441_v35 }
 0x1fe   : > { %v8690_v36 = vpop.trf.xlu0 }
 0x1ff   : > { %v8692_v37 = vpop.trf.xlu1 }
 0x200   : > { %v506_v21 = vcombine.high %v8692_v37, %v8692_v37 }
 0x202   : > { %v8694_v40 = vpop.trf.xlu0 }
 0x203   : > { %v8696_v41 = vpop.trf.xlu1 }
 0x204   : > { %1606 = vxpose.xlu0.b32.start.end [1/1] (short) (narrow) %v502_v28, 48 }
 0x205   : > { %582 = vxpose.xlu1.b32.start.end [1/1] (short) (narrow) %v486_v29, 48 }
 0x206   : > { %v8698_v42 = vpop.trf.xlu0 }
 0x207   : > { %v8700_v43 = vpop.trf.xlu1 }
 0x20a   : > { %v8702_v44 = vpop.trf.xlu0 }
 0x20b   : > { %v8704_v45 = vpop.trf.xlu1 }
 0x20e   : > { %v8706_v46 = vpop.trf.xlu0 }
 0x20f   : > { %v8708_v47 = vpop.trf.xlu1 }
 0x212   : > { %v8710_v48 = vpop.trf.xlu0 }
 0x213   : > { %v8712_v49 = vpop.trf.xlu1 }
 0x216   : > { %v8714_v50 = vpop.trf.xlu0 }
 0x217   : > { %v8716_v51 = vpop.trf.xlu1 }
 0x219   : > { %614 = vxpose.xlu0.b32.start.end [1/1] (short) (narrow) %v407_v30, 48 }
 0x21a   : > { %1638 = vxpose.xlu1.b32.start.end [1/1] (short) (narrow) %v439_v31, 48  ;;  %v8718_v52 = vpop.trf.xlu0 }
 0x21b   : > { %v8720_v53 = vpop.trf.xlu1 }
 0x21e   : > { %v8722_v56 = vpop.trf.xlu0 }
 0x21f   : > { %v8724_v57 = vpop.trf.xlu1 }
 0x222   : > { %v8726_v58 = vpop.trf.xlu0 }
 0x223   : > { %v8728_v59 = vpop.trf.xlu1 }
 0x226   : > { %v8730_v60 = vpop.trf.xlu0 }
 0x227   : > { %v8732_v61 = vpop.trf.xlu1 }
 0x22a   : > { %v8734_v62 = vpop.trf.xlu0 }
 0x22b   : > { %v8736_v63 = vpop.trf.xlu1 }
 0x22e   : > { %1670 = vxpose.xlu0.b32.start.end [1/1] (short) (narrow) %v503_v38, 48 }
 0x22f   : > { %646 = vxpose.xlu1.b32.start.end [1/1] (short) (narrow) %v487_v39, 48 }
 0x243   : > { %678 = vxpose.xlu0.b32.start.end [1/1] (short) (narrow) %v408_v32, 48 }
 0x244   : > { %1702 = vxpose.xlu1.b32.start.end [1/1] (short) (narrow) %v440_v33, 48 }
 0x258   : > { %1734 = vxpose.xlu0.b32.start.end [1/1] (short) (narrow) %v504_v54, 48 }
 0x259   : > { %710 = vxpose.xlu1.b32.start.end [1/1] (short) (narrow) %v488_v55, 48 }
 0x26d   : > { %1798 = vxpose.xlu0.b32.start.end [1/1] (short) (narrow) %v505_v0, 48 }
 0x26e   : > { %742 = vxpose.xlu1.b32.start.end [1/1] (short) (narrow) %v8688_v34, 48 }
 0x26f   : > { %v8739_v1 = vpop.trf.xlu0 }
 0x270   : > { %10896 = vst [vmem:[#allocation17_spill] sm:$0xff] %v8739_v1  ;;  %v8741_v2 = vpop.trf.xlu1 }
 0x273   : > { %v8743_v3 = vpop.trf.xlu0 }
 0x274   : > { %10897 = vst [vmem:[#allocation18_spill] sm:$0xff] %v8743_v3  ;;  %v8745_v4 = vpop.trf.xlu1 }
 0x277   : > { %v568_v5 = vpop.trf.xlu0 }
 0x278   : > { %7322 = vmatprep.mubr.msk.f32.mxu0 %vm2601_vm2, %v568_v5  ;;  %v8748_v6 = vpop.trf.xlu1 }
 0x27b   : > { %v569_v7 = vpop.trf.xlu0 }
 0x27c   : > { %7323 = vmatmul.mubr.msk.f32.vlgmr.msra.gmra.mrb[12].mxu0 %vm2601_vm2, %v569_v7  ;;  %v8751_v8 = vpop.trf.xlu1  ;;  %v507_v7 = vcombine.high %v8696_v41, %v8696_v41 }
 0x27f   : > { %v8753_v9 = vpop.trf.xlu0 }
 0x280   : > { %v8755_v10 = vpop.trf.xlu1 }
 0x281   : > { %10898 = vst [vmem:[#allocation19_spill] sm:$0xff] %v8755_v10 }
 0x282   : > { %1830 = vxpose.xlu0.b32.start.end [1/1] (short) (narrow) %v8692_v37, 48 }
 0x283   : > { %v8758_v11 = vpop.trf.xlu0  ;;  %1766 = vxpose.xlu1.b32.start.end [1/1] (short) (narrow) %v441_v35, 48 }
 0x284   : > { %v8760_v12 = vpop.trf.xlu1 }
 0x285   : > { %10899 = vst [vmem:[#allocation20_spill] sm:$0xff] %v8760_v12 }
 0x287   : > { %v8762_v13 = vpop.trf.xlu0 }
 0x288   : > { %v8764_v14 = vpop.trf.xlu1 }
 0x289   : > { %10900 = vst [vmem:[#allocation21_spill] sm:$0xff] %v8764_v14 }
 0x28b   : > { %v8766_v15 = vpop.trf.xlu0 }
 0x28c   : > { %v8768_v16 = vpop.trf.xlu1 }
 0x28d   : > { %10901 = vst [vmem:[#allocation22_spill] sm:$0xff] %v8768_v16 }
 0x28f   : > { %v8770_v17 = vpop.trf.xlu0 }
 0x290   : > { %v600_v18 = vpop.trf.xlu1 }
 0x291   : > { %7325 = vmatprep.mubr.msk.f32.mxu0 %vm2601_vm2, %v600_v18 }
 0x293   : > { %v8773_v19 = vpop.trf.xlu0 }
 0x294   : > { %v601_v20 = vpop.trf.xlu1 }
 0x295   : > { %7326 = vmatmul.mubr.msk.f32.gmra.mrb[14].mxu0 %vm2601_vm2, %v601_v20  ;;  %v490_v20 = vcombine.high %v8690_v36, %v8690_v36 }
 0x297   : > { %v8780_v23 = vpop.trf.xlu0  ;;  %1862 = vxpose.xlu0.b32.start.end [1/1] (short) (narrow) %v506_v21, 48 }
 0x298   : > { %10902 = vst [vmem:[#allocation23_spill] sm:$0xff] %v8780_v23  ;;  %774 = vxpose.xlu1.b32.start.end [1/1] (short) (narrow) %v489_v22, 48  ;;  %v8782_v24 = vpop.trf.xlu1 }
 0x29b   : > { %v8784_v25 = vpop.trf.xlu0 }
 0x29c   : > { %10903 = vst [vmem:[#allocation24_spill] sm:$0xff] %v8784_v25  ;;  %v8786_v26 = vpop.trf.xlu1 }
 0x29d   : > { %10904 = vst [vmem:[#allocation25_spill] sm:$0xff] %v8786_v26 }
 0x29f   : > { %v8788_v27 = vpop.trf.xlu0 }
 0x2a0   : > { %10905 = vst [vmem:[#allocation26_spill] sm:$0xff] %v8788_v27  ;;  %v8790_v28 = vpop.trf.xlu1 }
 0x2a3   : > { %v8792_v29 = vpop.trf.xlu0 }
 0x2a4   : > { %10906 = vst [vmem:[#allocation27_spill] sm:$0xff] %v8792_v29  ;;  %v8794_v30 = vpop.trf.xlu1 }
 0x2a7   : > { %v632_v31 = vpop.trf.xlu0 }
 0x2a8   : > { %7328 = vmatprep.mubr.msk.f32.mxu0 %vm2601_vm2, %v632_v31  ;;  %v8797_v32 = vpop.trf.xlu1 }
 0x2ab   : > { %v633_v33 = vpop.trf.xlu0 }
 0x2ac   : > { %1894 = vxpose.xlu0.b32.start.end [1/1] (short) (narrow) %v8696_v41, 48  ;;  %7329 = vmatmul.mubr.msk.f32.gmra.mrb[16].mxu0 %vm2601_vm2, %v633_v33  ;;  %v8801_v34 = vpop.trf.xlu1 }
 0x2ad   : > { %10907 = vst [vmem:[#allocation28_spill] sm:$0xff] %v8801_v34  ;;  %806 = vxpose.xlu1.b32.start.end [1/1] (short) (narrow) %v8690_v36, 48 }
 0x2af   : > { %v8804_v35 = vpop.trf.xlu0 }
 0x2b0   : > { %10908 = vst [vmem:[#allocation29_spill] sm:$0xff] %v8804_v35  ;;  %v8806_v37 = vpop.trf.xlu1 }
 0x2b1   : > { %10909 = vst [vmem:[#allocation30_spill] sm:$0xff] %v8806_v37 }
 0x2b3   : > { %v8808_v38 = vpop.trf.xlu0 }
 0x2b4   : > { %10910 = vst [vmem:[#allocation31_spill] sm:$0xff] %v8808_v38  ;;  %v8810_v39 = vpop.trf.xlu1 }
 0x2b5   : > { %10911 = vst [vmem:[#allocation32_spill] sm:$0xff] %v8810_v39 }
 0x2b7   : > { %v8812_v54 = vpop.trf.xlu0 }
 0x2b8   : > { %v8814_v55 = vpop.trf.xlu1 }
 0x2b9   : > { %10912 = vst [vmem:[#allocation33_spill] sm:$0xff] %v8814_v55 }
 0x2bb   : > { %v8816_v0 = vpop.trf.xlu0 }
 0x2bc   : > { %v8818_v5 = vpop.trf.xlu1 }
 0x2bd   : > { %10913 = vst [vmem:[#allocation34_spill] sm:$0xff] %v8818_v5 }
 0x2bf   : > { %v8822_v18 = vpop.trf.xlu0 }
 0x2c0   : > { %10914 = vst [vmem:[#allocation35_spill] sm:$0xff] %v8822_v18  ;;  %v664_v21 = vpop.trf.xlu1 }
 0x2c1   : > { %1926 = vxpose.xlu0.b32.start.end [1/1] (short) (narrow) %v507_v7, 48  ;;  %7331 = vmatprep.mubr.msk.f32.mxu0 %vm2601_vm2, %v664_v21 }
 0x2c2   : > { %838 = vxpose.xlu1.b32.start.end [1/1] (short) (narrow) %v490_v20, 48 }
 0x2c3   : > { %v8827_v22 = vpop.trf.xlu0 }
 0x2c4   : > { %10915 = vst [vmem:[#allocation36_spill] sm:$0xff] %v8827_v22  ;;  %v665_v31 = vpop.trf.xlu1 }
 0x2c5   : > { %7332 = vmatmul.mubr.msk.f32.gmra.mrb[18].mxu0 %vm2601_vm2, %v665_v31 }
 0x2c7   : > { %v8830_v33 = vpop.trf.xlu0 }
 0x2c8   : > { %10916 = vst [vmem:[#allocation37_spill] sm:$0xff] %v8830_v33  ;;  %v8832_v5 = vpop.trf.xlu1 }
 0x2c9   : > { %10917 = vst [vmem:[#allocation38_spill] sm:$0xff] %v8832_v5 }
 0x2cb   : > { %v8834_v41 = vpop.trf.xlu0 }
 0x2cc   : > { %10918 = vst [vmem:[#allocation39_spill] sm:$0xff] %v8834_v41  ;;  %v8836_v39 = vpop.trf.xlu1 }
 0x2cd   : > { %10919 = vst [vmem:[#allocation40_spill] sm:$0xff] %v8836_v39 }
 0x2cf   : > { %v8838_v55 = vpop.trf.xlu0 }
 0x2d0   : > { %10920 = vst [vmem:[#allocation41_spill] sm:$0xff] %v8838_v55  ;;  %v8840_v36 = vpop.trf.xlu1 }
 0x2d3   : > { %v8842_v7 = vpop.trf.xlu0 }
 0x2d4   : > { %10921 = vst [vmem:[#allocation42_spill] sm:$0xff] %v8842_v7  ;;  %v8844_v20 = vpop.trf.xlu1 }
 0x2d6   : > { %1958 = vxpose.xlu0.b32.start.end [1/1] (short) (narrow) %v8700_v43, 48 }
 0x2d7   : > { %v696_v21 = vpop.trf.xlu0  ;;  %870 = vxpose.xlu1.b32.start.end [1/1] (short) (narrow) %v8694_v40, 48 }
 0x2d8   : > { %7334 = vmatprep.mubr.msk.f32.mxu0 %vm2601_vm2, %v696_v21  ;;  %v8849_v31 = vpop.trf.xlu1  ;;  %v508_v21 = vcombine.high %v8700_v43, %v8700_v43 }
 0x2d9   : > { %10922 = vst [vmem:[#allocation43_spill] sm:$0xff] %v8849_v31 }
 0x2db   : > { %v697_v41 = vpop.trf.xlu0 }
 0x2dc   : > { %7335 = vmatmul.mubr.msk.f32.gmra.mrb[20].mxu0 %vm2601_vm2, %v697_v41  ;;  %v8852_v33 = vpop.trf.xlu1  ;;  %v491_v41 = vcombine.high %v8694_v40, %v8694_v40 }
 0x2dd   : > { %10923 = vst [vmem:[#allocation44_spill] sm:$0xff] %v8852_v33 }
 0x2df   : > { %v8854_v55 = vpop.trf.xlu0 }
 0x2e0   : > { %10924 = vst [vmem:[#allocation45_spill] sm:$0xff] %v8854_v55  ;;  %v8856_v37 = vpop.trf.xlu1 }
 0x2e1   : > { %10925 = vst [vmem:[#allocation46_spill] sm:$0xff] %v8856_v37 }
 0x2e3   : > { %v8858_v7 = vpop.trf.xlu0 }
 0x2e4   : > { %10926 = vst [vmem:[#allocation47_spill] sm:$0xff] %v8858_v7  ;;  %v8860_v29 = vpop.trf.xlu1 }
 0x2e5   : > { %10927 = vst [vmem:[#allocation48_spill] sm:$0xff] %v8860_v29 }
 0x2e7   : > { %v8862_v25 = vpop.trf.xlu0 }
 0x2e8   : > { %v8864_v27 = vpop.trf.xlu1 }
 0x2e9   : > { %10928 = vst [vmem:[#allocation49_spill] sm:$0xff] %v8864_v27 }
 0x2eb   : > { %v8870_v23 = vpop.trf.xlu0  ;;  %1990 = vxpose.xlu0.b32.start.end [1/1] (short) (narrow) %v508_v21, 48 }
 0x2ec   : > { %902 = vxpose.xlu1.b32.start.end [1/1] (short) (narrow) %v491_v41, 48  ;;  %v8872_v16 = vpop.trf.xlu1 }
 0x2ed   : > { %10929 = vst [vmem:[#allocation50_spill] sm:$0xff] %v8872_v16 }
 0x2ef   : > { %v8874_v37 = vpop.trf.xlu0 }
 0x2f0   : > { %10930 = vst [vmem:[#allocation51_spill] sm:$0xff] %v8874_v37  ;;  %v728_v12 = vpop.trf.xlu1 }
 0x2f1   : > { %7337 = vmatprep.mubr.msk.f32.mxu0 %vm2601_vm2, %v728_v12 }
 0x2f3   : > { %v8877_v29 = vpop.trf.xlu0 }
 0x2f4   : > { %10931 = vst [vmem:[#allocation52_spill] sm:$0xff] %v8877_v29  ;;  %v729_v27 = vpop.trf.xlu1 }
 0x2f5   : > { %7338 = vmatmul.mubr.msk.f32.gmra.mrb[22].mxu0 %vm2601_vm2, %v729_v27 }
 0x2f7   : > { %v8880_v43 = vpop.trf.xlu0 }
 0x2f8   : > { %10932 = vst [vmem:[#allocation53_spill] sm:$0xff] %v8880_v43  ;;  %v8882_v14 = vpop.trf.xlu1 }
 0x2f9   : > { %10933 = vst [vmem:[#allocation54_spill] sm:$0xff] %v8882_v14 }
 0x2fb   : > { %v8884_v40 = vpop.trf.xlu0 }
 0x2fc   : > { %10934 = vst [vmem:[#allocation55_spill] sm:$0xff] %v8884_v40  ;;  %v8886_v21 = vpop.trf.xlu1 }
 0x2fd   : > { %10935 = vst [vmem:[#allocation56_spill] sm:$0xff] %v8886_v21 }
 0x2ff   : > { %v8888_v41 = vpop.trf.xlu0 }
 0x300   : > { %2022 = vxpose.xlu0.b32.start.end [1/1] (short) (narrow) %v8704_v45, 48  ;;  %v8891_v16 = vpop.trf.xlu1 }
 0x301   : > { %10936 = vst [vmem:[#allocation57_spill] sm:$0xff] %v8891_v16  ;;  %1446 = vxpose.xlu1.b32.start.end [1/1] (short) (narrow) %v8730_v60, 48  ;;  %v500_v16 = vcombine.high %v8730_v60, %v8730_v60 }
 0x303   : > { %v8894_v12 = vpop.trf.xlu0 }
 0x304   : > { %v8896_v10 = vpop.trf.xlu1 }
 0x305   : > { %10937 = vst [vmem:[#allocation58_spill] sm:$0xff] %v8896_v10 }
 0x307   : > { %v8898_v27 = vpop.trf.xlu0 }
 0x308   : > { %10938 = vst [vmem:[#allocation59_spill] sm:$0xff] %v8898_v27  ;;  %v760_v43 = vpop.trf.xlu1 }
 0x309   : > { %7340 = vmatprep.mubr.msk.f32.mxu0 %vm2601_vm2, %v760_v43 }
 0x30b   : > { %v8901_v40 = vpop.trf.xlu0 }
 0x30c   : > { %10939 = vst [vmem:[#allocation60_spill] sm:$0xff] %v8901_v40  ;;  %v761_v3 = vpop.trf.xlu1 }
 0x30d   : > { %7341 = vmatmul.mubr.msk.f32.gmra.mrb[24].mxu0 %vm2601_vm2, %v761_v3 }
 0x30f   : > { %v8904_v1 = vpop.trf.xlu0 }
 0x310   : > { %10940 = vst [vmem:[#allocation61_spill] sm:$0xff] %v8904_v1  ;;  %v8906_v21 = vpop.trf.xlu1 }
 0x311   : > { %10941 = vst [vmem:[#allocation62_spill] sm:$0xff] %v8906_v21 }
 0x313   : > { %v8910_v14 = vpop.trf.xlu0 }
 0x314   : > { %10942 = vst [vmem:[#allocation63_spill] sm:$0xff] %v8910_v14  ;;  %v8912_v10 = vpop.trf.xlu1 }
 0x315   : > { %10943 = vst [vmem:[#allocation64_spill] sm:$0xff] %v8912_v10  ;;  %1478 = vxpose.xlu0.b32.start.end [1/1] (short) (narrow) %v500_v16, 48  ;;  %v501_v16 = vcombine.high %v8734_v62, %v8734_v62 }
 0x316   : > { %1510 = vxpose.xlu1.b32.start.end [1/1] (short) (narrow) %v8734_v62, 48 }
 0x317   : > { %v8915_v43 = vpop.trf.xlu0 }
 0x318   : > { %v8917_v40 = vpop.trf.xlu1 }
 0x31b   : > { %v8919_v27 = vpop.trf.xlu0 }
 0x31c   : > { %v8921_v3 = vpop.trf.xlu1 }
 0x31f   : > { %v8923_v1 = vpop.trf.xlu0 }
 0x320   : > { %10944 = vst [vmem:[#allocation65_spill] sm:$0xff] %v8923_v1  ;;  %v8925_v21 = vpop.trf.xlu1  ;;  %v2598_v1 = vld [vmem:[#allocation7] sm:$0xf] }
 0x321   : > { %10945 = vst [vmem:[#allocation66_spill] sm:$0xff] %v8925_v21  ;;  %7906 = vmatprep.subr.msk.mxu1 %vm2986_vm1, %v2598_v1  ;;  %7514 = vmatprep.subr.msk.mxu0 %vm2986_vm1, %v2598_v1  ;;  %v509_v21 = vcombine.high %v8704_v45, %v8704_v45 }
 0x322   : > { %7907 = vmatpush3.msk.msra.mxu1 %vm2986_vm1, %v2598_v1  ;;  %7515 = vmatpush3.msk.msra.mxu0 %vm2986_vm1, %v2598_v1  ;;  %v492_v1 = vcombine.high %v8698_v42, %v8698_v42 }
 0x323   : > { %v8927_v60 = vpop.trf.xlu0 }
 0x324   : > { %10946 = vst [vmem:[#allocation67_spill] sm:$0xff] %v8927_v60  ;;  %v8929_v14 = vpop.trf.xlu1 }
 0x325   : > { %10947 = vst [vmem:[#allocation68_spill] sm:$0xff] %v8929_v14 }
 0x327   : > { %v8931_v10 = vpop.trf.xlu0 }
 0x328   : > { %10948 = vst [vmem:[#allocation69_spill] sm:$0xff] %v8931_v10  ;;  %v8935_v29 = vpop.trf.xlu1 }
 0x329   : > { %10949 = vst [vmem:[#allocation70_spill] sm:$0xff] %v8935_v29 }
 0x32a   : > { %1542 = vxpose.xlu0.b32.start.end [1/1] (short) (narrow) %v501_v16, 48 }
 0x32b   : > { %v8937_v7 = vpop.trf.xlu0  ;;  %934 = vxpose.xlu1.b32.start.end [1/1] (short) (narrow) %v8698_v42, 48 }
 0x32c   : > { %10950 = vst [vmem:[#allocation71_spill] sm:$0xff] %v8937_v7  ;;  %v8940_v37 = vpop.trf.xlu1 }
 0x32d   : > { %10951 = vst [vmem:[#allocation72_spill] sm:$0xff] %v8940_v37 }
 0x32f   : > { %v8946_v10 = vpop.trf.xlu0 }
 0x330   : > { %v8948_v62 = vpop.trf.xlu1 }
 0x331   : > { %10952 = vst [vmem:[#allocation73_spill] sm:$0xff] %v8948_v62 }
 0x333   : > { %v8950_v16 = vpop.trf.xlu0 }
 0x334   : > { %v8952_v7 = vpop.trf.xlu1 }
 0x335   : > { %10953 = vst [vmem:[#allocation74_spill] sm:$0xff] %v8952_v7 }
 0x337   : > { %v8954_v29 = vpop.trf.xlu0 }
 0x338   : > { %10954 = vst [vmem:[#allocation75_spill] sm:$0xff] %v8954_v29  ;;  %v792_v37 = vpop.trf.xlu1 }
 0x339   : > { %7343 = vmatprep.mubr.msk.f32.mxu0 %vm2601_vm2, %v792_v37 }
 0x33b   : > { %v8957_v60 = vpop.trf.xlu0 }
 0x33c   : > { %10955 = vst [vmem:[#allocation76_spill] sm:$0xff] %v8957_v60  ;;  %v793_v14 = vpop.trf.xlu1 }
 0x33d   : > { %7344 = vmatmul.mubr.msk.f32.gmra.mrb[26].mxu0 %vm2601_vm2, %v793_v14 }
 0x33f   : > { %v8964_v62 = vpop.trf.xlu0  ;;  %2054 = vxpose.xlu0.b32.start.end [1/1] (short) (narrow) %v509_v21, 48 }
 0x340   : > { %10956 = vst [vmem:[#allocation77_spill] sm:$0xff] %v8964_v62  ;;  %v8966_v7 = vpop.trf.xlu1  ;;  %966 = vxpose.xlu1.b32.start.end [1/1] (short) (narrow) %v492_v1, 48 }
 0x341   : > { %10957 = vst [vmem:[#allocation78_spill] sm:$0xff] %v8966_v7 }
 0x343   : > { %v8968_v29 = vpop.trf.xlu0 }
 0x344   : > { %10958 = vst [vmem:[#allocation79_spill] sm:$0xff] %v8968_v29  ;;  %v8970_v37 = vpop.trf.xlu1 }
 0x345   : > { %10959 = vst [vmem:[#allocation80_spill] sm:$0xff] %v8970_v37 }
 0x347   : > { %v8972_v60 = vpop.trf.xlu0 }
 0x348   : > { %v8974_v55 = vpop.trf.xlu1 }
 0x349   : > { %10960 = vst [vmem:[#allocation81_spill] sm:$0xff] %v8974_v55 }
 0x34b   : > { %v8976_v45 = vpop.trf.xlu0 }
 0x34c   : > { %v8978_v14 = vpop.trf.xlu1 }
 0x34d   : > { %10961 = vst [vmem:[#allocation82_spill] sm:$0xff] %v8978_v14 }
 0x34f   : > { %v8980_v33 = vpop.trf.xlu0 }
 0x350   : > { %10962 = vst [vmem:[#allocation83_spill] sm:$0xff] %v8980_v33  ;;  %v824_v42 = vpop.trf.xlu1 }
 0x351   : > { %7346 = vmatprep.mubr.msk.f32.mxu0 %vm2601_vm2, %v824_v42 }
 0x353   : > { %v8983_v21 = vpop.trf.xlu0 }
 0x354   : > { %10963 = vst [vmem:[#allocation84_spill] sm:$0xff] %v8983_v21  ;;  %v825_v1 = vpop.trf.xlu1 }
 0x355   : > { %7347 = vmatmul.mubr.msk.f32.gmra.mrb[28].mxu0 %vm2601_vm2, %v825_v1 }
 0x357   : > { %v8986_v29 = vpop.trf.xlu0  ;;  %2086 = vxpose.xlu0.b32.start.end [1/1] (short) (narrow) %v8708_v47, 48 }
 0x358   : > { %10964 = vst [vmem:[#allocation85_spill] sm:$0xff] %v8986_v29  ;;  %v8989_v62 = vpop.trf.xlu1  ;;  %998 = vxpose.xlu1.b32.start.end [1/1] (short) (narrow) %v8702_v44, 48 }
 0x359   : > { %10965 = vst [vmem:[#allocation86_spill] sm:$0xff] %v8989_v62 }
 0x35b   : > { %v8992_v55 = vpop.trf.xlu0 }
 0x35c   : > { %10966 = vst [vmem:[#allocation87_spill] sm:$0xff] %v8992_v55  ;;  %v8994_v14 = vpop.trf.xlu1  ;;  %v510_v55 = vcombine.high %v8708_v47, %v8708_v47 }
 0x35d   : > { %10967 = vst [vmem:[#allocation88_spill] sm:$0xff] %v8994_v14 }
 0x35f   : > { %v8996_v33 = vpop.trf.xlu0 }
 0x360   : > { %v8998_v42 = vpop.trf.xlu1 }
 0x361   : > { %10968 = vst [vmem:[#allocation89_spill] sm:$0xff] %v8998_v42  ;;  %v493_v42 = vcombine.high %v8702_v44, %v8702_v44 }
 0x363   : > { %v9000_v21 = vpop.trf.xlu0 }
 0x364   : > { %v9002_v37 = vpop.trf.xlu1 }
 0x365   : > { %10969 = vst [vmem:[#allocation90_spill] sm:$0xff] %v9002_v37 }
 0x367   : > { %v9004_v1 = vpop.trf.xlu0 }
 0x368   : > { %10970 = vst [vmem:[#allocation91_spill] sm:$0xff] %v9004_v1  ;;  %v856_v29 = vpop.trf.xlu1 }
 0x369   : > { %7349 = vmatprep.mubr.msk.f32.mxu0 %vm2601_vm2, %v856_v29 }
 0x36b   : > { %v9007_v62 = vpop.trf.xlu0 }
 0x36c   : > { %10971 = vst [vmem:[#allocation92_spill] sm:$0xff] %v9007_v62  ;;  %v857_v7 = vpop.trf.xlu1 }
 0x36d   : > { %7350 = vmatmul.mubr.msk.f32.gmra.mrb[30].mxu0 %vm2601_vm2, %v857_v7 }
 0x36f   : > { %v9014_v14 = vpop.trf.xlu0  ;;  %2118 = vxpose.xlu0.b32.start.end [1/1] (short) (narrow) %v510_v55, 48 }
 0x370   : > { %10972 = vst [vmem:[#allocation93_spill] sm:$0xff] %v9014_v14  ;;  %v9016_v37 = vpop.trf.xlu1  ;;  %1030 = vxpose.xlu1.b32.start.end [1/1] (short) (narrow) %v493_v42, 48 }
 0x371   : > { %10973 = vst [vmem:[#allocation94_spill] sm:$0xff] %v9016_v37 }
 0x373   : > { %v9018_v1 = vpop.trf.xlu0 }
 0x374   : > { %10974 = vst [vmem:[#allocation95_spill] sm:$0xff] %v9018_v1  ;;  %v9020_v29 = vpop.trf.xlu1 }
 0x375   : > { %10975 = vst [vmem:[#allocation96_spill] sm:$0xff] %v9020_v29 }
 0x377   : > { %v9022_v62 = vpop.trf.xlu0 }
 0x378   : > { %v9024_v39 = vpop.trf.xlu1 }
 0x379   : > { %10976 = vst [vmem:[#allocation97_spill] sm:$0xff] %v9024_v39 }
 0x37b   : > { %v9026_v47 = vpop.trf.xlu0 }
 0x37c   : > { %v9028_v7 = vpop.trf.xlu1 }
 0x37d   : > { %10977 = vst [vmem:[#allocation98_spill] sm:$0xff] %v9028_v7 }
 0x37f   : > { %v9030_v31 = vpop.trf.xlu0 }
 0x380   : > { %10978 = vst [vmem:[#allocation99_spill] sm:$0xff] %v9030_v31  ;;  %v888_v44 = vpop.trf.xlu1 }
 0x381   : > { %7352 = vmatprep.mubr.msk.f32.mxu0 %vm2601_vm2, %v888_v44 }
 0x383   : > { %v9033_v55 = vpop.trf.xlu0 }
 0x384   : > { %10979 = vst [vmem:[#allocation100_spill] sm:$0xff] %v9033_v55  ;;  %v889_v42 = vpop.trf.xlu1 }
 0x385   : > { %7353 = vmatmul.mubr.msk.f32.gmra.mrb[32].mxu0 %vm2601_vm2, %v889_v42 }
 0x387   : > { %v9036_v1 = vpop.trf.xlu0  ;;  %2150 = vxpose.xlu0.b32.start.end [1/1] (short) (narrow) %v8712_v49, 48 }
 0x388   : > { %10980 = vst [vmem:[#allocation101_spill] sm:$0xff] %v9036_v1  ;;  %v9039_v14 = vpop.trf.xlu1  ;;  %1062 = vxpose.xlu1.b32.start.end [1/1] (short) (narrow) %v8706_v46, 48 }
 0x389   : > { %10981 = vst [vmem:[#allocation102_spill] sm:$0xff] %v9039_v14 }
 0x38b   : > { %v9042_v39 = vpop.trf.xlu0 }
 0x38c   : > { %10982 = vst [vmem:[#allocation103_spill] sm:$0xff] %v9042_v39  ;;  %v9044_v7 = vpop.trf.xlu1  ;;  %v511_v39 = vcombine.high %v8712_v49, %v8712_v49 }
 0x38d   : > { %10983 = vst [vmem:[#allocation104_spill] sm:$0xff] %v9044_v7 }
 0x38f   : > { %v9046_v31 = vpop.trf.xlu0 }
 0x390   : > { %v9048_v44 = vpop.trf.xlu1 }
 0x391   : > { %10984 = vst [vmem:[#allocation105_spill] sm:$0xff] %v9048_v44  ;;  %v494_v44 = vcombine.high %v8706_v46, %v8706_v46 }
 0x393   : > { %v9050_v55 = vpop.trf.xlu0 }
 0x394   : > { %v9052_v29 = vpop.trf.xlu1 }
 0x395   : > { %10985 = vst [vmem:[#allocation106_spill] sm:$0xff] %v9052_v29 }
 0x397   : > { %v9054_v42 = vpop.trf.xlu0 }
 0x398   : > { %10986 = vst [vmem:[#allocation107_spill] sm:$0xff] %v9054_v42  ;;  %v920_v1 = vpop.trf.xlu1 }
 0x399   : > { %7355 = vmatprep.mubr.msk.f32.mxu0 %vm2601_vm2, %v920_v1 }
 0x39b   : > { %v9057_v14 = vpop.trf.xlu0 }
 0x39c   : > { %10987 = vst [vmem:[#allocation108_spill] sm:$0xff] %v9057_v14  ;;  %v921_v37 = vpop.trf.xlu1 }
 0x39d   : > { %7356 = vmatmul.mubr.msk.f32.gmra.mrb[34].mxu0 %vm2601_vm2, %v921_v37 }
 0x39f   : > { %v9064_v7 = vpop.trf.xlu0  ;;  %2182 = vxpose.xlu0.b32.start.end [1/1] (short) (narrow) %v511_v39, 48 }
 0x3a0   : > { %10988 = vst [vmem:[#allocation109_spill] sm:$0xff] %v9064_v7  ;;  %v9066_v29 = vpop.trf.xlu1  ;;  %1094 = vxpose.xlu1.b32.start.end [1/1] (short) (narrow) %v494_v44, 48 }
 0x3a1   : > { %10989 = vst [vmem:[#allocation110_spill] sm:$0xff] %v9066_v29 }
 0x3a3   : > { %v9068_v42 = vpop.trf.xlu0 }
 0x3a4   : > { %10990 = vst [vmem:[#allocation111_spill] sm:$0xff] %v9068_v42  ;;  %v9070_v1 = vpop.trf.xlu1 }
 0x3a5   : > { %10991 = vst [vmem:[#allocation112_spill] sm:$0xff] %v9070_v1 }
 0x3a7   : > { %v9072_v14 = vpop.trf.xlu0 }
 0x3a8   : > { %v1462_v5 = vpop.trf.xlu1 }
 0x3a9   : > { %7600 = vmatprep.mubr.msk.f32.mxu1 %vm2601_vm2, %v1462_v5 }
 0x3ab   : > { %v9075_v49 = vpop.trf.xlu0 }
 0x3ac   : > { %v1463_v37 = vpop.trf.xlu1 }
 0x3ad   : > { %7601 = vmatmul.mubr.msk.f32.vlgmr.msra.gmra.mrb[0].mxu1 %vm2601_vm2, %v1463_v37 }
 0x3af   : > { %v9078_v46 = vpop.trf.xlu0 }
 0x3b0   : > { %10992 = vst [vmem:[#allocation113_spill] sm:$0xff] %v9078_v46  ;;  %v9080_v39 = vpop.trf.xlu1 }
 0x3b3   : > { %v9082_v7 = vpop.trf.xlu0 }
 0x3b4   : > { %10993 = vst [vmem:[#allocation114_spill] sm:$0xff] %v9082_v7  ;;  %v9084_v44 = vpop.trf.xlu1 }
 0x3b7   : > { %v9086_v42 = vpop.trf.xlu0  ;;  %2214 = vxpose.xlu0.b32.start.end [1/1] (short) (narrow) %v8716_v51, 48 }
 0x3b8   : > { %10994 = vst [vmem:[#allocation115_spill] sm:$0xff] %v9086_v42  ;;  %v9089_v1 = vpop.trf.xlu1  ;;  %1126 = vxpose.xlu1.b32.start.end [1/1] (short) (narrow) %v8710_v48, 48 }
 0x3b9   : > { %10995 = vst [vmem:[#allocation116_spill] sm:$0xff] %v9089_v1 }
 0x3bb   : > { %v9092_v5 = vpop.trf.xlu0 }
 0x3bc   : > { %10996 = vst [vmem:[#allocation117_spill] sm:$0xff] %v9092_v5  ;;  %v9094_v29 = vpop.trf.xlu1 }
 0x3bd   : > { %10997 = vst [vmem:[#allocation118_spill] sm:$0xff] %v9094_v29  ;;  %v495_v29 = vcombine.high %v8710_v48, %v8710_v48 }
 0x3bf   : > { %v1494_v37 = vpop.trf.xlu0 }
 0x3c0   : > { %7603 = vmatprep.mubr.msk.f32.mxu1 %vm2601_vm2, %v1494_v37  ;;  %v1526_v46 = vpop.trf.xlu1  ;;  %v512_v37 = vcombine.high %v8716_v51, %v8716_v51 }
 0x3c3   : > { %v1495_v22 = vpop.trf.xlu0 }
 0x3c4   : > { %7604 = vmatmul.mubr.msk.f32.gmra.mrb[2].mxu1 %vm2601_vm2, %v1495_v22  ;;  %v1527_v7 = vpop.trf.xlu1 }
 0x3c5   : > { %7606 = vmatprep.mubr.msk.f32.mxu1 %vm2601_vm2, %v1526_v46 }
 0x3c7   : > { %v9099_v42 = vpop.trf.xlu0 }
 0x3c8   : > { %7607 = vmatmul.mubr.msk.f32.gmra.mrb[4].mxu1 %vm2601_vm2, %v1527_v7  ;;  %v9102_v1 = vpop.trf.xlu1 }
 0x3cb   : > { %v9104_v38 = vpop.trf.xlu0 }
 0x3cc   : > { %v9106_v5 = vpop.trf.xlu1 }
 0x3cf   : > { %v9112_v22 = vpop.trf.xlu0  ;;  %2246 = vxpose.xlu0.b32.start.end [1/1] (short) (narrow) %v512_v37, 48 }
 0x3d0   : > { %10998 = vst [vmem:[#allocation119_spill] sm:$0xff] %v9112_v22  ;;  %v9114_v46 = vpop.trf.xlu1  ;;  %1158 = vxpose.xlu1.b32.start.end [1/1] (short) (narrow) %v495_v29, 48 }
 0x3d1   : > { %10999 = vst [vmem:[#allocation120_spill] sm:$0xff] %v9114_v46 }
 0x3d3   : > { %v9116_v18 = vpop.trf.xlu0 }
 0x3d4   : > { %11000 = vst [vmem:[#allocation121_spill] sm:$0xff] %v9116_v18  ;;  %v9118_v7 = vpop.trf.xlu1 }
 0x3d5   : > { %11001 = vst [vmem:[#allocation122_spill] sm:$0xff] %v9118_v7 }
 0x3d7   : > { %v1558_v35 = vpop.trf.xlu0 }
 0x3d8   : > { %7609 = vmatprep.mubr.msk.f32.mxu1 %vm2601_vm2, %v1558_v35  ;;  %v9121_v34 = vpop.trf.xlu1 }
 0x3d9   : > { %11002 = vst [vmem:[#allocation123_spill] sm:$0xff] %v9121_v34 }
 0x3db   : > { %v1559_v26 = vpop.trf.xlu0 }
 0x3dc   : > { %7610 = vmatmul.mubr.msk.f32.gmra.mrb[6].mxu1 %vm2601_vm2, %v1559_v26  ;;  %v9124_v51 = vpop.trf.xlu1 }
 0x3dd   : > { %11003 = vst [vmem:[#allocation124_spill] sm:$0xff] %v9124_v51  ;;  %7612 = vmatprep.mubr.msk.f32.mxu1 %vm2601_vm2, %v8741_v2 }
 0x3df   : > { %v9128_v48 = vpop.trf.xlu0 }
 0x3e0   : > { %7613 = vmatmul.mubr.msk.f32.gmra.mrb[8].mxu1 %vm2601_vm2, %v8745_v4  ;;  %v952_v29 = vpop.trf.xlu1 }
 0x3e1   : > { %7615 = vmatprep.mubr.msk.f32.mxu1 %vm2601_vm2, %v8762_v13  ;;  %7358 = vmatprep.mubr.msk.f32.mxu0 %vm2601_vm2, %v952_v29 }
 0x3e3   : > { %v9135_v35 = vpop.trf.xlu0 }
 0x3e4   : > { %7616 = vmatmul.mubr.msk.f32.gmra.mrb[10].mxu1 %vm2601_vm2, %v8766_v15  ;;  %v953_v26 = vpop.trf.xlu1 }
 0x3e5   : > { %7618 = vmatprep.mubr.msk.f32.mxu1 %vm2601_vm2, %v8790_v28  ;;  %7359 = vmatmul.mubr.msk.f32.gmra.mrb[36].mxu0 %vm2601_vm2, %v953_v26 }
 0x3e7   : > { %v9142_v2 = vpop.trf.xlu0  ;;  %2278 = vxpose.xlu0.b32.start.end [1/1] (short) (narrow) %v8720_v53, 48 }
 0x3e8   : > { %11004 = vst [vmem:[#allocation125_spill] sm:$0xff] %v9142_v2  ;;  %7619 = vmatmul.mubr.msk.f32.gmra.mrb[12].mxu1 %vm2601_vm2, %v8794_v30  ;;  %v9147_v4 = vpop.trf.xlu1  ;;  %1190 = vxpose.xlu1.b32.start.end [1/1] (short) (narrow) %v8714_v50, 48 }
 0x3e9   : > { %7621 = vmatprep.mubr.msk.f32.mxu1 %vm2601_vm2, %v8812_v54 }
 0x3eb   : > { %v9152_v13 = vpop.trf.xlu0 }
 0x3ec   : > { %11005 = vst [vmem:[#allocation126_spill] sm:$0xff] %v9152_v13  ;;  %7622 = vmatmul.mubr.msk.f32.gmra.mrb[14].mxu1 %vm2601_vm2, %v8816_v0  ;;  %v9156_v15 = vpop.trf.xlu1 }
 0x3ed   : > { %7624 = vmatprep.mubr.msk.f32.mxu1 %vm2601_vm2, %v8840_v36 }
 0x3ef   : > { %v2070_v28 = vpop.trf.xlu0 }
 0x3f0   : > { %7625 = vmatmul.mubr.msk.f32.gmra.mrb[16].mxu1 %vm2601_vm2, %v8844_v20  ;;  %v9162_v30 = vpop.trf.xlu1  ;;  %v513_v20 = vcombine.high %v8720_v53, %v8720_v53 }
 0x3f1   : > { %11006 = vst [vmem:[#allocation127_spill] sm:$0xff] %v9162_v30  ;;  %7627 = vmatprep.mubr.msk.f32.mxu1 %vm2601_vm2, %v8862_v25 }
 0x3f3   : > { %v2071_v54 = vpop.trf.xlu0 }
 0x3f4   : > { %7628 = vmatmul.mubr.msk.f32.gmra.mrb[18].mxu1 %vm2601_vm2, %v8870_v23  ;;  %v9168_v37 = vpop.trf.xlu1 }
 0x3f5   : > { %11007 = vst [vmem:[#allocation128_spill] sm:$0xff] %v9168_v37  ;;  %7630 = vmatprep.mubr.msk.f32.mxu1 %vm2601_vm2, %v8917_v40  ;;  %v496_v40 = vcombine.high %v8714_v50, %v8714_v50 }
 0x3f7   : > { %v9172_v0 = vpop.trf.xlu0 }
 0x3f8   : > { %7631 = vmatmul.mubr.msk.f32.gmra.mrb[20].mxu1 %vm2601_vm2, %v8921_v3  ;;  %v984_v36 = vpop.trf.xlu1 }
 0x3f9   : > { %7633 = vmatprep.mubr.msk.f32.mxu1 %vm2601_vm2, %v8888_v41  ;;  %7361 = vmatprep.mubr.msk.f32.mxu0 %vm2601_vm2, %v984_v36 }
 0x3fb   : > { %v9179_v25 = vpop.trf.xlu0 }
 0x3fc   : > { %7634 = vmatmul.mubr.msk.f32.gmra.mrb[22].mxu1 %vm2601_vm2, %v8894_v12  ;;  %v985_v23 = vpop.trf.xlu1 }
 0x3fd   : > { %7636 = vmatprep.mubr.msk.f32.mxu1 %vm2601_vm2, %v8915_v43  ;;  %7362 = vmatmul.mubr.msk.f32.gmra.mrb[38].mxu0 %vm2601_vm2, %v985_v23  ;;  %v514_v23 = vcombine.high %v8724_v57, %v8724_v57 }
 0x3ff   : > { %v9190_v41 = vpop.trf.xlu0  ;;  %2310 = vxpose.xlu0.b32.start.end [1/1] (short) (narrow) %v513_v20, 48  ;;  %v497_v20 = vcombine.high %v8718_v52, %v8718_v52 }
 0x400   : > { %11008 = vst [vmem:[#allocation129_spill] sm:$0xff] %v9190_v41  ;;  %7637 = vmatmul.mubr.msk.f32.gmra.mrb[24].mxu1 %vm2601_vm2, %v8919_v27  ;;  %v9194_v3 = vpop.trf.xlu1  ;;  %1222 = vxpose.xlu1.b32.start.end [1/1] (short) (narrow) %v496_v40, 48 }
 0x401   : > { %7639 = vmatprep.mubr.msk.f32.mxu1 %vm2601_vm2, %v8946_v10 }
 0x403   : > { %v9198_v53 = vpop.trf.xlu0 }
 0x404   : > { %11009 = vst [vmem:[#allocation130_spill] sm:$0xff] %v9198_v53  ;;  %7640 = vmatmul.mubr.msk.f32.gmra.mrb[26].mxu1 %vm2601_vm2, %v8950_v16  ;;  %v9202_v12 = vpop.trf.xlu1 }
 0x405   : > { %7642 = vmatprep.mubr.msk.f32.mxu1 %vm2601_vm2, %v8972_v60 }
 0x407   : > { %v2102_v50 = vpop.trf.xlu0 }
 0x408   : > { %7643 = vmatmul.mubr.msk.f32.gmra.mrb[28].mxu1 %vm2601_vm2, %v8976_v45  ;;  %v9208_v27 = vpop.trf.xlu1 }
 0x409   : > { %11010 = vst [vmem:[#allocation131_spill] sm:$0xff] %v9208_v27  ;;  %7645 = vmatprep.mubr.msk.f32.mxu1 %vm2601_vm2, %v8996_v33  ;;  %v516_v27 = vcombine.high %v8732_v61, %v8732_v61 }
 0x40b   : > { %v2103_v10 = vpop.trf.xlu0 }
 0x40c   : > { %7646 = vmatmul.mubr.msk.f32.gmra.mrb[30].mxu1 %vm2601_vm2, %v9000_v21  ;;  %v9214_v43 = vpop.trf.xlu1 }
 0x40d   : > { %11011 = vst [vmem:[#allocation132_spill] sm:$0xff] %v9214_v43  ;;  %7648 = vmatprep.mubr.msk.f32.mxu1 %vm2601_vm2, %v9022_v62 }
 0x40f   : > { %v9218_v16 = vpop.trf.xlu0 }
 0x410   : > { %7649 = vmatmul.mubr.msk.f32.gmra.mrb[32].mxu1 %vm2601_vm2, %v9026_v47  ;;  %v1016_v60 = vpop.trf.xlu1 }
 0x411   : > { %7651 = vmatprep.mubr.msk.f32.mxu1 %vm2601_vm2, %v9046_v31  ;;  %7364 = vmatprep.mubr.msk.f32.mxu0 %vm2601_vm2, %v1016_v60 }
 0x413   : > { %v9225_v33 = vpop.trf.xlu0 }
 0x414   : > { %7652 = vmatmul.mubr.msk.f32.gmra.mrb[34].mxu1 %vm2601_vm2, %v9050_v55  ;;  %v1017_v45 = vpop.trf.xlu1 }
 0x415   : > { %7654 = vmatprep.mubr.msk.f32.mxu1 %vm2601_vm2, %v9072_v14  ;;  %7365 = vmatmul.mubr.msk.f32.gmra.mrb[40].mxu0 %vm2601_vm2, %v1017_v45 }
 0x417   : > { %v9232_v62 = vpop.trf.xlu0  ;;  %2342 = vxpose.xlu0.b32.start.end [1/1] (short) (narrow) %v8724_v57, 48 }
 0x418   : > { %11012 = vst [vmem:[#allocation133_spill] sm:$0xff] %v9232_v62  ;;  %7655 = vmatmul.mubr.msk.f32.gmra.mrb[36].mxu1 %vm2601_vm2, %v9075_v49  ;;  %v9237_v31 = vpop.trf.xlu1  ;;  %1254 = vxpose.xlu1.b32.start.end [1/1] (short) (narrow) %v8718_v52, 48 }
 0x419   : > { %7657 = vmatprep.mubr.msk.f32.mxu1 %vm2601_vm2, %v2070_v28 }
 0x41b   : > { %v9241_v21 = vpop.trf.xlu0 }
 0x41c   : > { %11013 = vst [vmem:[#allocation134_spill] sm:$0xff] %v9241_v21  ;;  %7658 = vmatmul.mubr.msk.f32.gmra.mrb[38].mxu1 %vm2601_vm2, %v2071_v54  ;;  %v9244_v14 = vpop.trf.xlu1  ;;  %v4788_v21 = vld [vmem:[#allocation7 + $0x8] sm:$0xf] }
 0x41d   : > { %7660 = vmatprep.mubr.msk.f32.mxu1 %vm2601_vm2, %v2102_v50  ;;  %7708 = vmatprep.subr.msk.mxu1 %vm2986_vm1, %v4788_v21 }
 0x41e   : > { %7709 = vmatpush3.msk.msra.mxu1 %vm2986_vm1, %v4788_v21  ;;  %v498_v21 = vcombine.high %v8722_v56, %v8722_v56 }
 0x41f   : > { %v2134_v47 = vpop.trf.xlu0 }
 0x420   : > { %7661 = vmatmul.mubr.msk.f32.gmra.mrb[40].mxu1 %vm2601_vm2, %v2103_v10  ;;  %v9248_v55 = vpop.trf.xlu1 }
 0x421   : > { %11014 = vst [vmem:[#allocation135_spill] sm:$0xff] %v9248_v55  ;;  %7663 = vmatprep.mubr.msk.f32.mxu1 %vm2601_vm2, %v2134_v47 }
 0x423   : > { %v2135_v49 = vpop.trf.xlu0 }
 0x424   : > { %7664 = vmatmul.mubr.msk.f32.gmra.mrb[42].mxu1 %vm2601_vm2, %v2135_v49  ;;  %v9252_v29 = vpop.trf.xlu1 }
 0x425   : > { %11015 = vst [vmem:[#allocation136_spill] sm:$0xff] %v9252_v29 }
 0x427   : > { %v9254_v26 = vpop.trf.xlu0 }
 0x428   : > { %v1048_v28 = vpop.trf.xlu1 }
 0x429   : > { %7367 = vmatprep.mubr.msk.f32.mxu0 %vm2601_vm2, %v1048_v28 }
 0x42b   : > { %v9257_v54 = vpop.trf.xlu0 }
 0x42c   : > { %v1049_v36 = vpop.trf.xlu1 }
 0x42d   : > { %7368 = vmatmul.mubr.msk.f32.gmra.mrb[42].mxu0 %vm2601_vm2, %v1049_v36 }
 0x42f   : > { %v9264_v40 = vpop.trf.xlu0  ;;  %2374 = vxpose.xlu0.b32.start.end [1/1] (short) (narrow) %v514_v23, 48 }
 0x430   : > { %11016 = vst [vmem:[#allocation137_spill] sm:$0xff] %v9264_v40  ;;  %v9266_v50 = vpop.trf.xlu1  ;;  %1286 = vxpose.xlu1.b32.start.end [1/1] (short) (narrow) %v497_v20, 48 }
 0x433   : > { %v9268_v10 = vpop.trf.xlu0 }
 0x434   : > { %11017 = vst [vmem:[#allocation138_spill] sm:$0xff] %v9268_v10  ;;  %v9270_v60 = vpop.trf.xlu1 }
 0x437   : > { %v2166_v45 = vpop.trf.xlu0 }
 0x438   : > { %7666 = vmatprep.mubr.msk.f32.mxu1 %vm2601_vm2, %v2166_v45  ;;  %v9273_v47 = vpop.trf.xlu1 }
 0x439   : > { %11018 = vst [vmem:[#allocation139_spill] sm:$0xff] %v9273_v47 }
 0x43b   : > { %v2167_v57 = vpop.trf.xlu0 }
 0x43c   : > { %7667 = vmatmul.mubr.msk.f32.gmra.mrb[44].mxu1 %vm2601_vm2, %v2167_v57  ;;  %v9276_v49 = vpop.trf.xlu1 }
 0x43d   : > { %11019 = vst [vmem:[#allocation140_spill] sm:$0xff] %v9276_v49 }
 0x43f   : > { %v9278_v52 = vpop.trf.xlu0 }
 0x440   : > { %v1080_v28 = vpop.trf.xlu1 }
 0x441   : > { %7370 = vmatprep.mubr.msk.f32.mxu0 %vm2601_vm2, %v1080_v28 }
 0x443   : > { %v9281_v36 = vpop.trf.xlu0 }
 0x444   : > { %v1081_v23 = vpop.trf.xlu1 }
 0x445   : > { %7371 = vmatmul.mubr.msk.f32.gmra.mrb[44].mxu0 %vm2601_vm2, %v1081_v23 }
 0x447   : > { %v9284_v20 = vpop.trf.xlu0  ;;  %2406 = vxpose.xlu0.b32.start.end [1/1] (short) (narrow) %v8728_v59, 48 }
 0x448   : > { %11020 = vst [vmem:[#allocation141_spill] sm:$0xff] %v9284_v20  ;;  %v9287_v45 = vpop.trf.xlu1  ;;  %1318 = vxpose.xlu1.b32.start.end [1/1] (short) (narrow) %v8722_v56, 48 }
 0x44b   : > { %v9290_v57 = vpop.trf.xlu0 }
 0x44c   : > { %11021 = vst [vmem:[#allocation142_spill] sm:$0xff] %v9290_v57  ;;  %v9292_v10 = vpop.trf.xlu1 }
 0x44f   : > { %v2198_v40 = vpop.trf.xlu0 }
 0x450   : > { %7669 = vmatprep.mubr.msk.f32.mxu1 %vm2601_vm2, %v2198_v40  ;;  %v9295_v28 = vpop.trf.xlu1 }
 0x451   : > { %11022 = vst [vmem:[#allocation143_spill] sm:$0xff] %v9295_v28  ;;  %v515_v28 = vcombine.high %v8728_v59, %v8728_v59 }
 0x453   : > { %v2199_v23 = vpop.trf.xlu0 }
 0x454   : > { %7670 = vmatmul.mubr.msk.f32.gmra.mrb[46].mxu1 %vm2601_vm2, %v2199_v23  ;;  %v9300_v20 = vpop.trf.xlu1 }
 0x455   : > { %11023 = vst [vmem:[#allocation144_spill] sm:$0xff] %v9300_v20 }
 0x457   : > { %v9302_v62 = vpop.trf.xlu0 }
 0x458   : > { %v1112_v57 = vpop.trf.xlu1 }
 0x459   : > { %7373 = vmatprep.mubr.msk.f32.mxu0 %vm2601_vm2, %v1112_v57 }
 0x45b   : > { %v9305_v49 = vpop.trf.xlu0 }
 0x45c   : > { %v1113_v40 = vpop.trf.xlu1 }
 0x45d   : > { %7374 = vmatmul.mubr.msk.f32.gmra.mrb[46].mxu0 %vm2601_vm2, %v1113_v40 }
 0x45f   : > { %v9312_v53 = vpop.trf.xlu0  ;;  %2438 = vxpose.xlu0.b32.start.end [1/1] (short) (narrow) %v515_v28, 48 }
 0x460   : > { %11024 = vst [vmem:[#allocation145_spill] sm:$0xff] %v9312_v53  ;;  %v9314_v23 = vpop.trf.xlu1  ;;  %1350 = vxpose.xlu1.b32.start.end [1/1] (short) (narrow) %v498_v21, 48 }
 0x463   : > { %v9316_v20 = vpop.trf.xlu0 }
 0x464   : > { %11025 = vst [vmem:[#allocation146_spill] sm:$0xff] %v9316_v20  ;;  %v9318_v57 = vpop.trf.xlu1 }
 0x467   : > { %v2230_v47 = vpop.trf.xlu0 }
 0x468   : > { %7672 = vmatprep.mubr.msk.f32.mxu1 %vm2601_vm2, %v2230_v47  ;;  %v9321_v41 = vpop.trf.xlu1 }
 0x469   : > { %11026 = vst [vmem:[#allocation147_spill] sm:$0xff] %v9321_v41 }
 0x46b   : > { %v2231_v59 = vpop.trf.xlu0 }
 0x46c   : > { %7673 = vmatmul.mubr.msk.f32.gmra.mrb[48].mxu1 %vm2601_vm2, %v2231_v59  ;;  %v9324_v40 = vpop.trf.xlu1 }
 0x46d   : > { %11027 = vst [vmem:[#allocation148_spill] sm:$0xff] %v9324_v40 }
 0x46f   : > { %v9326_v56 = vpop.trf.xlu0 }
 0x470   : > { %v1144_v28 = vpop.trf.xlu1 }
 0x471   : > { %7376 = vmatprep.mubr.msk.f32.mxu0 %vm2601_vm2, %v1144_v28 }
 0x473   : > { %v9329_v21 = vpop.trf.xlu0 }
 0x474   : > { %v1145_v20 = vpop.trf.xlu1 }
 0x475   : > { %7377 = vmatmul.mubr.msk.f32.gmra.mrb[48].mxu0 %vm2601_vm2, %v1145_v20 }
 0x477   : > { %v9332_v53 = vpop.trf.xlu0  ;;  %2470 = vxpose.xlu0.b32.start.end [1/1] (short) (narrow) %v8732_v61, 48 }
 0x478   : > { %11028 = vst [vmem:[#allocation149_spill] sm:$0xff] %v9332_v53  ;;  %v9335_v47 = vpop.trf.xlu1  ;;  %1382 = vxpose.xlu1.b32.start.end [1/1] (short) (narrow) %v8726_v58, 48 }
 0x47b   : > { %v9338_v59 = vpop.trf.xlu0 }
 0x47c   : > { %11029 = vst [vmem:[#allocation150_spill] sm:$0xff] %v9338_v59  ;;  %v9340_v40 = vpop.trf.xlu1 }
 0x47f   : > { %v2262_v41 = vpop.trf.xlu0 }
 0x480   : > { %7675 = vmatprep.mubr.msk.f32.mxu1 %vm2601_vm2, %v2262_v41  ;;  %v9343_v28 = vpop.trf.xlu1  ;;  %v499_v41 = vcombine.high %v8726_v58, %v8726_v58 }
 0x481   : > { %11030 = vst [vmem:[#allocation151_spill] sm:$0xff] %v9343_v28 }
 0x483   : > { %v2263_v29 = vpop.trf.xlu0 }
 0x484   : > { %7676 = vmatmul.mubr.msk.f32.gmra.mrb[50].mxu1 %vm2601_vm2, %v2263_v29  ;;  %v9346_v20 = vpop.trf.xlu1 }
 0x485   : > { %11031 = vst [vmem:[#allocation152_spill] sm:$0xff] %v9346_v20 }
 0x487   : > { %v9348_v53 = vpop.trf.xlu0 }
 0x488   : > { %v1176_v55 = vpop.trf.xlu1 }
 0x489   : > { %7379 = vmatprep.mubr.msk.f32.mxu0 %vm2601_vm2, %v1176_v55 }
 0x48b   : > { %v9351_v43 = vpop.trf.xlu0 }
 0x48c   : > { %v1177_v59 = vpop.trf.xlu1 }
 0x48d   : > { %7380 = vmatmul.mubr.msk.f32.gmra.mrb[50].mxu0 %vm2601_vm2, %v1177_v59 }
 0x48f   : > { %v9358_v28 = vpop.trf.xlu0  ;;  %2502 = vxpose.xlu0.b32.start.end [1/1] (short) (narrow) %v516_v27, 48 }
 0x490   : > { %11032 = vst [vmem:[#allocation153_spill] sm:$0xff] %v9358_v28  ;;  %v9360_v29 = vpop.trf.xlu1  ;;  %1414 = vxpose.xlu1.b32.start.end [1/1] (short) (narrow) %v499_v41, 48 }
 0x493   : > { %v9362_v20 = vpop.trf.xlu0 }
 0x494   : > { %11033 = vst [vmem:[#allocation154_spill] sm:$0xff] %v9362_v20  ;;  %v9364_v55 = vpop.trf.xlu1 }
 0x497   : > { %v2294_v37 = vpop.trf.xlu0 }
 0x498   : > { %7678 = vmatprep.mubr.msk.f32.mxu1 %vm2601_vm2, %v2294_v37  ;;  %v9367_v30 = vpop.trf.xlu1  ;;  %v517_v37 = vcombine.high %v8736_v63, %v8736_v63 }
 0x499   : > { %11034 = vst [vmem:[#allocation155_spill] sm:$0xff] %v9367_v30 }
 0x49b   : > { %v2295_v61 = vpop.trf.xlu0 }
 0x49c   : > { %7679 = vmatmul.mubr.msk.f32.gmra.mrb[52].mxu1 %vm2601_vm2, %v2295_v61  ;;  %v9370_v59 = vpop.trf.xlu1 }
 0x49d   : > { %11035 = vst [vmem:[#allocation156_spill] sm:$0xff] %v9370_v59 }
 0x49f   : > { %v9372_v58 = vpop.trf.xlu0 }
 0x4a0   : > { %v1208_v27 = vpop.trf.xlu1 }
 0x4a1   : > { %7382 = vmatprep.mubr.msk.f32.mxu0 %vm2601_vm2, %v1208_v27 }
 0x4a3   : > { %v9375_v41 = vpop.trf.xlu0 }
 0x4a4   : > { %v1209_v20 = vpop.trf.xlu1 }
 0x4a5   : > { %7383 = vmatmul.mubr.msk.f32.gmra.mrb[52].mxu0 %vm2601_vm2, %v1209_v20 }
 0x4a7   : > { %v9380_v28 = vpop.trf.xlu0  ;;  %2534 = vxpose.xlu0.b32.start.end [1/1] (short) (narrow) %v8736_v63, 48 }
 0x4a8   : > { %11036 = vst [vmem:[#allocation157_spill] sm:$0xff] %v9380_v28  ;;  %v9383_v61 = vpop.trf.xlu1  ;;  %2566 = vxpose.xlu1.b32.start.end [1/1] (short) (narrow) %v517_v37, 48 }
 0x4ab   : > { %v9385_v59 = vpop.trf.xlu0 }
 0x4ac   : > { %11037 = vst [vmem:[#allocation158_spill] sm:$0xff] %v9385_v59  ;;  %v9387_v30 = vpop.trf.xlu1 }
 0x4af   : > { %v2326_v27 = vpop.trf.xlu0 }
 0x4b0   : > { %7681 = vmatprep.mubr.msk.f32.mxu1 %vm2601_vm2, %v2326_v27  ;;  %v9390_v51 = vpop.trf.xlu1 }
 0x4b1   : > { %11038 = vst [vmem:[#allocation159_spill] sm:$0xff] %v9390_v51 }
 0x4b3   : > { %v2327_v20 = vpop.trf.xlu0 }
 0x4b4   : > { %7682 = vmatmul.mubr.msk.f32.gmra.mrb[54].mxu1 %vm2601_vm2, %v2327_v20  ;;  %v9393_v34 = vpop.trf.xlu1 }
 0x4b5   : > { %11039 = vst [vmem:[#allocation160_spill] sm:$0xff] %v9393_v34 }
 0x4b7   : > { %v9395_v28 = vpop.trf.xlu0 }
 0x4b8   : > { %v1240_v63 = vpop.trf.xlu1 }
 0x4b9   : > { %7385 = vmatprep.mubr.msk.f32.mxu0 %vm2601_vm2, %v1240_v63 }
 0x4bb   : > { %v9398_v37 = vpop.trf.xlu0 }
 0x4bc   : > { %11040 = vst [vmem:[#allocation161_spill] sm:$0xff] %v9398_v37  ;;  %v1241_v59 = vpop.trf.xlu1 }
 0x4bd   : > { %7386 = vmatmul.mubr.msk.f32.gmra.mrb[54].mxu0 %vm2601_vm2, %v1241_v59 }
 0x4bf   : > { %v9401_v13 = vpop.trf.xlu0 }
 0x4c0   : > { %11041 = vst [vmem:[#allocation162_spill] sm:$0xff] %v9401_v13  ;;  %v9403_v27 = vpop.trf.xlu1 }
 0x4c3   : > { %v9405_v51 = vpop.trf.xlu0 }
 0x4c4   : > { %11042 = vst [vmem:[#allocation163_spill] sm:$0xff] %v9405_v51  ;;  %v9407_v2 = vpop.trf.xlu1 }
 0x4c7   : > { %v2358_v20 = vpop.trf.xlu0 }
 0x4c8   : > { %7684 = vmatprep.mubr.msk.f32.mxu1 %vm2601_vm2, %v2358_v20  ;;  %v9410_v34 = vpop.trf.xlu1 }
 0x4c9   : > { %11043 = vst [vmem:[#allocation164_spill] sm:$0xff] %v9410_v34 }
 0x4cb   : > { %v2359_v7 = vpop.trf.xlu0 }
 0x4cc   : > { %7685 = vmatmul.mubr.msk.f32.gmra.mrb[56].mxu1 %vm2601_vm2, %v2359_v7  ;;  %v9413_v63 = vpop.trf.xlu1 }
 0x4cd   : > { %11044 = vst [vmem:[#allocation165_spill] sm:$0xff] %v9413_v63 }
 0x4cf   : > { %v9415_v46 = vpop.trf.xlu0 }
 0x4d0   : > { %11045 = vst [vmem:[#allocation166_spill] sm:$0xff] %v9415_v46  ;;  %v1272_v59 = vpop.trf.xlu1 }
 0x4d1   : > { %7388 = vmatprep.mubr.msk.f32.mxu0 %vm2601_vm2, %v1272_v59 }
 0x4d3   : > { %v9418_v13 = vpop.trf.xlu0 }
 0x4d4   : > { %11046 = vst [vmem:[#allocation167_spill] sm:$0xff] %v9418_v13  ;;  %v1273_v51 = vpop.trf.xlu1 }
 0x4d5   : > { %7389 = vmatmul.mubr.msk.f32.gmra.mrb[56].mxu0 %vm2601_vm2, %v1273_v51 }
 0x4d7   : > { %v9421_v18 = vpop.trf.xlu0 }
 0x4d8   : > { %11047 = vst [vmem:[#allocation168_spill] sm:$0xff] %v9421_v18  ;;  %v9423_v20 = vpop.trf.xlu1 }
 0x4db   : > { %v9425_v34 = vpop.trf.xlu0 }
 0x4dc   : > { %11048 = vst [vmem:[#allocation169_spill] sm:$0xff] %v9425_v34  ;;  %v9427_v22 = vpop.trf.xlu1 }
 0x4dd   : > { %11049 = vst [vmem:[#allocation170_spill] sm:$0xff] %v9427_v22 }
 0x4df   : > { %v2390_v7 = vpop.trf.xlu0 }
 0x4e0   : > { %7687 = vmatprep.mubr.msk.f32.mxu1 %vm2601_vm2, %v2390_v7  ;;  %v9430_v63 = vpop.trf.xlu1 }
 0x4e1   : > { %11050 = vst [vmem:[#allocation171_spill] sm:$0xff] %v9430_v63 }
 0x4e3   : > { %v2391_v46 = vpop.trf.xlu0 }
 0x4e4   : > { %7688 = vmatmul.mubr.msk.f32.gmra.mrb[58].mxu1 %vm2601_vm2, %v2391_v46  ;;  %v9433_v59 = vpop.trf.xlu1 }
 0x4e5   : > { %11051 = vst [vmem:[#allocation172_spill] sm:$0xff] %v9433_v59 }
 0x4e7   : > { %v9435_v13 = vpop.trf.xlu0 }
 0x4e8   : > { %11052 = vst [vmem:[#allocation173_spill] sm:$0xff] %v9435_v13  ;;  %v1304_v51 = vpop.trf.xlu1 }
 0x4e9   : > { %7391 = vmatprep.mubr.msk.f32.mxu0 %vm2601_vm2, %v1304_v51 }
 0x4eb   : > { %v9438_v18 = vpop.trf.xlu0 }
 0x4ec   : > { %11053 = vst [vmem:[#allocation174_spill] sm:$0xff] %v9438_v18  ;;  %v1305_v34 = vpop.trf.xlu1 }
 0x4ed   : > { %7392 = vmatmul.mubr.msk.f32.gmra.mrb[58].mxu0 %vm2601_vm2, %v1305_v34 }
 0x4ef   : > { %v9441_v37 = vpop.trf.xlu0 }
 0x4f0   : > { %11054 = vst [vmem:[#allocation175_spill] sm:$0xff] %v9441_v37  ;;  %v9443_v7 = vpop.trf.xlu1 }
 0x4f1   : > { %11055 = vst [vmem:[#allocation176_spill] sm:$0xff] %v9443_v7 }
 0x4f3   : > { %v9445_v63 = vpop.trf.xlu0 }
 0x4f4   : > { %11056 = vst [vmem:[#allocation177_spill] sm:$0xff] %v9445_v63  ;;  %v9447_v22 = vpop.trf.xlu1 }
 0x4f5   : > { %11057 = vst [vmem:[#allocation178_spill] sm:$0xff] %v9447_v22 }
 0x4f7   : > { %v2422_v46 = vpop.trf.xlu0 }
 0x4f8   : > { %7690 = vmatprep.mubr.msk.f32.mxu1 %vm2601_vm2, %v2422_v46  ;;  %v9450_v59 = vpop.trf.xlu1 }
 0x4f9   : > { %11058 = vst [vmem:[#allocation179_spill] sm:$0xff] %v9450_v59 }
 0x4fb   : > { %v2423_v13 = vpop.trf.xlu0 }
 0x4fc   : > { %7691 = vmatmul.mubr.msk.f32.gmra.mrb[60].mxu1 %vm2601_vm2, %v2423_v13  ;;  %v9453_v51 = vpop.trf.xlu1 }
 0x4fd   : > { %11059 = vst [vmem:[#allocation180_spill] sm:$0xff] %v9453_v51 }
 0x4ff   : > { %v9455_v18 = vpop.trf.xlu0 }
 0x500   : > { %11060 = vst [vmem:[#allocation181_spill] sm:$0xff] %v9455_v18  ;;  %v1336_v34 = vpop.trf.xlu1 }
 0x501   : > { %7394 = vmatprep.mubr.msk.f32.mxu0 %vm2601_vm2, %v1336_v34 }
 0x503   : > { %v9458_v37 = vpop.trf.xlu0 }
 0x504   : > { %11061 = vst [vmem:[#allocation182_spill] sm:$0xff] %v9458_v37  ;;  %v1337_v63 = vpop.trf.xlu1 }
 0x505   : > { %7395 = vmatmul.mubr.msk.f32.gmra.mrb[60].mxu0 %vm2601_vm2, %v1337_v63 }
 0x507   : > { %v9461_v22 = vpop.trf.xlu0 }
 0x508   : > { %11062 = vst [vmem:[#allocation183_spill] sm:$0xff] %v9461_v22  ;;  %v9463_v46 = vpop.trf.xlu1 }
 0x509   : > { %11063 = vst [vmem:[#allocation184_spill] sm:$0xff] %v9463_v46 }
 0x50b   : > { %v9465_v59 = vpop.trf.xlu0 }
 0x50c   : > { %11064 = vst [vmem:[#allocation185_spill] sm:$0xff] %v9465_v59  ;;  %v9467_v7 = vpop.trf.xlu1 }
 0x50d   : > { %11065 = vst [vmem:[#allocation186_spill] sm:$0xff] %v9467_v7 }
 0x50f   : > { %v2454_v13 = vpop.trf.xlu0 }
 0x510   : > { %7693 = vmatprep.mubr.msk.f32.mxu1 %vm2601_vm2, %v2454_v13  ;;  %v9470_v51 = vpop.trf.xlu1 }
 0x511   : > { %11066 = vst [vmem:[#allocation187_spill] sm:$0xff] %v9470_v51 }
 0x513   : > { %v2455_v18 = vpop.trf.xlu0 }
 0x514   : > { %7694 = vmatmul.mubr.msk.f32.gmra.mrb[62].mxu1 %vm2601_vm2, %v2455_v18  ;;  %v9473_v34 = vpop.trf.xlu1 }
 0x515   : > { %11067 = vst [vmem:[#allocation188_spill] sm:$0xff] %v9473_v34 }
 0x517   : > { %v9475_v37 = vpop.trf.xlu0 }
 0x518   : > { %11068 = vst [vmem:[#allocation189_spill] sm:$0xff] %v9475_v37  ;;  %v1368_v63 = vpop.trf.xlu1 }
 0x519   : > { %7397 = vmatprep.mubr.msk.f32.mxu0 %vm2601_vm2, %v1368_v63 }
 0x51b   : > { %v9478_v22 = vpop.trf.xlu0 }
 0x51c   : > { %11069 = vst [vmem:[#allocation190_spill] sm:$0xff] %v9478_v22  ;;  %v1369_v59 = vpop.trf.xlu1 }
 0x51d   : > { %7398 = vmatmul.mubr.msk.f32.gmra.mrb[62].mxu0 %vm2601_vm2, %v1369_v59 }
 0x51f   : > { %v9481_v7 = vpop.trf.xlu0 }
 0x520   : > { %11070 = vst [vmem:[#allocation191_spill] sm:$0xff] %v9481_v7  ;;  %v9483_v13 = vpop.trf.xlu1 }
 0x521   : > { %11071 = vst [vmem:[#allocation192_spill] sm:$0xff] %v9483_v13 }
 0x523   : > { %v9485_v51 = vpop.trf.xlu0 }
 0x524   : > { %11072 = vst [vmem:[#allocation193_spill] sm:$0xff] %v9485_v51  ;;  %v9487_v46 = vpop.trf.xlu1 }
 0x525   : > { %11073 = vst [vmem:[#allocation194_spill] sm:$0xff] %v9487_v46 }
 0x527   : > { %v2486_v18 = vpop.trf.xlu0 }
 0x528   : > { %7696 = vmatprep.mubr.msk.f32.mxu1 %vm2601_vm2, %v2486_v18  ;;  %v9490_v34 = vpop.trf.xlu1 }
 0x529   : > { %11074 = vst [vmem:[#allocation195_spill] sm:$0xff] %v9490_v34 }
 0x52b   : > { %v2487_v37 = vpop.trf.xlu0 }
 0x52c   : > { %7697 = vmatmul.mubr.msk.f32.gmra.mrb[64].mxu1 %vm2601_vm2, %v2487_v37  ;;  %v9493_v63 = vpop.trf.xlu1 }
 0x52d   : > { %11075 = vst [vmem:[#allocation196_spill] sm:$0xff] %v9493_v63 }
 0x52f   : > { %v9495_v22 = vpop.trf.xlu0 }
 0x530   : > { %11076 = vst [vmem:[#allocation197_spill] sm:$0xff] %v9495_v22  ;;  %v1400_v59 = vpop.trf.xlu1 }
 0x531   : > { %7400 = vmatprep.mubr.msk.f32.mxu0 %vm2601_vm2, %v1400_v59 }
 0x533   : > { %v9498_v7 = vpop.trf.xlu0 }
 0x534   : > { %11077 = vst [vmem:[#allocation198_spill] sm:$0xff] %v9498_v7  ;;  %v1401_v51 = vpop.trf.xlu1 }
 0x535   : > { %7401 = vmatmul.mubr.msk.f32.gmra.mrb[64].mxu0 %vm2601_vm2, %v1401_v51 }
 0x537   : > { %v9501_v46 = vpop.trf.xlu0 }
 0x538   : > { %11078 = vst [vmem:[#allocation199_spill] sm:$0xff] %v9501_v46  ;;  %v9503_v18 = vpop.trf.xlu1 }
 0x53b   : > { %v9505_v34 = vpop.trf.xlu0 }
 0x53c   : > { %11079 = vst [vmem:[#allocation200_spill] sm:$0xff] %v9505_v34  ;;  %v9507_v13 = vpop.trf.xlu1 }
 0x53f   : > { %v2518_v37 = vpop.trf.xlu0 }
 0x540   : > { %7699 = vmatprep.mubr.msk.f32.mxu1 %vm2601_vm2, %v2518_v37  ;;  %v9510_v63 = vpop.trf.xlu1 }
 0x541   : > { %11080 = vst [vmem:[#allocation201_spill] sm:$0xff] %v9510_v63 }
 0x543   : > { %v2519_v22 = vpop.trf.xlu0 }
 0x544   : > { %7700 = vmatmul.mubr.msk.f32.gmra.mrb[66].mxu1 %vm2601_vm2, %v2519_v22  ;;  %v9513_v59 = vpop.trf.xlu1 }
 0x547   : > { %v9515_v7 = vpop.trf.xlu0 }
 0x548   : > { %v1432_v51 = vpop.trf.xlu1 }
 0x549   : > { %7403 = vmatprep.mubr.msk.f32.mxu0 %vm2601_vm2, %v1432_v51 }
 0x54b   : > { %v9518_v46 = vpop.trf.xlu0 }
 0x54c   : > { %v1433_v34 = vpop.trf.xlu1 }
 0x54d   : > { %7404 = vmatmul.mubr.msk.f32.gmra.mrb[66].mxu0 %vm2601_vm2, %v1433_v34 }
 0x54e   : > { %7406 = vmatprep.mubr.msk.f32.mxu0 %vm2601_vm2, %v9080_v39 }
 0x54f   : > { %v9523_v37 = vpop.trf.xlu0 }
 0x550   : > { %v9525_v63 = vpop.trf.xlu1 }
 0x551   : > { %7407 = vmatmul.mubr.msk.f32.gmra.mrb[68].mxu0 %vm2601_vm2, %v9084_v44  ;;  %v11090_v44 = vld [vmem:[#allocation44_spill] sm:$0xff] }
 0x552   : > { %7409 = vmatprep.mubr.msk.f32.mxu0 %vm2601_vm2, %v9099_v42 }
 0x553   : > { %v9531_v22 = vpop.trf.xlu0 }
 0x554   : > { %v9533_v51 = vpop.trf.xlu1 }
 0x555   : > { %7410 = vmatmul.mubr.msk.f32.gmra.mrb[70].mxu0 %vm2601_vm2, %v9104_v38 }
 0x556   : > { %7412 = vmatprep.mubr.msk.f32.mxu0 %vm2601_vm2, %v9102_v1  ;;  %v11089_v1 = vld [vmem:[#allocation40_spill] sm:$0xff] }
 0x557   : > { %v2550_v39 = vpop.trf.xlu0 }
 0x558   : > { %7702 = vmatprep.mubr.msk.f32.mxu1 %vm2601_vm2, %v2550_v39  ;;  %v2582_v34 = vpop.trf.xlu1  ;;  %v11094_v39 = vld [vmem:[#allocation52_spill] sm:$0xff] }
 0x559   : > { %7413 = vmatmul.mubr.msk.f32.gmra.mrb[72].mxu0 %vm2601_vm2, %v9106_v5  ;;  %v11091_v5 = vld [vmem:[#allocation45_spill] sm:$0xff] }
 0x55a   : > { %7415 = vmatprep.mubr.msk.f32.mxu0 %vm2601_vm2, %v9128_v48  ;;  %v11092_v48 = vld [vmem:[#allocation51_spill] sm:$0xff] }
 0x55b   : > { %v2551_v42 = vpop.trf.xlu0 }
 0x55c   : > { %7703 = vmatmul.mubr.msk.f32.gmra.mrb[68].mxu1 %vm2601_vm2, %v2551_v42  ;;  %v2583_v38 = vpop.trf.xlu1  ;;  %v11096_v42 = vld [vmem:[#allocation66_spill] sm:$0xff] }
 0x55d   : > { %7416 = vmatmul.mubr.msk.f32.gmra.mrb[74].mxu0 %vm2601_vm2, %v9135_v35  ;;  %7705 = vmatprep.mubr.msk.f32.mxu1 %vm2601_vm2, %v2582_v34  ;;  %v11093_v35 = vld [vmem:[#allocation47_spill] sm:$0xff]  ;;  %v11095_v34 = vld [vmem:[#allocation54_spill] sm:$0xff] }
 0x55e   : > { %7418 = vmatprep.mubr.msk.f32.mxu0 %vm2601_vm2, %v8748_v6  ;;  %v11081_v6 = vld [vmem:[#allocation25_spill] sm:$0xff] }
 0x560   : > { %7706 = vmatmul.mubr.msk.f32.gmra.mrb[70].mxu1 %vm2601_vm2, %v2583_v38  ;;  %v11097_v38 = vld [vmem:[#allocation56_spill] sm:$0xff] }
 0x561   : > { %7419 = vmatmul.mubr.msk.f32.gmra.mrb[76].mxu0 %vm2601_vm2, %v8751_v8  ;;  %7710 = vmatprep.mubr.msk.f32.mxu1 %vm2601_vm2, %v8753_v9  ;;  %v11082_v8 = vld [vmem:[#allocation28_spill] sm:$0xff]  ;;  %v11083_v9 = vld [vmem:[#allocation29_spill] sm:$0xff] }
 0x562   : > { %7421 = vmatprep.mubr.msk.f32.mxu0 %vm2601_vm2, %v8770_v17  ;;  %v11084_v17 = vld [vmem:[#allocation35_spill] sm:$0xff] }
 0x564   : > { %7711 = vmatmul.mubr.msk.f32.vlgmr.msra.gmra.mrb[72].mxu1 %vm2601_vm2, %v8758_v11  ;;  %v11085_v11 = vld [vmem:[#allocation31_spill] sm:$0xff] }
 0x565   : > { %7422 = vmatmul.mubr.msk.f32.gmra.mrb[78].mxu0 %vm2601_vm2, %v8773_v19  ;;  %7713 = vmatprep.mubr.msk.f32.mxu1 %vm2601_vm2, %v8782_v24  ;;  %v11086_v19 = vld [vmem:[#allocation36_spill] sm:$0xff]  ;;  %v11087_v24 = vld [vmem:[#allocation38_spill] sm:$0xff] }
 0x566   : > { %7424 = vmatprep.mubr.msk.f32.mxu0 %vm2601_vm2, %v8797_v32  ;;  %v11088_v32 = vld [vmem:[#allocation43_spill] sm:$0xff] }
 0x568   : > { %7714 = vmatmul.mubr.msk.f32.gmra.mrb[74].mxu1 %vm2601_vm2, %v11081_v6  ;;  %v11098_v6 = vld [vmem:[#allocation68_spill] sm:$0xff] }
 0x569   : > { %7425 = vmatmul.mubr.msk.f32.gmra.mrb[80].mxu0 %vm2601_vm2, %v11082_v8  ;;  %7716 = vmatprep.mubr.msk.f32.mxu1 %vm2601_vm2, %v11083_v9  ;;  %v11099_v8 = vld [vmem:[#allocation62_spill] sm:$0xff]  ;;  %v11100_v9 = vld [vmem:[#allocation59_spill] sm:$0xff] }
 0x56a   : > { %7427 = vmatprep.mubr.msk.f32.mxu0 %vm2601_vm2, %v11084_v17  ;;  %v11101_v17 = vld [vmem:[#allocation64_spill] sm:$0xff] }
 0x56c   : > { %7717 = vmatmul.mubr.msk.f32.gmra.mrb[76].mxu1 %vm2601_vm2, %v11085_v11  ;;  %v11102_v11 = vld [vmem:[#allocation60_spill] sm:$0xff] }
 0x56d   : > { %7428 = vmatmul.mubr.msk.f32.gmra.mrb[82].mxu0 %vm2601_vm2, %v11086_v19  ;;  %7719 = vmatprep.mubr.msk.f32.mxu1 %vm2601_vm2, %v11087_v24  ;;  %v11103_v19 = vld [vmem:[#allocation78_spill] sm:$0xff]  ;;  %v11104_v24 = vld [vmem:[#allocation65_spill] sm:$0xff] }
 0x56e   : > { %7430 = vmatprep.mubr.msk.f32.mxu0 %vm2601_vm2, %v11088_v32  ;;  %v11105_v32 = vld [vmem:[#allocation80_spill] sm:$0xff] }
 0x570   : > { %7720 = vmatmul.mubr.msk.f32.gmra.mrb[78].mxu1 %vm2601_vm2, %v11089_v1  ;;  %v11106_v1 = vld [vmem:[#allocation67_spill] sm:$0xff] }
 0x571   : > { %7431 = vmatmul.mubr.msk.f32.gmra.mrb[84].mxu0 %vm2601_vm2, %v11090_v44  ;;  %7722 = vmatprep.mubr.msk.f32.mxu1 %vm2601_vm2, %v11091_v5  ;;  %v11107_v44 = vld [vmem:[#allocation86_spill] sm:$0xff]  ;;  %v11108_v5 = vld [vmem:[#allocation75_spill] sm:$0xff] }
 0x572   : > { %7433 = vmatprep.mubr.msk.f32.mxu0 %vm2601_vm2, %v11092_v48  ;;  %v11109_v48 = vld [vmem:[#allocation88_spill] sm:$0xff] }
 0x574   : > { %7723 = vmatmul.mubr.msk.f32.gmra.mrb[80].mxu1 %vm2601_vm2, %v11093_v35  ;;  %v11110_v35 = vld [vmem:[#allocation76_spill] sm:$0xff] }
 0x575   : > { %7434 = vmatmul.mubr.msk.f32.gmra.mrb[86].mxu0 %vm2601_vm2, %v11094_v39  ;;  %7725 = vmatprep.mubr.msk.f32.mxu1 %vm2601_vm2, %v11095_v34  ;;  %v11111_v39 = vld [vmem:[#allocation94_spill] sm:$0xff]  ;;  %v11112_v34 = vld [vmem:[#allocation83_spill] sm:$0xff] }
 0x576   : > { %7436 = vmatprep.mubr.msk.f32.mxu0 %vm2601_vm2, %v11096_v42  ;;  %v11113_v42 = vld [vmem:[#allocation96_spill] sm:$0xff] }
 0x578   : > { %7726 = vmatmul.mubr.msk.f32.gmra.mrb[82].mxu1 %vm2601_vm2, %v11097_v38  ;;  %v11114_v38 = vld [vmem:[#allocation84_spill] sm:$0xff] }
 0x579   : > { %7437 = vmatmul.mubr.msk.f32.gmra.mrb[88].mxu0 %vm2601_vm2, %v11098_v6  ;;  %7728 = vmatprep.mubr.msk.f32.mxu1 %vm2601_vm2, %v11099_v8  ;;  %v11115_v6 = vld [vmem:[#allocation102_spill] sm:$0xff]  ;;  %v11116_v8 = vld [vmem:[#allocation91_spill] sm:$0xff] }
 0x57a   : > { %7439 = vmatprep.mubr.msk.f32.mxu0 %vm2601_vm2, %v11100_v9  ;;  %v11117_v9 = vld [vmem:[#allocation104_spill] sm:$0xff] }
 0x57c   : > { %7729 = vmatmul.mubr.msk.f32.gmra.mrb[84].mxu1 %vm2601_vm2, %v11101_v17  ;;  %v11118_v17 = vld [vmem:[#allocation92_spill] sm:$0xff] }
 0x57d   : > { %7440 = vmatmul.mubr.msk.f32.gmra.mrb[90].mxu0 %vm2601_vm2, %v11102_v11  ;;  %7731 = vmatprep.mubr.msk.f32.mxu1 %vm2601_vm2, %v11103_v19  ;;  %v11119_v11 = vld [vmem:[#allocation110_spill] sm:$0xff]  ;;  %v11120_v19 = vld [vmem:[#allocation99_spill] sm:$0xff] }
 0x57e   : > { %7442 = vmatprep.mubr.msk.f32.mxu0 %vm2601_vm2, %v11104_v24  ;;  %v11121_v24 = vld [vmem:[#allocation112_spill] sm:$0xff] }
 0x580   : > { %7732 = vmatmul.mubr.msk.f32.gmra.mrb[86].mxu1 %vm2601_vm2, %v11105_v32  ;;  %v11122_v32 = vld [vmem:[#allocation100_spill] sm:$0xff] }
 0x581   : > { %7443 = vmatmul.mubr.msk.f32.gmra.mrb[92].mxu0 %vm2601_vm2, %v11106_v1  ;;  %7734 = vmatprep.mubr.msk.f32.mxu1 %vm2601_vm2, %v11107_v44  ;;  %v11123_v1 = vld [vmem:[#allocation107_spill] sm:$0xff]  ;;  %v11124_v44 = vld [vmem:[#allocation108_spill] sm:$0xff] }
 0x582   : > { %7445 = vmatprep.mubr.msk.f32.mxu0 %vm2601_vm2, %v11108_v5  ;;  %v11125_v5 = vld [vmem:[#allocation113_spill] sm:$0xff] }
 0x584   : > { %7735 = vmatmul.mubr.msk.f32.gmra.mrb[88].mxu1 %vm2601_vm2, %v11109_v48  ;;  %v11126_v48 = vld [vmem:[#allocation114_spill] sm:$0xff] }
 0x585   : > { %7446 = vmatmul.mubr.msk.f32.gmra.mrb[94].mxu0 %vm2601_vm2, %v11110_v35  ;;  %7737 = vmatprep.mubr.msk.f32.mxu1 %vm2601_vm2, %v11111_v39  ;;  %v11167_v35 = vld [vmem:[#allocation37_spill] sm:$0xff] }
 0x586   : > { %7448 = vmatprep.mubr.msk.f32.mxu0 %vm2601_vm2, %v11112_v34  ;;  %v11168_v39 = vld [vmem:[#allocation41_spill] sm:$0xff]  ;;  %v11169_v34 = vld [vmem:[#allocation39_spill] sm:$0xff] }
 0x588   : > { %7738 = vmatmul.mubr.msk.f32.gmra.mrb[90].mxu1 %vm2601_vm2, %v11113_v42  ;;  %v11170_v42 = vld [vmem:[#allocation42_spill] sm:$0xff] }
 0x589   : > { %7449 = vmatmul.mubr.msk.f32.gmra.mrb[96].mxu0 %vm2601_vm2, %v11114_v38  ;;  %7740 = vmatprep.mubr.msk.f32.mxu1 %vm2601_vm2, %v11115_v6  ;;  %v11171_v38 = vld [vmem:[#allocation46_spill] sm:$0xff]  ;;  %v11172_v6 = vld [vmem:[#allocation49_spill] sm:$0xff] }
 0x58a   : > { %7451 = vmatprep.mubr.msk.f32.mxu0 %vm2601_vm2, %v11116_v8  ;;  %v11173_v8 = vld [vmem:[#allocation48_spill] sm:$0xff] }
 0x58c   : > { %7741 = vmatmul.mubr.msk.f32.gmra.mrb[92].mxu1 %vm2601_vm2, %v11117_v9  ;;  %v11174_v9 = vld [vmem:[#allocation50_spill] sm:$0xff] }
 0x58d   : > { %7452 = vmatmul.mubr.msk.f32.gmra.mrb[98].mxu0 %vm2601_vm2, %v11118_v17  ;;  %7743 = vmatprep.mubr.msk.f32.mxu1 %vm2601_vm2, %v11119_v11  ;;  %v11175_v17 = vld [vmem:[#allocation53_spill] sm:$0xff] }
 0x58e   : > { %7454 = vmatprep.mubr.msk.f32.mxu0 %vm2601_vm2, %v11120_v19  ;;  %v11176_v11 = vld [vmem:[#allocation57_spill] sm:$0xff]  ;;  %v11177_v19 = vld [vmem:[#allocation55_spill] sm:$0xff] }
 0x590   : > { %7744 = vmatmul.mubr.msk.f32.gmra.mrb[94].mxu1 %vm2601_vm2, %v11121_v24  ;;  %v11178_v24 = vld [vmem:[#allocation58_spill] sm:$0xff] }
 0x591   : > { %7455 = vmatmul.mubr.msk.f32.gmra.mrb[100].mxu0 %vm2601_vm2, %v11122_v32  ;;  %7746 = vmatprep.mubr.msk.f32.mxu1 %vm2601_vm2, %v9147_v4  ;;  %v11127_v4 = vld [vmem:[#allocation170_spill] sm:$0xff] }
 0x592   : > { %7457 = vmatprep.mubr.msk.f32.mxu0 %vm2601_vm2, %v11123_v1  ;;  %v11179_v32 = vld [vmem:[#allocation70_spill] sm:$0xff]  ;;  %v11180_v1 = vld [vmem:[#allocation73_spill] sm:$0xff] }
 0x594   : > { %7747 = vmatmul.mubr.msk.f32.gmra.mrb[96].mxu1 %vm2601_vm2, %v9156_v15  ;;  %v11128_v15 = vld [vmem:[#allocation161_spill] sm:$0xff] }
 0x595   : > { %7458 = vmatmul.mubr.msk.f32.gmra.mrb[102].mxu0 %vm2601_vm2, %v11124_v44  ;;  %7749 = vmatprep.mubr.msk.f32.mxu1 %vm2601_vm2, %v9194_v3  ;;  %v11133_v3 = vld [vmem:[#allocation184_spill] sm:$0xff] }
 0x596   : > { %7460 = vmatprep.mubr.msk.f32.mxu0 %vm2601_vm2, %v11125_v5  ;;  %v11181_v44 = vld [vmem:[#allocation72_spill] sm:$0xff]  ;;  %v11182_v5 = vld [vmem:[#allocation74_spill] sm:$0xff] }
 0x598   : > { %7750 = vmatmul.mubr.msk.f32.gmra.mrb[98].mxu1 %vm2601_vm2, %v9202_v12  ;;  %v11135_v12 = vld [vmem:[#allocation186_spill] sm:$0xff] }
 0x599   : > { %7461 = vmatmul.mubr.msk.f32.gmra.mrb[104].mxu0 %vm2601_vm2, %v11126_v48  ;;  %7752 = vmatprep.mubr.msk.f32.mxu1 %vm2601_vm2, %v9237_v31  ;;  %v11140_v31 = vld [vmem:[#allocation182_spill] sm:$0xff]  ;;  %v11183_v48 = vld [vmem:[#allocation61_spill] sm:$0xff] }
 0x59a   : > { %7463 = vmatprep.mubr.msk.f32.mxu0 %vm2601_vm2, %v9172_v0  ;;  %v11130_v0 = vld [vmem:[#allocation166_spill] sm:$0xff] }
 0x59c   : > { %7753 = vmatmul.mubr.msk.f32.gmra.mrb[100].mxu1 %vm2601_vm2, %v9244_v14  ;;  %v11141_v14 = vld [vmem:[#allocation189_spill] sm:$0xff] }
 0x59d   : > { %7464 = vmatmul.mubr.msk.f32.gmra.mrb[106].mxu0 %vm2601_vm2, %v9179_v25  ;;  %7755 = vmatprep.mubr.msk.f32.mxu1 %vm2601_vm2, %v9266_v50  ;;  %v11132_v25 = vld [vmem:[#allocation167_spill] sm:$0xff]  ;;  %v2552_v50 = vpop.trf.xlu0 }
 0x59e   : > { %7466 = vmatprep.mubr.msk.f32.mxu0 %vm2601_vm2, %v9218_v16  ;;  %v11137_v16 = vld [vmem:[#allocation192_spill] sm:$0xff] }
 0x5a0   : > { %7756 = vmatmul.mubr.msk.f32.gmra.mrb[102].mxu1 %vm2601_vm2, %v9270_v60  ;;  %v11145_v60 = vld [vmem:[#allocation116_spill] sm:$0xff] }
 0x5a1   : > { %7467 = vmatmul.mubr.msk.f32.gmra.mrb[108].mxu0 %vm2601_vm2, %v9225_v33  ;;  %7758 = vmatprep.mubr.msk.f32.mxu1 %vm2601_vm2, %v9287_v45  ;;  %v11138_v33 = vld [vmem:[#allocation181_spill] sm:$0xff]  ;;  %v2553_v45 = vpop.trf.xlu0 }
 0x5a2   : > { %7469 = vmatprep.mubr.msk.f32.mxu0 %vm2601_vm2, %v9254_v26  ;;  %v11142_v26 = vld [vmem:[#allocation190_spill] sm:$0xff] }
 0x5a4   : > { %7759 = vmatmul.mubr.msk.f32.gmra.mrb[104].mxu1 %vm2601_vm2, %v9292_v10  ;;  %v11144_v10 = vld [vmem:[#allocation198_spill] sm:$0xff] }
 0x5a5   : > { %7470 = vmatmul.mubr.msk.f32.gmra.mrb[110].mxu0 %vm2601_vm2, %v9257_v54  ;;  %7761 = vmatprep.mubr.msk.f32.mxu1 %vm2601_vm2, %v9314_v23  ;;  %v11143_v54 = vld [vmem:[#allocation197_spill] sm:$0xff] }
 0x5a6   : > { %7472 = vmatprep.mubr.msk.f32.mxu0 %vm2601_vm2, %v9278_v52  ;;  %v2584_v52 = vpop.trf.xlu1  ;;  %v11148_v23 = vld [vmem:[#allocation121_spill] sm:$0xff] }
 0x5a8   : > { %7762 = vmatmul.mubr.msk.f32.gmra.mrb[106].mxu1 %vm2601_vm2, %v9318_v57  ;;  %v11149_v57 = vld [vmem:[#allocation120_spill] sm:$0xff] }
 0x5a9   : > { %7473 = vmatmul.mubr.msk.f32.gmra.mrb[112].mxu0 %vm2601_vm2, %v9281_v36  ;;  %7764 = vmatprep.mubr.msk.f32.mxu1 %vm2601_vm2, %v9335_v47  ;;  %v11147_v36 = vld [vmem:[#allocation119_spill] sm:$0xff]  ;;  %v11152_v47 = vld [vmem:[#allocation17_spill] sm:$0xff] }
 0x5aa   : > { %7475 = vmatprep.mubr.msk.f32.mxu0 %vm2601_vm2, %v9302_v62  ;;  %v11139_v62 = vld [vmem:[#allocation194_spill] sm:$0xff] }
 0x5ac   : > { %7765 = vmatmul.mubr.msk.f32.gmra.mrb[108].mxu1 %vm2601_vm2, %v9340_v40  ;;  %v2585_v40 = vpop.trf.xlu1 }
 0x5ad   : > { %7476 = vmatmul.mubr.msk.f32.gmra.mrb[114].mxu0 %vm2601_vm2, %v9305_v49  ;;  %7767 = vmatprep.mubr.msk.f32.mxu1 %vm2601_vm2, %v9360_v29  ;;  %v11146_v49 = vld [vmem:[#allocation118_spill] sm:$0xff] }
 0x5ae   : > { %7478 = vmatprep.mubr.msk.f32.mxu0 %vm2601_vm2, %v9326_v56  ;;  %v11150_v56 = vld [vmem:[#allocation122_spill] sm:$0xff] }
 0x5af   : > { %v11154_v29 = vld [vmem:[#allocation18_spill] sm:$0xff] }
 0x5b0   : > { %7768 = vmatmul.mubr.msk.f32.gmra.mrb[110].mxu1 %vm2601_vm2, %v9364_v55  ;;  %v11155_v55 = vld [vmem:[#allocation19_spill] sm:$0xff] }
 0x5b1   : > { %7479 = vmatmul.mubr.msk.f32.gmra.mrb[116].mxu0 %vm2601_vm2, %v9329_v21  ;;  %7770 = vmatprep.mubr.msk.f32.mxu1 %vm2601_vm2, %v9383_v61  ;;  %v11151_v21 = vld [vmem:[#allocation125_spill] sm:$0xff]  ;;  %v11158_v61 = vld [vmem:[#allocation22_spill] sm:$0xff] }
 0x5b2   : > { %7481 = vmatprep.mubr.msk.f32.mxu0 %vm2601_vm2, %v9348_v53  ;;  %v11134_v53 = vld [vmem:[#allocation173_spill] sm:$0xff] }
 0x5b4   : > { %7771 = vmatmul.mubr.msk.f32.gmra.mrb[112].mxu1 %vm2601_vm2, %v9387_v30  ;;  %v11129_v30 = vld [vmem:[#allocation176_spill] sm:$0xff] }
 0x5b5   : > { %7482 = vmatmul.mubr.msk.f32.gmra.mrb[118].mxu0 %vm2601_vm2, %v9351_v43  ;;  %7773 = vmatprep.mubr.msk.f32.mxu1 %vm2601_vm2, %v9403_v27  ;;  %v11136_v43 = vld [vmem:[#allocation174_spill] sm:$0xff]  ;;  %v11159_v27 = vld [vmem:[#allocation23_spill] sm:$0xff] }
 0x5b6   : > { %7484 = vmatprep.mubr.msk.f32.mxu0 %vm2601_vm2, %v9372_v58  ;;  %v11156_v58 = vld [vmem:[#allocation21_spill] sm:$0xff] }
 0x5b8   : > { %7774 = vmatmul.mubr.msk.f32.gmra.mrb[114].mxu1 %vm2601_vm2, %v9407_v2  ;;  %v11131_v2 = vld [vmem:[#allocation178_spill] sm:$0xff] }
 0x5b9   : > { %7485 = vmatmul.mubr.msk.f32.gmra.mrb[120].mxu0 %vm2601_vm2, %v9375_v41  ;;  %7776 = vmatprep.mubr.msk.f32.mxu1 %vm2601_vm2, %v9423_v20  ;;  %v11157_v41 = vld [vmem:[#allocation20_spill] sm:$0xff]  ;;  %v11160_v20 = vld [vmem:[#allocation26_spill] sm:$0xff] }
 0x5ba   : > { %7487 = vmatprep.mubr.msk.f32.mxu0 %vm2601_vm2, %v9395_v28  ;;  %v11153_v28 = vld [vmem:[#allocation126_spill] sm:$0xff] }
 0x5bc   : > { %7777 = vmatmul.mubr.msk.f32.gmra.mrb[116].mxu1 %vm2601_vm2, %v11127_v4  ;;  %v11184_v4 = vld [vmem:[#allocation81_spill] sm:$0xff] }
 0x5bd   : > { %7488 = vmatmul.mubr.msk.f32.gmra.mrb[122].mxu0 %vm2601_vm2, %v11128_v15  ;;  %7779 = vmatprep.mubr.msk.f32.mxu1 %vm2601_vm2, %v11129_v30  ;;  %v11185_v15 = vld [vmem:[#allocation63_spill] sm:$0xff]  ;;  %v11186_v30 = vld [vmem:[#allocation82_spill] sm:$0xff] }
 0x5be   : > { %7490 = vmatprep.mubr.msk.f32.mxu0 %vm2601_vm2, %v11130_v0  ;;  %v11187_v0 = vld [vmem:[#allocation69_spill] sm:$0xff] }
 0x5c0   : > { %7780 = vmatmul.mubr.msk.f32.gmra.mrb[118].mxu1 %vm2601_vm2, %v11131_v2  ;;  %v11188_v2 = vld [vmem:[#allocation89_spill] sm:$0xff] }
 0x5c1   : > { %7491 = vmatmul.mubr.msk.f32.gmra.mrb[124].mxu0 %vm2601_vm2, %v11132_v25  ;;  %7782 = vmatprep.mubr.msk.f32.mxu1 %vm2601_vm2, %v11133_v3  ;;  %v11189_v25 = vld [vmem:[#allocation71_spill] sm:$0xff]  ;;  %v11190_v3 = vld [vmem:[#allocation90_spill] sm:$0xff] }
 0x5c2   : > { %7493 = vmatprep.mubr.msk.f32.mxu0 %vm2601_vm2, %v11134_v53  ;;  %v11191_v53 = vld [vmem:[#allocation77_spill] sm:$0xff] }
 0x5c4   : > { %7783 = vmatmul.mubr.msk.f32.gmra.mrb[120].mxu1 %vm2601_vm2, %v11135_v12  ;;  %v11192_v12 = vld [vmem:[#allocation97_spill] sm:$0xff] }
 0x5c5   : > { %7494 = vmatmul.mubr.msk.f32.gmra.mrb[126].mxu0 %vm2601_vm2, %v11136_v43  ;;  %7785 = vmatprep.mubr.msk.f32.mxu1 %vm2601_vm2, %v11137_v16  ;;  %v11193_v43 = vld [vmem:[#allocation79_spill] sm:$0xff]  ;;  %v11194_v16 = vld [vmem:[#allocation98_spill] sm:$0xff] }
 0x5c6   : > { %7496 = vmatprep.mubr.msk.f32.mxu0 %vm2601_vm2, %v11138_v33  ;;  %v11195_v33 = vld [vmem:[#allocation85_spill] sm:$0xff] }
 0x5c8   : > { %7786 = vmatmul.mubr.msk.f32.gmra.mrb[122].mxu1 %vm2601_vm2, %v11139_v62  ;;  %v11196_v62 = vld [vmem:[#allocation105_spill] sm:$0xff] }
 0x5c9   : > { %7497 = vmatmul.mubr.msk.f32.gmra.mrb[128].mxu0 %vm2601_vm2, %v11140_v31  ;;  %7788 = vmatprep.mubr.msk.f32.mxu1 %vm2601_vm2, %v9503_v18  ;;  %v11165_v18 = vld [vmem:[#allocation32_spill] sm:$0xff]  ;;  %v11197_v31 = vld [vmem:[#allocation87_spill] sm:$0xff] }
 0x5ca   : > { %7499 = vmatprep.mubr.msk.f32.mxu0 %vm2601_vm2, %v11141_v14  ;;  %v11198_v14 = vld [vmem:[#allocation106_spill] sm:$0xff] }
 0x5cc   : > { %7789 = vmatmul.mubr.msk.f32.gmra.mrb[124].mxu1 %vm2601_vm2, %v9507_v13  ;;  %v11163_v13 = vld [vmem:[#allocation30_spill] sm:$0xff] }
 0x5cd   : > { %7500 = vmatmul.mubr.msk.f32.gmra.mrb[130].mxu0 %vm2601_vm2, %v11142_v26  ;;  %7791 = vmatprep.mubr.msk.f32.mxu1 %vm2601_vm2, %v9525_v63  ;;  %v11164_v63 = vld [vmem:[#allocation33_spill] sm:$0xff] }
 0x5ce   : > { %7502 = vmatprep.mubr.msk.f32.mxu0 %vm2601_vm2, %v11143_v54  ;;  %v11199_v26 = vld [vmem:[#allocation93_spill] sm:$0xff]  ;;  %v11200_v54 = vld [vmem:[#allocation123_spill] sm:$0xff] }
 0x5d0   : > { %7792 = vmatmul.mubr.msk.f32.gmra.mrb[126].mxu1 %vm2601_vm2, %v9533_v51  ;;  %v11166_v51 = vld [vmem:[#allocation34_spill] sm:$0xff] }
 0x5d1   : > { %7503 = vmatmul.mubr.msk.f32.gmra.mrb[132].mxu0 %vm2601_vm2, %v11144_v10  ;;  %7794 = vmatprep.mubr.msk.f32.mxu1 %vm2601_vm2, %v11145_v60  ;;  %v11202_v10 = vld [vmem:[#allocation124_spill] sm:$0xff]  ;;  %v11203_v60 = vld [vmem:[#allocation101_spill] sm:$0xff] }
 0x5d2   : > { %7505 = vmatprep.mubr.msk.f32.mxu0 %vm2601_vm2, %v9515_v7  ;;  %v11161_v7 = vld [vmem:[#allocation24_spill] sm:$0xff] }
 0x5d4   : > { %7795 = vmatmul.mubr.msk.f32.gmra.mrb[0].mxu1 %vm2601_vm2, %v11146_v49  ;;  %v11204_v49 = vld [vmem:[#allocation127_spill] sm:$0xff] }
 0x5d5   : > { %7506 = vmatmul.mubr.msk.f32.gmra.mrb[134].mxu0 %vm2601_vm2, %v9518_v46  ;;  %7797 = vmatprep.mubr.msk.f32.mxu1 %vm2601_vm2, %v11147_v36  ;;  %v11162_v46 = vld [vmem:[#allocation27_spill] sm:$0xff]  ;;  %v11206_v36 = vld [vmem:[#allocation128_spill] sm:$0xff] }
 0x5d6   : > { %7508 = vmatprep.mubr.msk.f32.mxu0 %vm2601_vm2, %v2552_v50  ;;  %v11201_v50 = vld [vmem:[#allocation95_spill] sm:$0xff] }
 0x5d8   : > { %7798 = vmatmul.mubr.msk.f32.gmra.mrb[2].mxu1 %vm2601_vm2, %v11148_v23  ;;  %v11208_v23 = vld [vmem:[#allocation131_spill] sm:$0xff] }
 0x5d9   : > { %7509 = vmatmul.mubr.msk.f32.gmra.mrb[136].mxu0 %vm2601_vm2, %v2553_v45  ;;  %7800 = vmatprep.mubr.msk.f32.mxu1 %vm2601_vm2, %v11149_v57  ;;  %v11207_v45 = vld [vmem:[#allocation109_spill] sm:$0xff]  ;;  %v11209_v57 = vld [vmem:[#allocation111_spill] sm:$0xff] }
 0x5da   : > { %7511 = vmatprep.mubr.msk.f32.mxu0 %vm2601_vm2, %v2584_v52  ;;  %v11205_v52 = vld [vmem:[#allocation103_spill] sm:$0xff] }
 0x5dc   : > { %7801 = vmatmul.mubr.msk.f32.gmra.mrb[4].mxu1 %vm2601_vm2, %v11150_v56  ;;  %v11211_v56 = vld [vmem:[#allocation115_spill] sm:$0xff] }
 0x5dd   : > { %7512 = vmatmul.mubr.msk.f32.gmra.mrb[138].mxu0 %vm2601_vm2, %v2585_v40  ;;  %7803 = vmatprep.mubr.msk.f32.mxu1 %vm2601_vm2, %v11151_v21  ;;  %v11210_v40 = vld [vmem:[#allocation132_spill] sm:$0xff]  ;;  %v11212_v21 = vld [vmem:[#allocation135_spill] sm:$0xff] }
 0x5de   : > { %7516 = vmatprep.mubr.msk.f32.mxu0 %vm2601_vm2, %v11152_v47  ;;  %v11213_v47 = vld [vmem:[#allocation117_spill] sm:$0xff] }
 0x5e0   : > { %7804 = vmatmul.mubr.msk.f32.gmra.mrb[6].mxu1 %vm2601_vm2, %v11153_v28  ;;  %v11214_v28 = vld [vmem:[#allocation136_spill] sm:$0xff] }
 0x5e1   : > { %7517 = vmatmul.mubr.msk.f32.vlgmr.msra.gmra.mrb[12].mxu0 %vm2601_vm2, %v11154_v29  ;;  %7806 = vmatprep.mubr.msk.f32.mxu1 %vm2601_vm2, %v11155_v55  ;;  %v11215_v29 = vld [vmem:[#allocation129_spill] sm:$0xff]  ;;  %v11216_v55 = vld [vmem:[#allocation139_spill] sm:$0xff] }
 0x5e2   : > { %7519 = vmatprep.mubr.msk.f32.mxu0 %vm2601_vm2, %v11156_v58  ;;  %v11217_v58 = vld [vmem:[#allocation130_spill] sm:$0xff] }
 0x5e4   : > { %7807 = vmatmul.mubr.msk.f32.gmra.mrb[8].mxu1 %vm2601_vm2, %v11157_v41  ;;  %v11218_v41 = vld [vmem:[#allocation140_spill] sm:$0xff] }
 0x5e5   : > { %7520 = vmatmul.mubr.msk.f32.gmra.mrb[14].mxu0 %vm2601_vm2, %v11158_v61  ;;  %7809 = vmatprep.mubr.msk.f32.mxu1 %vm2601_vm2, %v11159_v27  ;;  %v11219_v61 = vld [vmem:[#allocation133_spill] sm:$0xff]  ;;  %v11220_v27 = vld [vmem:[#allocation143_spill] sm:$0xff] }
 0x5e6   : > { %7522 = vmatprep.mubr.msk.f32.mxu0 %vm2601_vm2, %v11160_v20 }
 0x5e8   : > { %7810 = vmatmul.mubr.msk.f32.gmra.mrb[10].mxu1 %vm2601_vm2, %v11161_v7  ;;  %v11221_v7 = vld [vmem:[#allocation134_spill] sm:$0xff] }
 0x5e9   : > { %7523 = vmatmul.mubr.msk.f32.gmra.mrb[16].mxu0 %vm2601_vm2, %v11162_v46  ;;  %7812 = vmatprep.mubr.msk.f32.mxu1 %vm2601_vm2, %v11163_v13  ;;  %v11222_v13 = vld [vmem:[#allocation144_spill] sm:$0xff] }
 0x5ea   : > { %7525 = vmatprep.mubr.msk.f32.mxu0 %vm2601_vm2, %v11164_v63  ;;  %v11223_v63 = vld [vmem:[#allocation137_spill] sm:$0xff] }
 0x5ec   : > { %7813 = vmatmul.mubr.msk.f32.gmra.mrb[12].mxu1 %vm2601_vm2, %v11165_v18  ;;  %v11224_v18 = vld [vmem:[#allocation147_spill] sm:$0xff] }
 0x5ed   : > { %7526 = vmatmul.mubr.msk.f32.gmra.mrb[18].mxu0 %vm2601_vm2, %v11166_v51  ;;  %7815 = vmatprep.mubr.msk.f32.mxu1 %vm2601_vm2, %v11167_v35  ;;  %v11225_v35 = vld [vmem:[#allocation138_spill] sm:$0xff] }
 0x5ee   : > { %7528 = vmatprep.mubr.msk.f32.mxu0 %vm2601_vm2, %v11168_v39 }
 0x5f0   : > { %7816 = vmatmul.mubr.msk.f32.gmra.mrb[14].mxu1 %vm2601_vm2, %v11169_v34  ;;  %v11226_v34 = vld [vmem:[#allocation148_spill] sm:$0xff] }
 0x5f1   : > { %7529 = vmatmul.mubr.msk.f32.gmra.mrb[20].mxu0 %vm2601_vm2, %v11170_v42  ;;  %7818 = vmatprep.mubr.msk.f32.mxu1 %vm2601_vm2, %v11171_v38  ;;  %v11227_v42 = vld [vmem:[#allocation141_spill] sm:$0xff]  ;;  %v11228_v38 = vld [vmem:[#allocation151_spill] sm:$0xff] }
 0x5f2   : > { %7531 = vmatprep.mubr.msk.f32.mxu0 %vm2601_vm2, %v11172_v6 }
 0x5f4   : > { %7819 = vmatmul.mubr.msk.f32.gmra.mrb[16].mxu1 %vm2601_vm2, %v11173_v8  ;;  %v11229_v8 = vld [vmem:[#allocation142_spill] sm:$0xff] }
 0x5f5   : > { %7532 = vmatmul.mubr.msk.f32.gmra.mrb[22].mxu0 %vm2601_vm2, %v11174_v9  ;;  %7821 = vmatprep.mubr.msk.f32.mxu1 %vm2601_vm2, %v11175_v17  ;;  %v11230_v17 = vld [vmem:[#allocation152_spill] sm:$0xff] }
 0x5f6   : > { %7534 = vmatprep.mubr.msk.f32.mxu0 %vm2601_vm2, %v11176_v11  ;;  %v11231_v11 = vld [vmem:[#allocation145_spill] sm:$0xff] }
 0x5f8   : > { %7822 = vmatmul.mubr.msk.f32.gmra.mrb[18].mxu1 %vm2601_vm2, %v11177_v19  ;;  %v11232_v19 = vld [vmem:[#allocation155_spill] sm:$0xff] }
 0x5f9   : > { %7535 = vmatmul.mubr.msk.f32.gmra.mrb[24].mxu0 %vm2601_vm2, %v11178_v24  ;;  %7824 = vmatprep.mubr.msk.f32.mxu1 %vm2601_vm2, %v11179_v32  ;;  %v11233_v32 = vld [vmem:[#allocation146_spill] sm:$0xff] }
 0x5fa   : > { %7537 = vmatprep.mubr.msk.f32.mxu0 %vm2601_vm2, %v11180_v1 }
 0x5fc   : > { %7825 = vmatmul.mubr.msk.f32.gmra.mrb[20].mxu1 %vm2601_vm2, %v11181_v44  ;;  %v11234_v44 = vld [vmem:[#allocation156_spill] sm:$0xff] }
 0x5fd   : > { %7538 = vmatmul.mubr.msk.f32.gmra.mrb[26].mxu0 %vm2601_vm2, %v11182_v5  ;;  %7827 = vmatprep.mubr.msk.f32.mxu1 %vm2601_vm2, %v11183_v48  ;;  %v11235_v5 = vld [vmem:[#allocation149_spill] sm:$0xff]  ;;  %v11236_v48 = vld [vmem:[#allocation159_spill] sm:$0xff] }
 0x5fe   : > { %7540 = vmatprep.mubr.msk.f32.mxu0 %vm2601_vm2, %v11184_v4 }
 0x600   : > { %7828 = vmatmul.mubr.msk.f32.gmra.mrb[22].mxu1 %vm2601_vm2, %v11185_v15  ;;  %v11237_v15 = vld [vmem:[#allocation150_spill] sm:$0xff] }
 0x601   : > { %7541 = vmatmul.mubr.msk.f32.gmra.mrb[28].mxu0 %vm2601_vm2, %v11186_v30  ;;  %7830 = vmatprep.mubr.msk.f32.mxu1 %vm2601_vm2, %v11187_v0  ;;  %v11238_v0 = vld [vmem:[#allocation160_spill] sm:$0xff] }
 0x602   : > { %7543 = vmatprep.mubr.msk.f32.mxu0 %vm2601_vm2, %v11188_v2  ;;  %v11239_v2 = vld [vmem:[#allocation153_spill] sm:$0xff] }
 0x604   : > { %7831 = vmatmul.mubr.msk.f32.gmra.mrb[24].mxu1 %vm2601_vm2, %v11189_v25  ;;  %v11240_v25 = vld [vmem:[#allocation164_spill] sm:$0xff] }
 0x605   : > { %7544 = vmatmul.mubr.msk.f32.gmra.mrb[30].mxu0 %vm2601_vm2, %v11190_v3  ;;  %7833 = vmatprep.mubr.msk.f32.mxu1 %vm2601_vm2, %v11191_v53 }
 0x606   : > { %7546 = vmatprep.mubr.msk.f32.mxu0 %vm2601_vm2, %v11192_v12 }
 0x608   : > { %7834 = vmatmul.mubr.msk.f32.gmra.mrb[26].mxu1 %vm2601_vm2, %v11193_v43  ;;  %v11241_v43 = vld [vmem:[#allocation154_spill] sm:$0xff] }
 0x609   : > { %7547 = vmatmul.mubr.msk.f32.gmra.mrb[32].mxu0 %vm2601_vm2, %v11194_v16  ;;  %7836 = vmatprep.mubr.msk.f32.mxu1 %vm2601_vm2, %v11195_v33  ;;  %v11242_v33 = vld [vmem:[#allocation165_spill] sm:$0xff] }
 0x60a   : > { %7549 = vmatprep.mubr.msk.f32.mxu0 %vm2601_vm2, %v11196_v62  ;;  %v11243_v62 = vld [vmem:[#allocation157_spill] sm:$0xff] }
 0x60c   : > { %7837 = vmatmul.mubr.msk.f32.gmra.mrb[28].mxu1 %vm2601_vm2, %v11197_v31  ;;  %v11244_v31 = vld [vmem:[#allocation171_spill] sm:$0xff] }
 0x60d   : > { %7550 = vmatmul.mubr.msk.f32.gmra.mrb[34].mxu0 %vm2601_vm2, %v11198_v14  ;;  %7839 = vmatprep.mubr.msk.f32.mxu1 %vm2601_vm2, %v11199_v26 }
 0x60e   : > { %7552 = vmatprep.mubr.msk.f32.mxu0 %vm2601_vm2, %v11200_v54 }
 0x610   : > { %7840 = vmatmul.mubr.msk.f32.gmra.mrb[30].mxu1 %vm2601_vm2, %v11201_v50  ;;  %v11245_v50 = vld [vmem:[#allocation158_spill] sm:$0xff] }
 0x611   : > { %7553 = vmatmul.mubr.msk.f32.gmra.mrb[36].mxu0 %vm2601_vm2, %v11202_v10  ;;  %7842 = vmatprep.mubr.msk.f32.mxu1 %vm2601_vm2, %v11203_v60  ;;  %v11246_v60 = vld [vmem:[#allocation172_spill] sm:$0xff] }
 0x612   : > { %7555 = vmatprep.mubr.msk.f32.mxu0 %vm2601_vm2, %v11204_v49  ;;  %v11247_v49 = vld [vmem:[#allocation162_spill] sm:$0xff] }
 0x614   : > { %7843 = vmatmul.mubr.msk.f32.gmra.mrb[32].mxu1 %vm2601_vm2, %v11205_v52  ;;  %v11248_v52 = vld [vmem:[#allocation179_spill] sm:$0xff] }
 0x615   : > { %7556 = vmatmul.mubr.msk.f32.gmra.mrb[38].mxu0 %vm2601_vm2, %v11206_v36  ;;  %7845 = vmatprep.mubr.msk.f32.mxu1 %vm2601_vm2, %v11207_v45 }
 0x616   : > { %7558 = vmatprep.mubr.msk.f32.mxu0 %vm2601_vm2, %v11208_v23 }
 0x618   : > { %7846 = vmatmul.mubr.msk.f32.gmra.mrb[34].mxu1 %vm2601_vm2, %v11209_v57  ;;  %v11249_v57 = vld [vmem:[#allocation163_spill] sm:$0xff] }
 0x619   : > { %7559 = vmatmul.mubr.msk.f32.gmra.mrb[40].mxu0 %vm2601_vm2, %v11210_v40  ;;  %7848 = vmatprep.mubr.msk.f32.mxu1 %vm2601_vm2, %v11211_v56  ;;  %v11250_v56 = vld [vmem:[#allocation180_spill] sm:$0xff] }
 0x61a   : > { %7561 = vmatprep.mubr.msk.f32.mxu0 %vm2601_vm2, %v11212_v21  ;;  %v11251_v21 = vld [vmem:[#allocation168_spill] sm:$0xff] }
 0x61c   : > { %7849 = vmatmul.mubr.msk.f32.gmra.mrb[36].mxu1 %vm2601_vm2, %v11213_v47  ;;  %v11252_v47 = vld [vmem:[#allocation187_spill] sm:$0xff] }
 0x61d   : > { %7562 = vmatmul.mubr.msk.f32.gmra.mrb[42].mxu0 %vm2601_vm2, %v11214_v28  ;;  %7851 = vmatprep.mubr.msk.f32.mxu1 %vm2601_vm2, %v11215_v29 }
 0x61e   : > { %7564 = vmatprep.mubr.msk.f32.mxu0 %vm2601_vm2, %v11216_v55 }
 0x620   : > { %7852 = vmatmul.mubr.msk.f32.gmra.mrb[38].mxu1 %vm2601_vm2, %v11217_v58  ;;  %v11253_v58 = vld [vmem:[#allocation169_spill] sm:$0xff] }
 0x621   : > { %7565 = vmatmul.mubr.msk.f32.gmra.mrb[44].mxu0 %vm2601_vm2, %v11218_v41  ;;  %7854 = vmatprep.mubr.msk.f32.mxu1 %vm2601_vm2, %v11219_v61  ;;  %v11254_v61 = vld [vmem:[#allocation188_spill] sm:$0xff] }
 0x622   : > { %7567 = vmatprep.mubr.msk.f32.mxu0 %vm2601_vm2, %v11220_v27  ;;  %v11255_v27 = vld [vmem:[#allocation175_spill] sm:$0xff] }
 0x624   : > { %v9937_v20 = vpop.f32.mrb[68].mxu0  ;;  %7855 = vmatmul.mubr.msk.f32.gmra.mrb[40].mxu1 %vm2601_vm2, %v11221_v7  ;;  %v11256_v7 = vld [vmem:[#allocation195_spill] sm:$0xff] }
 0x625   : > { %v9941_v46 = vpop.f32.mrb[69].mxu0  ;;  %7568 = vmatmul.mubr.msk.f32.gmra.mrb[46].mxu0 %vm2601_vm2, %v11222_v13  ;;  %7857 = vmatprep.mubr.msk.f32.mxu1 %vm2601_vm2, %v11223_v63 }
 0x626   : > { %7570 = vmatprep.mubr.msk.f32.mxu0 %vm2601_vm2, %v11224_v18 }
 0x628   : > { %v9949_v51 = vpop.f32.mrb[70].mxu0  ;;  %7858 = vmatmul.mubr.msk.f32.gmra.mrb[42].mxu1 %vm2601_vm2, %v11225_v35  ;;  %v11257_v35 = vld [vmem:[#allocation177_spill] sm:$0xff] }
 0x629   : > { %v9953_v39 = vpop.f32.mrb[71].mxu0  ;;  %7571 = vmatmul.mubr.msk.f32.gmra.mrb[48].mxu0 %vm2601_vm2, %v11226_v34  ;;  %7860 = vmatprep.mubr.msk.f32.mxu1 %vm2601_vm2, %v11227_v42  ;;  %v11258_v42 = vld [vmem:[#allocation196_spill] sm:$0xff] }
 0x62a   : > { %7573 = vmatprep.mubr.msk.f32.mxu0 %vm2601_vm2, %v11228_v38  ;;  %v11259_v38 = vld [vmem:[#allocation183_spill] sm:$0xff] }
 0x62c   : > { %v9961_v6 = vpop.f32.mrb[72].mxu0  ;;  %7861 = vmatmul.mubr.msk.f32.gmra.mrb[44].mxu1 %vm2601_vm2, %v11229_v8  ;;  %v11260_v8 = vld [vmem:[#allocation201_spill] sm:$0xff] }
 0x62d   : > { %v9965_v9 = vpop.f32.mrb[73].mxu0  ;;  %7574 = vmatmul.mubr.msk.f32.gmra.mrb[50].mxu0 %vm2601_vm2, %v11230_v17  ;;  %7863 = vmatprep.mubr.msk.f32.mxu1 %vm2601_vm2, %v11231_v11 }
 0x62e   : > { %7576 = vmatprep.mubr.msk.f32.mxu0 %vm2601_vm2, %v11232_v19 }
 0x630   : > { %v9973_v24 = vpop.f32.mrb[74].mxu0  ;;  %7864 = vmatmul.mubr.msk.f32.gmra.mrb[46].mxu1 %vm2601_vm2, %v11233_v32  ;;  %v11261_v32 = vld [vmem:[#allocation185_spill] sm:$0xff] }
 0x631   : > { %v9977_v1 = vpop.f32.mrb[75].mxu0  ;;  %7577 = vmatmul.mubr.msk.f32.gmra.mrb[52].mxu0 %vm2601_vm2, %v11234_v44  ;;  %7866 = vmatprep.mubr.msk.f32.mxu1 %vm2601_vm2, %v11235_v5  ;;  %v11262_v5 = vld [vmem:[#allocation191_spill] sm:$0xff] }
 0x632   : > { %7579 = vmatprep.mubr.msk.f32.mxu0 %vm2601_vm2, %v11236_v48 }
 0x634   : > { %v9985_v4 = vpop.f32.mrb[76].mxu0  ;;  %7867 = vmatmul.mubr.msk.f32.gmra.mrb[48].mxu1 %vm2601_vm2, %v11237_v15 }
 0x635   : > { %v9989_v30 = vpop.f32.mrb[77].mxu0  ;;  %7580 = vmatmul.mubr.msk.f32.gmra.mrb[54].mxu0 %vm2601_vm2, %v11238_v0  ;;  %7869 = vmatprep.mubr.msk.f32.mxu1 %vm2601_vm2, %v11239_v2  ;;  %v11263_v2 = vld [vmem:[#allocation193_spill] sm:$0xff] }
 0x636   : > { %7582 = vmatprep.mubr.msk.f32.mxu0 %vm2601_vm2, %v11240_v25 }
 0x637   : > { %v9997_v3 = vpop.f32.mrb[72].mxu1 }
 0x638   : > { %v9999_v53 = vpop.f32.mrb[78].mxu0  ;;  %v10001_v12 = vpop.f32.mrb[73].mxu1  ;;  %7870 = vmatmul.mubr.msk.f32.gmra.mrb[50].mxu1 %vm2601_vm2, %v11241_v43  ;;  %v11264_v43 = vld [vmem:[#allocation199_spill] sm:$0xff] }
 0x639   : > { %v10005_v16 = vpop.f32.mrb[79].mxu0  ;;  %7583 = vmatmul.mubr.msk.f32.gmra.mrb[56].mxu0 %vm2601_vm2, %v11242_v33  ;;  %7872 = vmatprep.mubr.msk.f32.mxu1 %vm2601_vm2, %v11243_v62 }
 0x63a   : > { %7585 = vmatprep.mubr.msk.f32.mxu0 %vm2601_vm2, %v11244_v31 }
 0x63b   : > { %v10013_v14 = vpop.f32.mrb[74].mxu1 }
 0x63c   : > { %v10015_v26 = vpop.f32.mrb[80].mxu0  ;;  %v10017_v54 = vpop.f32.mrb[75].mxu1  ;;  %7873 = vmatmul.mubr.msk.f32.gmra.mrb[52].mxu1 %vm2601_vm2, %v11245_v50  ;;  %v11265_v50 = vld [vmem:[#allocation200_spill] sm:$0xff] }
 0x63d   : > { %v10021_v10 = vpop.f32.mrb[81].mxu0  ;;  %7586 = vmatmul.mubr.msk.f32.gmra.mrb[58].mxu0 %vm2601_vm2, %v11246_v60  ;;  %7875 = vmatprep.mubr.msk.f32.mxu1 %vm2601_vm2, %v11247_v49 }
 0x63e   : > { %7588 = vmatprep.mubr.msk.f32.mxu0 %vm2601_vm2, %v11248_v52  ;;  %v2586_v52 = vpop.trf.xlu1 }
 0x63f   : > { %v10029_v36 = vpop.f32.mrb[76].mxu1 }
 0x640   : > { %v10031_v45 = vpop.f32.mrb[82].mxu0  ;;  %v10033_v23 = vpop.f32.mrb[77].mxu1  ;;  %7876 = vmatmul.mubr.msk.f32.gmra.mrb[54].mxu1 %vm2601_vm2, %v11249_v57 }
 0x641   : > { %v10037_v40 = vpop.f32.mrb[83].mxu0  ;;  %7589 = vmatmul.mubr.msk.f32.gmra.mrb[60].mxu0 %vm2601_vm2, %v11250_v56  ;;  %7878 = vmatprep.mubr.msk.f32.mxu1 %vm2601_vm2, %v11251_v21 }
 0x642   : > { %7591 = vmatprep.mubr.msk.f32.mxu0 %vm2601_vm2, %v11252_v47 }
 0x643   : > { %v10045_v28 = vpop.f32.mrb[78].mxu1 }
 0x644   : > { %v10047_v29 = vpop.f32.mrb[84].mxu0  ;;  %v10049_v55 = vpop.f32.mrb[79].mxu1  ;;  %7879 = vmatmul.mubr.msk.f32.gmra.mrb[56].mxu1 %vm2601_vm2, %v11253_v58 }
 0x645   : > { %v10053_v41 = vpop.f32.mrb[85].mxu0  ;;  %7592 = vmatmul.mubr.msk.f32.gmra.mrb[62].mxu0 %vm2601_vm2, %v11254_v61  ;;  %7881 = vmatprep.mubr.msk.f32.mxu1 %vm2601_vm2, %v11255_v27 }
 0x646   : > { %7594 = vmatprep.mubr.msk.f32.mxu0 %vm2601_vm2, %v11256_v7  ;;  %v2587_v7 = vpop.trf.xlu1 }
 0x647   : > { %v10061_v13 = vpop.f32.mrb[80].mxu1 }
 0x648   : > { %v10063_v63 = vpop.f32.mrb[86].mxu0  ;;  %v10065_v18 = vpop.f32.mrb[81].mxu1  ;;  %7882 = vmatmul.mubr.msk.f32.gmra.mrb[58].mxu1 %vm2601_vm2, %v11257_v35 }
 0x649   : > { %v10069_v34 = vpop.f32.mrb[87].mxu0  ;;  %7595 = vmatmul.mubr.msk.f32.gmra.mrb[64].mxu0 %vm2601_vm2, %v11258_v42  ;;  %7884 = vmatprep.mubr.msk.f32.mxu1 %vm2601_vm2, %v11259_v38 }
 0x64a   : > { %7597 = vmatprep.mubr.msk.f32.mxu0 %vm2601_vm2, %v11260_v8 }
 0x64b   : > { %v10077_v17 = vpop.f32.mrb[82].mxu1 }
 0x64c   : > { %v10079_v11 = vpop.f32.mrb[88].mxu0  ;;  %v10081_v19 = vpop.f32.mrb[83].mxu1  ;;  %7885 = vmatmul.mubr.msk.f32.gmra.mrb[60].mxu1 %vm2601_vm2, %v11261_v32 }
 0x64d   : > { %v10085_v44 = vpop.f32.mrb[89].mxu0  ;;  %7598 = vmatmul.mubr.msk.f32.gmra.mrb[66].mxu0 %vm2601_vm2, %v9513_v59  ;;  %7887 = vmatprep.mubr.msk.f32.mxu1 %vm2601_vm2, %v11262_v5  ;;  %v2554_v59 = vpop.trf.xlu0 }
 0x64f   : > { %v10091_v48 = vpop.f32.mrb[84].mxu1 }
 0x650   : > { %v10093_v15 = vpop.f32.mrb[90].mxu0  ;;  %v10095_v0 = vpop.f32.mrb[85].mxu1  ;;  %7888 = vmatmul.mubr.msk.f32.gmra.mrb[62].mxu1 %vm2601_vm2, %v11263_v2 }
 0x651   : > { %v10099_v25 = vpop.f32.mrb[91].mxu0  ;;  %7890 = vmatprep.mubr.msk.f32.mxu1 %vm2601_vm2, %v11264_v43  ;;  %v2555_v47 = vpop.trf.xlu0 }
 0x653   : > { %v10103_v33 = vpop.f32.mrb[86].mxu1 }
 0x654   : > { %v10105_v62 = vpop.f32.mrb[92].mxu0  ;;  %v10107_v31 = vpop.f32.mrb[87].mxu1  ;;  %7891 = vmatmul.mubr.msk.f32.gmra.mrb[64].mxu1 %vm2601_vm2, %v11265_v50 }
 0x655   : > { %v10111_v60 = vpop.f32.mrb[93].mxu0  ;;  %7893 = vmatprep.mubr.msk.f32.mxu1 %vm2601_vm2, %v9523_v37 }
 0x657   : > { %v10115_v49 = vpop.f32.mrb[88].mxu1 }
 0x658   : > { %v10117_v57 = vpop.f32.mrb[94].mxu0  ;;  %v10119_v56 = vpop.f32.mrb[89].mxu1  ;;  %7894 = vmatmul.mubr.msk.f32.gmra.mrb[66].mxu1 %vm2601_vm2, %v9531_v22 }
 0x659   : > { %v10123_v21 = vpop.f32.mrb[95].mxu0  ;;  %7896 = vmatprep.mubr.msk.f32.mxu1 %vm2601_vm2, %v2554_v59 }
 0x65b   : > { %v10126_v58 = vpop.f32.mrb[90].mxu1 }
 0x65c   : > { %v10128_v61 = vpop.f32.mrb[96].mxu0  ;;  %v10130_v37 = vpop.f32.mrb[91].mxu1  ;;  %7897 = vmatmul.mubr.msk.f32.gmra.mrb[68].mxu1 %vm2601_vm2, %v2555_v47 }
 0x65d   : > { %11266 = vst [vmem:[#allocation25_spill] sm:$0xff] %v10128_v61  ;;  %v10133_v27 = vpop.f32.mrb[97].mxu0  ;;  %7899 = vmatprep.mubr.msk.f32.mxu1 %vm2601_vm2, %v2586_v52 }
 0x65e   : > { %11267 = vst [vmem:[#allocation28_spill] sm:$0xff] %v10133_v27 }
 0x65f   : > { %v10136_v35 = vpop.f32.mrb[92].mxu1 }
 0x660   : > { %v10138_v22 = vpop.f32.mrb[98].mxu0  ;;  %v10140_v42 = vpop.f32.mrb[93].mxu1  ;;  %7900 = vmatmul.mubr.msk.f32.gmra.mrb[70].mxu1 %vm2601_vm2, %v2587_v7 }
 0x661   : > { %11268 = vst [vmem:[#allocation29_spill] sm:$0xff] %v10138_v22  ;;  %v10143_v38 = vpop.f32.mrb[99].mxu0 }
 0x662   : > { %11269 = vst [vmem:[#allocation35_spill] sm:$0xff] %v10143_v38 }
 0x663   : > { %v10145_v8 = vpop.f32.mrb[94].mxu1 }
 0x664   : > { %11270 = vst [vmem:[#allocation31_spill] sm:$0xff] %v10145_v8  ;;  %v10147_v32 = vpop.f32.mrb[100].mxu0  ;;  %v10149_v5 = vpop.f32.mrb[95].mxu1 }
 0x665   : > { %11271 = vst [vmem:[#allocation36_spill] sm:$0xff] %v10147_v32  ;;  %11272 = vst [vmem:[#allocation38_spill] sm:$0xff] %v10149_v5  ;;  %v10151_v2 = vpop.f32.mrb[101].mxu0 }
 0x666   : > { %11273 = vst [vmem:[#allocation43_spill] sm:$0xff] %v10151_v2 }
 0x667   : > { %v10153_v43 = vpop.f32.mrb[96].mxu1 }
 0x668   : > { %11274 = vst [vmem:[#allocation40_spill] sm:$0xff] %v10153_v43  ;;  %v10155_v59 = vpop.f32.mrb[102].mxu0  ;;  %v10157_v50 = vpop.f32.mrb[97].mxu1 }
 0x669   : > { %11275 = vst [vmem:[#allocation44_spill] sm:$0xff] %v10155_v59  ;;  %11276 = vst [vmem:[#allocation45_spill] sm:$0xff] %v10157_v50  ;;  %v10159_v52 = vpop.f32.mrb[103].mxu0 }
 0x66a   : > { %11277 = vst [vmem:[#allocation51_spill] sm:$0xff] %v10159_v52 }
 0x66b   : > { %v10161_v47 = vpop.f32.mrb[98].mxu1 }
 0x66c   : > { %11278 = vst [vmem:[#allocation47_spill] sm:$0xff] %v10161_v47  ;;  %v10163_v7 = vpop.f32.mrb[104].mxu0  ;;  %v10165_v38 = vpop.f32.mrb[99].mxu1 }
 0x66d   : > { %11279 = vst [vmem:[#allocation52_spill] sm:$0xff] %v10163_v7  ;;  %11280 = vst [vmem:[#allocation54_spill] sm:$0xff] %v10165_v38  ;;  %v10167_v22 = vpop.f32.mrb[105].mxu0 }
 0x66e   : > { %11281 = vst [vmem:[#allocation66_spill] sm:$0xff] %v10167_v22 }
 0x66f   : > { %v10169_v32 = vpop.f32.mrb[100].mxu1 }
 0x670   : > { %11282 = vst [vmem:[#allocation56_spill] sm:$0xff] %v10169_v32  ;;  %v10171_v5 = vpop.f32.mrb[106].mxu0  ;;  %v10173_v2 = vpop.f32.mrb[101].mxu1 }
 0x671   : > { %11283 = vst [vmem:[#allocation68_spill] sm:$0xff] %v10171_v5  ;;  %11284 = vst [vmem:[#allocation62_spill] sm:$0xff] %v10173_v2  ;;  %v10175_v43 = vpop.f32.mrb[107].mxu0 }
 0x672   : > { %11285 = vst [vmem:[#allocation59_spill] sm:$0xff] %v10175_v43 }
 0x673   : > { %v10177_v59 = vpop.f32.mrb[102].mxu1 }
 0x674   : > { %11286 = vst [vmem:[#allocation64_spill] sm:$0xff] %v10177_v59  ;;  %v10179_v50 = vpop.f32.mrb[108].mxu0  ;;  %v10181_v52 = vpop.f32.mrb[103].mxu1 }
 0x675   : > { %11287 = vst [vmem:[#allocation60_spill] sm:$0xff] %v10179_v50  ;;  %11288 = vst [vmem:[#allocation78_spill] sm:$0xff] %v10181_v52  ;;  %v10183_v47 = vpop.f32.mrb[109].mxu0 }
 0x676   : > { %11289 = vst [vmem:[#allocation65_spill] sm:$0xff] %v10183_v47 }
 0x677   : > { %v10185_v7 = vpop.f32.mrb[104].mxu1 }
 0x678   : > { %11290 = vst [vmem:[#allocation80_spill] sm:$0xff] %v10185_v7  ;;  %v10187_v38 = vpop.f32.mrb[110].mxu0  ;;  %v10189_v22 = vpop.f32.mrb[105].mxu1 }
 0x679   : > { %11291 = vst [vmem:[#allocation67_spill] sm:$0xff] %v10187_v38  ;;  %11292 = vst [vmem:[#allocation86_spill] sm:$0xff] %v10189_v22  ;;  %v10191_v32 = vpop.f32.mrb[111].mxu0 }
 0x67a   : > { %11293 = vst [vmem:[#allocation75_spill] sm:$0xff] %v10191_v32 }
 0x67b   : > { %v10193_v5 = vpop.f32.mrb[106].mxu1 }
 0x67c   : > { %11294 = vst [vmem:[#allocation88_spill] sm:$0xff] %v10193_v5  ;;  %v10195_v2 = vpop.f32.mrb[112].mxu0  ;;  %v10197_v43 = vpop.f32.mrb[107].mxu1 }
 0x67d   : > { %11295 = vst [vmem:[#allocation76_spill] sm:$0xff] %v10195_v2  ;;  %11296 = vst [vmem:[#allocation94_spill] sm:$0xff] %v10197_v43  ;;  %v10199_v59 = vpop.f32.mrb[113].mxu0 }
 0x67e   : > { %11297 = vst [vmem:[#allocation83_spill] sm:$0xff] %v10199_v59 }
 0x67f   : > { %v10201_v50 = vpop.f32.mrb[108].mxu1 }
 0x680   : > { %11298 = vst [vmem:[#allocation96_spill] sm:$0xff] %v10201_v50  ;;  %v10203_v52 = vpop.f32.mrb[114].mxu0  ;;  %v10205_v47 = vpop.f32.mrb[109].mxu1 }
 0x681   : > { %11299 = vst [vmem:[#allocation84_spill] sm:$0xff] %v10203_v52  ;;  %11300 = vst [vmem:[#allocation102_spill] sm:$0xff] %v10205_v47  ;;  %v10207_v7 = vpop.f32.mrb[115].mxu0 }
 0x682   : > { %11301 = vst [vmem:[#allocation91_spill] sm:$0xff] %v10207_v7 }
 0x683   : > { %v10209_v38 = vpop.f32.mrb[110].mxu1 }
 0x684   : > { %11302 = vst [vmem:[#allocation104_spill] sm:$0xff] %v10209_v38  ;;  %v10211_v22 = vpop.f32.mrb[116].mxu0  ;;  %v10213_v32 = vpop.f32.mrb[111].mxu1 }
 0x685   : > { %11303 = vst [vmem:[#allocation92_spill] sm:$0xff] %v10211_v22  ;;  %11304 = vst [vmem:[#allocation110_spill] sm:$0xff] %v10213_v32  ;;  %v10215_v5 = vpop.f32.mrb[117].mxu0 }
 0x686   : > { %11305 = vst [vmem:[#allocation99_spill] sm:$0xff] %v10215_v5 }
 0x687   : > { %v10217_v2 = vpop.f32.mrb[112].mxu1 }
 0x688   : > { %11306 = vst [vmem:[#allocation112_spill] sm:$0xff] %v10217_v2  ;;  %v10219_v43 = vpop.f32.mrb[118].mxu0  ;;  %v10221_v59 = vpop.f32.mrb[113].mxu1 }
 0x689   : > { %11307 = vst [vmem:[#allocation100_spill] sm:$0xff] %v10219_v43  ;;  %11308 = vst [vmem:[#allocation107_spill] sm:$0xff] %v10221_v59  ;;  %v10223_v50 = vpop.f32.mrb[119].mxu0 }
 0x68a   : > { %11309 = vst [vmem:[#allocation108_spill] sm:$0xff] %v10223_v50 }
 0x68b   : > { %v10225_v52 = vpop.f32.mrb[114].mxu1 }
 0x68c   : > { %11310 = vst [vmem:[#allocation113_spill] sm:$0xff] %v10225_v52  ;;  %v10227_v47 = vpop.f32.mrb[120].mxu0  ;;  %v10229_v7 = vpop.f32.mrb[115].mxu1 }
 0x68d   : > { %11311 = vst [vmem:[#allocation114_spill] sm:$0xff] %v10227_v47  ;;  %11312 = vst [vmem:[#allocation170_spill] sm:$0xff] %v10229_v7  ;;  %v10231_v38 = vpop.f32.mrb[121].mxu0 }
 0x68e   : > { %11313 = vst [vmem:[#allocation161_spill] sm:$0xff] %v10231_v38 }
 0x68f   : > { %v10233_v22 = vpop.f32.mrb[116].mxu1 }
 0x690   : > { %11314 = vst [vmem:[#allocation176_spill] sm:$0xff] %v10233_v22  ;;  %v10235_v32 = vpop.f32.mrb[122].mxu0  ;;  %v10237_v5 = vpop.f32.mrb[117].mxu1 }
 0x691   : > { %11315 = vst [vmem:[#allocation166_spill] sm:$0xff] %v10235_v32  ;;  %11316 = vst [vmem:[#allocation178_spill] sm:$0xff] %v10237_v5  ;;  %v10239_v2 = vpop.f32.mrb[123].mxu0 }
 0x692   : > { %11317 = vst [vmem:[#allocation167_spill] sm:$0xff] %v10239_v2 }
 0x693   : > { %v10241_v43 = vpop.f32.mrb[118].mxu1 }
 0x694   : > { %11318 = vst [vmem:[#allocation184_spill] sm:$0xff] %v10241_v43  ;;  %v10243_v59 = vpop.f32.mrb[124].mxu0  ;;  %v10245_v50 = vpop.f32.mrb[119].mxu1 }
 0x695   : > { %11319 = vst [vmem:[#allocation173_spill] sm:$0xff] %v10243_v59  ;;  %11320 = vst [vmem:[#allocation186_spill] sm:$0xff] %v10245_v50  ;;  %v10247_v52 = vpop.f32.mrb[125].mxu0 }
 0x696   : > { %11321 = vst [vmem:[#allocation174_spill] sm:$0xff] %v10247_v52 }
 0x697   : > { %v10249_v47 = vpop.f32.mrb[120].mxu1 }
 0x698   : > { %11322 = vst [vmem:[#allocation192_spill] sm:$0xff] %v10249_v47  ;;  %v10251_v7 = vpop.f32.mrb[126].mxu0  ;;  %v10253_v38 = vpop.f32.mrb[121].mxu1 }
 0x699   : > { %11323 = vst [vmem:[#allocation181_spill] sm:$0xff] %v10251_v7  ;;  %11324 = vst [vmem:[#allocation194_spill] sm:$0xff] %v10253_v38  ;;  %v10255_v32 = vpop.f32.mrb[127].mxu0 }
 0x69a   : > { %11325 = vst [vmem:[#allocation182_spill] sm:$0xff] %v10255_v32 }
 0x69b   : > { %v10257_v5 = vpop.f32.mrb[122].mxu1 }
 0x69c   : > { %11326 = vst [vmem:[#allocation189_spill] sm:$0xff] %v10257_v5  ;;  %v10259_v2 = vpop.f32.mrb[128].mxu0  ;;  %v10261_v43 = vpop.f32.mrb[123].mxu1 }
 0x69d   : > { %11327 = vst [vmem:[#allocation190_spill] sm:$0xff] %v10259_v2  ;;  %11328 = vst [vmem:[#allocation197_spill] sm:$0xff] %v10261_v43  ;;  %v10263_v59 = vpop.f32.mrb[129].mxu0  ;;  %v10281_v43 = vld [vmem:[#allocation8] ss:$0 sm:$0xff] }
 0x69e   : > { %11329 = vst [vmem:[#allocation198_spill] sm:$0xff] %v10263_v59 }
 0x69f   : > { %v10265_v50 = vpop.f32.mrb[124].mxu1 }
 0x6a0   : > { %11330 = vst [vmem:[#allocation116_spill] sm:$0xff] %v10265_v50  ;;  %v10267_v52 = vpop.f32.mrb[130].mxu0  ;;  %v10269_v47 = vpop.f32.mrb[125].mxu1 }
 0x6a1   : > { %11331 = vst [vmem:[#allocation118_spill] sm:$0xff] %v10267_v52  ;;  %11332 = vst [vmem:[#allocation119_spill] sm:$0xff] %v10269_v47  ;;  %v10271_v7 = vpop.f32.mrb[131].mxu0 }
 0x6a2   : > { %11333 = vst [vmem:[#allocation121_spill] sm:$0xff] %v10271_v7 }
 0x6a3   : > { %v10273_v38 = vpop.f32.mrb[126].mxu1 }
 0x6a4   : > { %11334 = vst [vmem:[#allocation120_spill] sm:$0xff] %v10273_v38  ;;  %v10275_v22 = vpop.f32.mrb[132].mxu0  ;;  %v10277_v32 = vpop.f32.mrb[127].mxu1 }
 0x6a5   : > { %11335 = vst [vmem:[#allocation122_spill] sm:$0xff] %v10275_v22  ;;  %11336 = vst [vmem:[#allocation125_spill] sm:$0xff] %v10277_v32  ;;  %v10279_v5 = vpop.f32.mrb[133].mxu0 }
 0x6a6   : > { %11337 = vst [vmem:[#allocation17_spill] sm:$0xff] %v10279_v5 }
 0x6a7   : > { %v7796_v2 = vpop.f32.mrb[0].mxu1 }
 0x6a8   : > { %v7964_v59 = vadd.f32 %v7796_v2, %v9937_v20  ;;  %v10285_v50 = vpop.f32.mrb[134].mxu0  ;;  %v5522_v52 = vpop.f32.mrb[1].mxu1 }
 0x6a9   : > { %11338 = vst [vmem:[#allocation126_spill] sm:$0xff] %v10285_v50  ;;  %v7965_v47 = vadd.f32 %v5522_v52, %v9941_v46  ;;  %v10288_v7 = vpop.f32.mrb[135].mxu0 }
 0x6aa   : > { %v6073_v38 = vadd.f32 %v7964_v59, %v10281_v43 }
 0x6ab   : > { %v6072_v22 = vadd.f32 %v7965_v47, %v10281_v43  ;;  %v7799_v32 = vpop.f32.mrb[2].mxu1 }
 0x6ac   : > { %v6201_v5 = vmax.f32 %v6073_v38, 0.0  ;;  %v7966_v27 = vadd.f32 %v7799_v32, %v9949_v51  ;;  %v5532_v8 = vpop.f32.mrb[3].mxu1  ;;  %v10293_v61 = vpop.f32.mrb[136].mxu0 }
 0x6ad   : > { %v6200_v20 = vmax.f32 %v6072_v22, 0.0  ;;  %v7967_v2 = vadd.f32 %v5532_v8, %v9953_v39  ;;  %v10296_v50 = vpop.f32.mrb[137].mxu0 }
 0x6ae   : > { %6330 = vst.msk [vmem:[%s10298_s29 + $0x1c8] sm:$0xff] %vm6272_vm3, %v6201_v5  ;;  %v6075_v46 = vadd.f32 %v7966_v27, %v10281_v43 }
 0x6af   : > { %6329 = vst.msk [vmem:[%s10298_s29 + $0x1c0] sm:$0xff] %vm6272_vm3, %v6200_v20  ;;  %v6074_v51 = vadd.f32 %v7967_v2, %v10281_v43  ;;  %v7802_v38 = vpop.f32.mrb[4].mxu1 }
 0x6b0   : > { %v6203_v22 = vmax.f32 %v6075_v46, 0.0  ;;  %v7968_v39 = vadd.f32 %v7802_v38, %v9961_v6  ;;  %v5542_v8 = vpop.f32.mrb[5].mxu1  ;;  %v10307_v32 = vpop.f32.mrb[138].mxu0 }
 0x6b1   : > { %v6202_v59 = vmax.f32 %v6074_v51, 0.0  ;;  %v7969_v52 = vadd.f32 %v5542_v8, %v9965_v9  ;;  %v10310_v47 = vpop.f32.mrb[139].mxu0 }
 0x6b2   : > { %11339 = vst [vmem:[#allocation18_spill] sm:$0xff] %v10310_v47  ;;  %6332 = vst.msk [vmem:[%s10298_s29 + $0x1d8] sm:$0xff] %vm6272_vm3, %v6203_v22  ;;  %v6077_v27 = vadd.f32 %v7968_v39, %v10281_v43 }
 0x6b3   : > { %6331 = vst.msk [vmem:[%s10298_s29 + $0x1d0] sm:$0xff] %vm6272_vm3, %v6202_v59  ;;  %v6076_v5 = vadd.f32 %v7969_v52, %v10281_v43  ;;  %v7805_v20 = vpop.f32.mrb[6].mxu1 }
 0x6b4   : > { %v6205_v6 = vmax.f32 %v6077_v27, 0.0  ;;  %v7970_v2 = vadd.f32 %v7805_v20, %v9973_v24  ;;  %v7518_v46 = vpop.f32.mrb[12].mxu0  ;;  %v5552_v51 = vpop.f32.mrb[7].mxu1 }
 0x6b5   : > { %v6204_v38 = vmax.f32 %v6076_v5, 0.0  ;;  %v7908_v9 = vadd.f32 %v9997_v3, %v7518_v46  ;;  %v7971_v8 = vadd.f32 %v5552_v51, %v9977_v1  ;;  %v4148_v47 = vpop.f32.mrb[13].mxu0 }
 0x6b6   : > { %6334 = vst.msk [vmem:[%s10298_s29 + $0x1e8] sm:$0xff] %vm6272_vm3, %v6205_v6  ;;  %v6079_v22 = vadd.f32 %v7970_v2, %v10281_v43  ;;  %v7909_v39 = vadd.f32 %v10001_v12, %v4148_v47 }
 0x6b7   : > { %6333 = vst.msk [vmem:[%s10298_s29 + $0x1e0] sm:$0xff] %vm6272_vm3, %v6204_v38  ;;  %v6017_v59 = vadd.f32 %v7908_v9, %v10281_v43  ;;  %v6078_v24 = vadd.f32 %v7971_v8, %v10281_v43  ;;  %v7808_v52 = vpop.f32.mrb[8].mxu1 }
 0x6b8   : > { %v6207_v3 = vmax.f32 %v6079_v22, 0.0  ;;  %v6016_v1 = vadd.f32 %v7909_v39, %v10281_v43  ;;  %v7972_v27 = vadd.f32 %v7808_v52, %v9985_v4  ;;  %v7521_v5 = vpop.f32.mrb[14].mxu0  ;;  %v5562_v20 = vpop.f32.mrb[9].mxu1 }
 0x6b9   : > { %v6145_v6 = vmax.f32 %v6017_v59, 0.0  ;;  %v6206_v2 = vmax.f32 %v6078_v24, 0.0  ;;  %v7910_v12 = vadd.f32 %v10013_v14, %v7521_v5  ;;  %v7973_v47 = vadd.f32 %v5562_v20, %v9989_v30  ;;  %v4158_v46 = vpop.f32.mrb[15].mxu0 }
 0x6ba   : > { %6336 = vst.msk [vmem:[%s10298_s29 + $0x1f8] sm:$0xff] %vm6272_vm3, %v6207_v3  ;;  %v6144_v51 = vmax.f32 %v6016_v1, 0.0  ;;  %v6081_v38 = vadd.f32 %v7972_v27, %v10281_v43  ;;  %v7911_v9 = vadd.f32 %v10017_v54, %v4158_v46 }
 0x6bb   : > { %6274 = vst.msk [vmem:[%s10298_s29 + $0x8] sm:$0xff] %vm6272_vm3, %v6145_v6  ;;  %6335 = vst.msk [vmem:[%s10298_s29 + $0x1f0] sm:$0xff] %vm6272_vm3, %v6206_v2  ;;  %v6019_v4 = vadd.f32 %v7910_v12, %v10281_v43  ;;  %v6080_v8 = vadd.f32 %v7973_v47, %v10281_v43  ;;  %v7811_v14 = vpop.f32.mrb[10].mxu1 }
 0x6bc   : > { %6273 = vst.msk [vmem:[%s10298_s29] sm:$0xff] %vm6272_vm3, %v6144_v51  ;;  %v6209_v30 = vmax.f32 %v6081_v38, 0.0  ;;  %v6018_v22 = vadd.f32 %v7911_v9, %v10281_v43  ;;  %v7974_v39 = vadd.f32 %v7811_v14, %v9999_v53  ;;  %v7524_v54 = vpop.f32.mrb[16].mxu0  ;;  %v5572_v59 = vpop.f32.mrb[11].mxu1 }
 0x6bd   : > { %v6147_v24 = vmax.f32 %v6019_v4, 0.0  ;;  %v6208_v52 = vmax.f32 %v6080_v8, 0.0  ;;  %v7912_v3 = vadd.f32 %v10029_v36, %v7524_v54  ;;  %v7975_v1 = vadd.f32 %v5572_v59, %v10005_v16  ;;  %v4168_v27 = vpop.f32.mrb[17].mxu0 }
 0x6be   : > { %6338 = vst.msk [vmem:[%s10298_s29 + $0x208] sm:$0xff] %vm6272_vm3, %v6209_v30  ;;  %v6146_v5 = vmax.f32 %v6018_v22, 0.0  ;;  %v6083_v20 = vadd.f32 %v7974_v39, %v10281_v43  ;;  %v7913_v6 = vadd.f32 %v10033_v23, %v4168_v27 }
 0x6bf   : > { %6276 = vst.msk [vmem:[%s10298_s29 + $0x18] sm:$0xff] %vm6272_vm3, %v6147_v24  ;;  %6337 = vst.msk [vmem:[%s10298_s29 + $0x200] sm:$0xff] %vm6272_vm3, %v6208_v52  ;;  %v6021_v53 = vadd.f32 %v7912_v3, %v10281_v43  ;;  %v6082_v2 = vadd.f32 %v7975_v1, %v10281_v43  ;;  %v7814_v36 = vpop.f32.mrb[12].mxu1 }
 0x6c0   : > { %6275 = vst.msk [vmem:[%s10298_s29 + $0x10] sm:$0xff] %vm6272_vm3, %v6146_v5  ;;  %v6211_v16 = vmax.f32 %v6083_v20, 0.0  ;;  %v6020_v12 = vadd.f32 %v7913_v6, %v10281_v43  ;;  %v7976_v47 = vadd.f32 %v7814_v36, %v10015_v26  ;;  %v7527_v23 = vpop.f32.mrb[18].mxu0  ;;  %v5582_v46 = vpop.f32.mrb[13].mxu1 }
 0x6c1   : > { %v6149_v51 = vmax.f32 %v6021_v53, 0.0  ;;  %v6210_v38 = vmax.f32 %v6082_v2, 0.0  ;;  %v7914_v9 = vadd.f32 %v10045_v28, %v7527_v23  ;;  %v7977_v4 = vadd.f32 %v5582_v46, %v10021_v10  ;;  %v4178_v8 = vpop.f32.mrb[19].mxu0 }
 0x6c2   : > { %6340 = vst.msk [vmem:[%s10298_s29 + $0x218] sm:$0xff] %vm6272_vm3, %v6211_v16  ;;  %v6148_v14 = vmax.f32 %v6020_v12, 0.0  ;;  %v6085_v30 = vadd.f32 %v7976_v47, %v10281_v43  ;;  %v7915_v22 = vadd.f32 %v10049_v55, %v4178_v8 }
 0x6c3   : > { %6278 = vst.msk [vmem:[%s10298_s29 + $0x28] sm:$0xff] %vm6272_vm3, %v6149_v51  ;;  %6339 = vst.msk [vmem:[%s10298_s29 + $0x210] sm:$0xff] %vm6272_vm3, %v6210_v38  ;;  %v6023_v26 = vadd.f32 %v7914_v9, %v10281_v43  ;;  %v6084_v39 = vadd.f32 %v7977_v4, %v10281_v43  ;;  %v7817_v28 = vpop.f32.mrb[14].mxu1 }
 0x6c4   : > { %6277 = vst.msk [vmem:[%s10298_s29 + $0x20] sm:$0xff] %vm6272_vm3, %v6148_v14  ;;  %v6213_v10 = vmax.f32 %v6085_v30, 0.0  ;;  %v6022_v54 = vadd.f32 %v7915_v22, %v10281_v43  ;;  %v7978_v59 = vadd.f32 %v7817_v28, %v10031_v45  ;;  %v7530_v55 = vpop.f32.mrb[20].mxu0  ;;  %v5592_v24 = vpop.f32.mrb[15].mxu1 }
 0x6c5   : > { %v6151_v52 = vmax.f32 %v6023_v26, 0.0  ;;  %v6212_v3 = vmax.f32 %v6084_v39, 0.0  ;;  %v7916_v1 = vadd.f32 %v10061_v13, %v7530_v55  ;;  %v7979_v27 = vadd.f32 %v5592_v24, %v10037_v40  ;;  %v4188_v5 = vpop.f32.mrb[21].mxu0 }
 0x6c6   : > { %6342 = vst.msk [vmem:[%s10298_s29 + $0x228] sm:$0xff] %vm6272_vm3, %v6213_v10  ;;  %v6150_v20 = vmax.f32 %v6022_v54, 0.0  ;;  %v6087_v6 = vadd.f32 %v7978_v59, %v10281_v43  ;;  %v7917_v53 = vadd.f32 %v10065_v18, %v4188_v5 }
 0x6c7   : > { %6280 = vst.msk [vmem:[%s10298_s29 + $0x38] sm:$0xff] %vm6272_vm3, %v6151_v52  ;;  %6341 = vst.msk [vmem:[%s10298_s29 + $0x220] sm:$0xff] %vm6272_vm3, %v6212_v3  ;;  %v6025_v45 = vadd.f32 %v7916_v1, %v10281_v43  ;;  %v6086_v2 = vadd.f32 %v7979_v27, %v10281_v43  ;;  %v7820_v13 = vpop.f32.mrb[16].mxu1 }
 0x6c8   : > { %6279 = vst.msk [vmem:[%s10298_s29 + $0x30] sm:$0xff] %vm6272_vm3, %v6150_v20  ;;  %v6215_v40 = vmax.f32 %v6087_v6, 0.0  ;;  %v6024_v36 = vadd.f32 %v7917_v53, %v10281_v43  ;;  %v7980_v16 = vadd.f32 %v7820_v13, %v10047_v29  ;;  %v7533_v18 = vpop.f32.mrb[22].mxu0  ;;  %v5602_v12 = vpop.f32.mrb[17].mxu1 }
 0x6c9   : > { %v6153_v47 = vmax.f32 %v6025_v45, 0.0  ;;  %v6214_v23 = vmax.f32 %v6086_v2, 0.0  ;;  %v7918_v46 = vadd.f32 %v10077_v17, %v7533_v18  ;;  %v7981_v51 = vadd.f32 %v5602_v12, %v10053_v41  ;;  %v4198_v38 = vpop.f32.mrb[23].mxu0 }
 0x6ca   : > { %6344 = vst.msk [vmem:[%s10298_s29 + $0x238] sm:$0xff] %vm6272_vm3, %v6215_v40  ;;  %v6152_v9 = vmax.f32 %v6024_v36, 0.0  ;;  %v6089_v4 = vadd.f32 %v7980_v16, %v10281_v43  ;;  %v7919_v8 = vadd.f32 %v10081_v19, %v4198_v38 }
 0x6cb   : > { %6282 = vst.msk [vmem:[%s10298_s29 + $0x48] sm:$0xff] %vm6272_vm3, %v6153_v47  ;;  %6343 = vst.msk [vmem:[%s10298_s29 + $0x230] sm:$0xff] %vm6272_vm3, %v6214_v23  ;;  %v6027_v29 = vadd.f32 %v7918_v46, %v10281_v43  ;;  %v6088_v14 = vadd.f32 %v7981_v51, %v10281_v43  ;;  %v7823_v17 = vpop.f32.mrb[18].mxu1 }
 0x6cc   : > { %6281 = vst.msk [vmem:[%s10298_s29 + $0x40] sm:$0xff] %vm6272_vm3, %v6152_v9  ;;  %v6217_v41 = vmax.f32 %v6089_v4, 0.0  ;;  %v6026_v30 = vadd.f32 %v7919_v8, %v10281_v43  ;;  %v7982_v22 = vadd.f32 %v7823_v17, %v10063_v63  ;;  %v7536_v19 = vpop.f32.mrb[24].mxu0  ;;  %v5612_v26 = vpop.f32.mrb[19].mxu1 }
 0x6cd   : > { %v6155_v39 = vmax.f32 %v6027_v29, 0.0  ;;  %v6216_v28 = vmax.f32 %v6088_v14, 0.0  ;;  %v7920_v10 = vadd.f32 %v10091_v48, %v7536_v19  ;;  %v7983_v54 = vadd.f32 %v5612_v26, %v10069_v34  ;;  %v4208_v59 = vpop.f32.mrb[25].mxu0 }
 0x6ce   : > { %6346 = vst.msk [vmem:[%s10298_s29 + $0x248] sm:$0xff] %vm6272_vm3, %v6217_v41  ;;  %v6154_v55 = vmax.f32 %v6026_v30, 0.0  ;;  %v6091_v24 = vadd.f32 %v7982_v22, %v10281_v43  ;;  %v7921_v52 = vadd.f32 %v10095_v0, %v4208_v59 }
 0x6cf   : > { %6284 = vst.msk [vmem:[%s10298_s29 + $0x58] sm:$0xff] %vm6272_vm3, %v6155_v39  ;;  %6345 = vst.msk [vmem:[%s10298_s29 + $0x240] sm:$0xff] %vm6272_vm3, %v6216_v28  ;;  %v6029_v63 = vadd.f32 %v7920_v10, %v10281_v43  ;;  %v6090_v3 = vadd.f32 %v7983_v54, %v10281_v43  ;;  %v7826_v48 = vpop.f32.mrb[20].mxu1 }
 0x6d0   : > { %6283 = vst.msk [vmem:[%s10298_s29 + $0x50] sm:$0xff] %vm6272_vm3, %v6154_v55  ;;  %v6219_v34 = vmax.f32 %v6091_v24, 0.0  ;;  %v6028_v1 = vadd.f32 %v7921_v52, %v10281_v43  ;;  %v7984_v27 = vadd.f32 %v7826_v48, %v10079_v11  ;;  %v7539_v0 = vpop.f32.mrb[26].mxu0  ;;  %v5622_v5 = vpop.f32.mrb[21].mxu1 }
 0x6d1   : > { %v6157_v20 = vmax.f32 %v6029_v63, 0.0  ;;  %v6218_v6 = vmax.f32 %v6090_v3, 0.0  ;;  %v7922_v53 = vadd.f32 %v10103_v33, %v7539_v0  ;;  %v7985_v45 = vadd.f32 %v5622_v5, %v10085_v44  ;;  %v4218_v2 = vpop.f32.mrb[27].mxu0 }
 0x6d2   : > { %6348 = vst.msk [vmem:[%s10298_s29 + $0x258] sm:$0xff] %vm6272_vm3, %v6219_v34  ;;  %v6156_v13 = vmax.f32 %v6028_v1, 0.0  ;;  %v6093_v40 = vadd.f32 %v7984_v27, %v10281_v43  ;;  %v7923_v36 = vadd.f32 %v10107_v31, %v4218_v2 }
 0x6d3   : > { %6286 = vst.msk [vmem:[%s10298_s29 + $0x68] sm:$0xff] %vm6272_vm3, %v6157_v20  ;;  %6347 = vst.msk [vmem:[%s10298_s29 + $0x250] sm:$0xff] %vm6272_vm3, %v6218_v6  ;;  %v6031_v11 = vadd.f32 %v7922_v53, %v10281_v43  ;;  %v6092_v16 = vadd.f32 %v7985_v45, %v10281_v43  ;;  %v7829_v33 = vpop.f32.mrb[22].mxu1  ;;  %v11340_v45 = vld [vmem:[#allocation25_spill] sm:$0xff] }
 0x6d4   : > { %6285 = vst.msk [vmem:[%s10298_s29 + $0x60] sm:$0xff] %vm6272_vm3, %v6156_v13  ;;  %v6221_v44 = vmax.f32 %v6093_v40, 0.0  ;;  %v6030_v18 = vadd.f32 %v7923_v36, %v10281_v43  ;;  %v7986_v12 = vadd.f32 %v7829_v33, %v10093_v15  ;;  %v7542_v31 = vpop.f32.mrb[28].mxu0  ;;  %v5632_v47 = vpop.f32.mrb[23].mxu1  ;;  %v11342_v33 = vld [vmem:[#allocation28_spill] sm:$0xff] }
 0x6d5   : > { %v6159_v23 = vmax.f32 %v6031_v11, 0.0  ;;  %v6220_v46 = vmax.f32 %v6092_v16, 0.0  ;;  %v7924_v51 = vadd.f32 %v10115_v49, %v7542_v31  ;;  %v7987_v38 = vadd.f32 %v5632_v47, %v10099_v25  ;;  %v4228_v9 = vpop.f32.mrb[29].mxu0  ;;  %v11341_v11 = vld [vmem:[#allocation31_spill] sm:$0xff]  ;;  %v11343_v47 = vld [vmem:[#allocation38_spill] sm:$0xff] }
 0x6d6   : > { %6350 = vst.msk [vmem:[%s10298_s29 + $0x268] sm:$0xff] %vm6272_vm3, %v6221_v44  ;;  %v6158_v4 = vmax.f32 %v6030_v18, 0.0  ;;  %v6095_v8 = vadd.f32 %v7986_v12, %v10281_v43  ;;  %v7925_v29 = vadd.f32 %v10119_v56, %v4228_v9 }
 0x6d7   : > { %6288 = vst.msk [vmem:[%s10298_s29 + $0x78] sm:$0xff] %vm6272_vm3, %v6159_v23  ;;  %6349 = vst.msk [vmem:[%s10298_s29 + $0x260] sm:$0xff] %vm6272_vm3, %v6220_v46  ;;  %v6033_v15 = vadd.f32 %v7924_v51, %v10281_v43  ;;  %v6094_v14 = vadd.f32 %v7987_v38, %v10281_v43  ;;  %v7832_v49 = vpop.f32.mrb[24].mxu1 }
 0x6d8   : > { %6287 = vst.msk [vmem:[%s10298_s29 + $0x70] sm:$0xff] %vm6272_vm3, %v6158_v4  ;;  %v6223_v25 = vmax.f32 %v6095_v8, 0.0  ;;  %v6032_v17 = vadd.f32 %v7925_v29, %v10281_v43  ;;  %v7988_v41 = vadd.f32 %v7832_v49, %v10105_v62  ;;  %v7545_v56 = vpop.f32.mrb[30].mxu0  ;;  %v5642_v30 = vpop.f32.mrb[25].mxu1  ;;  %v11344_v8 = vld [vmem:[#allocation29_spill] sm:$0xff] }
 0x6d9   : > { %v6161_v22 = vmax.f32 %v6033_v15, 0.0  ;;  %v6222_v19 = vmax.f32 %v6094_v14, 0.0  ;;  %v7926_v26 = vadd.f32 %v10126_v58, %v7545_v56  ;;  %v7989_v39 = vadd.f32 %v5642_v30, %v10111_v60  ;;  %v4238_v28 = vpop.f32.mrb[31].mxu0  ;;  %v11346_v56 = vld [vmem:[#allocation35_spill] sm:$0xff] }
 0x6da   : > { %6352 = vst.msk [vmem:[%s10298_s29 + $0x278] sm:$0xff] %vm6272_vm3, %v6223_v25  ;;  %v6160_v10 = vmax.f32 %v6032_v17, 0.0  ;;  %v6097_v54 = vadd.f32 %v7988_v41, %v10281_v43  ;;  %v7927_v59 = vadd.f32 %v10130_v37, %v4238_v28  ;;  %v11345_v17 = vld [vmem:[#allocation40_spill] sm:$0xff] }
 0x6db   : > { %6290 = vst.msk [vmem:[%s10298_s29 + $0x88] sm:$0xff] %vm6272_vm3, %v6161_v22  ;;  %6351 = vst.msk [vmem:[%s10298_s29 + $0x270] sm:$0xff] %vm6272_vm3, %v6222_v19  ;;  %v6035_v62 = vadd.f32 %v7926_v26, %v10281_v43  ;;  %v6096_v55 = vadd.f32 %v7989_v39, %v10281_v43  ;;  %v7835_v58 = vpop.f32.mrb[26].mxu1  ;;  %v11347_v39 = vld [vmem:[#allocation45_spill] sm:$0xff] }
 0x6dc   : > { %6289 = vst.msk [vmem:[%s10298_s29 + $0x80] sm:$0xff] %vm6272_vm3, %v6160_v10  ;;  %v6225_v60 = vmax.f32 %v6097_v54, 0.0  ;;  %v6034_v24 = vadd.f32 %v7927_v59, %v10281_v43  ;;  %v7990_v52 = vadd.f32 %v7835_v58, %v10117_v57  ;;  %v7548_v37 = vpop.f32.mrb[32].mxu0  ;;  %v5652_v63 = vpop.f32.mrb[27].mxu1  ;;  %v11348_v58 = vld [vmem:[#allocation36_spill] sm:$0xff] }
 0x6dd   : > { %v6163_v3 = vmax.f32 %v6035_v62, 0.0  ;;  %v6224_v48 = vmax.f32 %v6096_v55, 0.0  ;;  %v7928_v34 = vadd.f32 %v10136_v35, %v7548_v37  ;;  %v7991_v1 = vadd.f32 %v5652_v63, %v10123_v21  ;;  %v4248_v27 = vpop.f32.mrb[33].mxu0 }
 0x6de   : > { %6354 = vst.msk [vmem:[%s10298_s29 + $0x288] sm:$0xff] %vm6272_vm3, %v6225_v60  ;;  %v6162_v0 = vmax.f32 %v6034_v24, 0.0  ;;  %v6099_v5 = vadd.f32 %v7990_v52, %v10281_v43  ;;  %v7929_v20 = vadd.f32 %v10140_v42, %v4248_v27 }
 0x6df   : > { %6292 = vst.msk [vmem:[%s10298_s29 + $0x98] sm:$0xff] %vm6272_vm3, %v6163_v3  ;;  %6353 = vst.msk [vmem:[%s10298_s29 + $0x280] sm:$0xff] %vm6272_vm3, %v6224_v48  ;;  %v6037_v57 = vadd.f32 %v7928_v34, %v10281_v43  ;;  %v6098_v6 = vadd.f32 %v7991_v1, %v10281_v43  ;;  %v7838_v35 = vpop.f32.mrb[28].mxu1  ;;  %v11349_v3 = vld [vmem:[#allocation47_spill] sm:$0xff] }
 0x6e0   : > { %6291 = vst.msk [vmem:[%s10298_s29 + $0x90] sm:$0xff] %vm6272_vm3, %v6162_v0  ;;  %v6227_v21 = vmax.f32 %v6099_v5, 0.0  ;;  %v6036_v53 = vadd.f32 %v7929_v20, %v10281_v43  ;;  %v7992_v2 = vadd.f32 %v7838_v35, %v11340_v45  ;;  %v7551_v42 = vpop.f32.mrb[34].mxu0  ;;  %v5662_v13 = vpop.f32.mrb[29].mxu1  ;;  %v11350_v34 = vld [vmem:[#allocation43_spill] sm:$0xff]  ;;  %v11351_v20 = vld [vmem:[#allocation54_spill] sm:$0xff] }
 0x6e1   : > { %v6165_v40 = vmax.f32 %v6037_v57, 0.0  ;;  %v6226_v36 = vmax.f32 %v6098_v6, 0.0  ;;  %v7930_v16 = vadd.f32 %v11341_v11, %v7551_v42  ;;  %v7993_v44 = vadd.f32 %v5662_v13, %v11342_v33  ;;  %v4258_v18 = vpop.f32.mrb[35].mxu0 }
 0x6e2   : > { %6356 = vst.msk [vmem:[%s10298_s29 + $0x298] sm:$0xff] %vm6272_vm3, %v6227_v21  ;;  %v6164_v12 = vmax.f32 %v6036_v53, 0.0  ;;  %v6101_v31 = vadd.f32 %v7992_v2, %v10281_v43  ;;  %v7931_v23 = vadd.f32 %v11343_v47, %v4258_v18  ;;  %v11352_v2 = vld [vmem:[#allocation44_spill] sm:$0xff] }
 0x6e3   : > { %6294 = vst.msk [vmem:[%s10298_s29 + $0xa8] sm:$0xff] %vm6272_vm3, %v6165_v40  ;;  %6355 = vst.msk [vmem:[%s10298_s29 + $0x290] sm:$0xff] %vm6272_vm3, %v6226_v36  ;;  %v6039_v46 = vadd.f32 %v7930_v16, %v10281_v43  ;;  %v6100_v51 = vadd.f32 %v7993_v44, %v10281_v43  ;;  %v7841_v38 = vpop.f32.mrb[30].mxu1  ;;  %v11353_v16 = vld [vmem:[#allocation56_spill] sm:$0xff]  ;;  %v11354_v44 = vld [vmem:[#allocation51_spill] sm:$0xff] }
 0x6e4   : > { %6293 = vst.msk [vmem:[%s10298_s29 + $0xa0] sm:$0xff] %vm6272_vm3, %v6164_v12  ;;  %v6229_v9 = vmax.f32 %v6101_v31, 0.0  ;;  %v6038_v4 = vadd.f32 %v7931_v23, %v10281_v43  ;;  %v7994_v29 = vadd.f32 %v7841_v38, %v11344_v8  ;;  %v7554_v15 = vpop.f32.mrb[36].mxu0  ;;  %v5672_v14 = vpop.f32.mrb[31].mxu1  ;;  %v11355_v23 = vld [vmem:[#allocation62_spill] sm:$0xff] }
 0x6e5   : > { %v6167_v49 = vmax.f32 %v6039_v46, 0.0  ;;  %v6228_v25 = vmax.f32 %v6100_v51, 0.0  ;;  %v7932_v41 = vadd.f32 %v11345_v17, %v7554_v15  ;;  %v7995_v30 = vadd.f32 %v5672_v14, %v11346_v56  ;;  %v4268_v22 = vpop.f32.mrb[37].mxu0 }
 0x6e6   : > { %6358 = vst.msk [vmem:[%s10298_s29 + $0x2a8] sm:$0xff] %vm6272_vm3, %v6229_v9  ;;  %v6166_v19 = vmax.f32 %v6038_v4, 0.0  ;;  %v6103_v26 = vadd.f32 %v7994_v29, %v10281_v43  ;;  %v7933_v28 = vadd.f32 %v11347_v39, %v4268_v22  ;;  %v11356_v29 = vld [vmem:[#allocation52_spill] sm:$0xff] }
 0x6e7   : > { %6296 = vst.msk [vmem:[%s10298_s29 + $0xb8] sm:$0xff] %vm6272_vm3, %v6167_v49  ;;  %6357 = vst.msk [vmem:[%s10298_s29 + $0x2a0] sm:$0xff] %vm6272_vm3, %v6228_v25  ;;  %v6041_v10 = vadd.f32 %v7932_v41, %v10281_v43  ;;  %v6102_v54 = vadd.f32 %v7995_v30, %v10281_v43  ;;  %v7844_v59 = vpop.f32.mrb[32].mxu1  ;;  %v11357_v41 = vld [vmem:[#allocation64_spill] sm:$0xff]  ;;  %v11358_v30 = vld [vmem:[#allocation66_spill] sm:$0xff] }
 0x6e8   : > { %6295 = vst.msk [vmem:[%s10298_s29 + $0xb0] sm:$0xff] %vm6272_vm3, %v6166_v19  ;;  %v6231_v62 = vmax.f32 %v6103_v26, 0.0  ;;  %v6040_v55 = vadd.f32 %v7933_v28, %v10281_v43  ;;  %v7996_v60 = vadd.f32 %v7844_v59, %v11348_v58  ;;  %v7557_v24 = vpop.f32.mrb[38].mxu0  ;;  %v5682_v52 = vpop.f32.mrb[33].mxu1  ;;  %v11359_v28 = vld [vmem:[#allocation78_spill] sm:$0xff] }
 0x6e9   : > { %v6169_v37 = vmax.f32 %v6041_v10, 0.0  ;;  %v6230_v63 = vmax.f32 %v6102_v54, 0.0  ;;  %v7934_v48 = vadd.f32 %v11349_v3, %v7557_v24  ;;  %v7997_v1 = vadd.f32 %v5682_v52, %v11350_v34  ;;  %v4278_v27 = vpop.f32.mrb[39].mxu0 }
 0x6ea   : > { %6360 = vst.msk [vmem:[%s10298_s29 + $0x2b8] sm:$0xff] %vm6272_vm3, %v6231_v62  ;;  %v6168_v0 = vmax.f32 %v6040_v55, 0.0  ;;  %v6105_v5 = vadd.f32 %v7996_v60, %v10281_v43  ;;  %v7935_v57 = vadd.f32 %v11351_v20, %v4278_v27  ;;  %v11360_v60 = vld [vmem:[#allocation68_spill] sm:$0xff] }
 0x6eb   : > { %6298 = vst.msk [vmem:[%s10298_s29 + $0xc8] sm:$0xff] %vm6272_vm3, %v6169_v37  ;;  %6359 = vst.msk [vmem:[%s10298_s29 + $0x2b0] sm:$0xff] %vm6272_vm3, %v6230_v63  ;;  %v6043_v6 = vadd.f32 %v7934_v48, %v10281_v43  ;;  %v6104_v35 = vadd.f32 %v7997_v1, %v10281_v43  ;;  %v7847_v21 = vpop.f32.mrb[34].mxu1  ;;  %v11361_v48 = vld [vmem:[#allocation80_spill] sm:$0xff]  ;;  %v11362_v1 = vld [vmem:[#allocation59_spill] sm:$0xff] }
 0x6ec   : > { %6297 = vst.msk [vmem:[%s10298_s29 + $0xc0] sm:$0xff] %vm6272_vm3, %v6168_v0  ;;  %v6233_v53 = vmax.f32 %v6105_v5, 0.0  ;;  %v6042_v45 = vadd.f32 %v7935_v57, %v10281_v43  ;;  %v7998_v42 = vadd.f32 %v7847_v21, %v11352_v2  ;;  %v7560_v13 = vpop.f32.mrb[40].mxu0  ;;  %v5692_v40 = vpop.f32.mrb[35].mxu1  ;;  %v11363_v57 = vld [vmem:[#allocation86_spill] sm:$0xff] }
 0x6ed   : > { %v6171_v36 = vmax.f32 %v6043_v6, 0.0  ;;  %v6232_v11 = vmax.f32 %v6104_v35, 0.0  ;;  %v7936_v33 = vadd.f32 %v11353_v16, %v7560_v13  ;;  %v7999_v18 = vadd.f32 %v5692_v40, %v11354_v44  ;;  %v4288_v12 = vpop.f32.mrb[41].mxu0 }
 0x6ee   : > { %6362 = vst.msk [vmem:[%s10298_s29 + $0x2c8] sm:$0xff] %vm6272_vm3, %v6233_v53  ;;  %v6170_v31 = vmax.f32 %v6042_v45, 0.0  ;;  %v6107_v47 = vadd.f32 %v7998_v42, %v10281_v43  ;;  %v7937_v46 = vadd.f32 %v11355_v23, %v4288_v12  ;;  %v11364_v42 = vld [vmem:[#allocation60_spill] sm:$0xff] }
 0x6ef   : > { %6300 = vst.msk [vmem:[%s10298_s29 + $0xd8] sm:$0xff] %vm6272_vm3, %v6171_v36  ;;  %6361 = vst.msk [vmem:[%s10298_s29 + $0x2c0] sm:$0xff] %vm6272_vm3, %v6232_v11  ;;  %v6045_v51 = vadd.f32 %v7936_v33, %v10281_v43  ;;  %v6106_v38 = vadd.f32 %v7999_v18, %v10281_v43  ;;  %v7850_v9 = vpop.f32.mrb[36].mxu1  ;;  %v11365_v33 = vld [vmem:[#allocation88_spill] sm:$0xff]  ;;  %v11366_v18 = vld [vmem:[#allocation65_spill] sm:$0xff] }
 0x6f0   : > { %6299 = vst.msk [vmem:[%s10298_s29 + $0xd0] sm:$0xff] %vm6272_vm3, %v6170_v31  ;;  %v6235_v4 = vmax.f32 %v6107_v47, 0.0  ;;  %v6044_v8 = vadd.f32 %v7937_v46, %v10281_v43  ;;  %v8000_v15 = vadd.f32 %v7850_v9, %v11356_v29  ;;  %v7563_v14 = vpop.f32.mrb[42].mxu0  ;;  %v5702_v49 = vpop.f32.mrb[37].mxu1  ;;  %v11367_v46 = vld [vmem:[#allocation94_spill] sm:$0xff] }
 0x6f1   : > { %v6173_v25 = vmax.f32 %v6045_v51, 0.0  ;;  %v6234_v17 = vmax.f32 %v6106_v38, 0.0  ;;  %v7938_v56 = vadd.f32 %v11357_v41, %v7563_v14  ;;  %v8001_v22 = vadd.f32 %v5702_v49, %v11358_v30  ;;  %v4298_v19 = vpop.f32.mrb[43].mxu0 }
 0x6f2   : > { %6364 = vst.msk [vmem:[%s10298_s29 + $0x2d8] sm:$0xff] %vm6272_vm3, %v6235_v4  ;;  %v6172_v26 = vmax.f32 %v6044_v8, 0.0  ;;  %v6109_v39 = vadd.f32 %v8000_v15, %v10281_v43  ;;  %v7939_v10 = vadd.f32 %v11359_v28, %v4298_v19  ;;  %v11368_v15 = vld [vmem:[#allocation67_spill] sm:$0xff] }
 0x6f3   : > { %6302 = vst.msk [vmem:[%s10298_s29 + $0xe8] sm:$0xff] %vm6272_vm3, %v6173_v25  ;;  %6363 = vst.msk [vmem:[%s10298_s29 + $0x2d0] sm:$0xff] %vm6272_vm3, %v6234_v17  ;;  %v6047_v54 = vadd.f32 %v7938_v56, %v10281_v43  ;;  %v6108_v59 = vadd.f32 %v8001_v22, %v10281_v43  ;;  %v7853_v62 = vpop.f32.mrb[38].mxu1  ;;  %v11369_v56 = vld [vmem:[#allocation96_spill] sm:$0xff]  ;;  %v11370_v22 = vld [vmem:[#allocation75_spill] sm:$0xff] }
 0x6f4   : > { %6301 = vst.msk [vmem:[%s10298_s29 + $0xe0] sm:$0xff] %vm6272_vm3, %v6172_v26  ;;  %v6237_v55 = vmax.f32 %v6109_v39, 0.0  ;;  %v6046_v58 = vadd.f32 %v7939_v10, %v10281_v43  ;;  %v8002_v24 = vadd.f32 %v7853_v62, %v11360_v60  ;;  %v7566_v52 = vpop.f32.mrb[44].mxu0  ;;  %v5712_v37 = vpop.f32.mrb[39].mxu1  ;;  %v11371_v10 = vld [vmem:[#allocation102_spill] sm:$0xff] }
 0x6f5   : > { %v6175_v63 = vmax.f32 %v6047_v54, 0.0  ;;  %v6236_v3 = vmax.f32 %v6108_v59, 0.0  ;;  %v7940_v34 = vadd.f32 %v11361_v48, %v7566_v52  ;;  %v8003_v27 = vadd.f32 %v5712_v37, %v11362_v1  ;;  %v4308_v0 = vpop.f32.mrb[45].mxu0 }
 0x6f6   : > { %6366 = vst.msk [vmem:[%s10298_s29 + $0x2e8] sm:$0xff] %vm6272_vm3, %v6237_v55  ;;  %v6174_v5 = vmax.f32 %v6046_v58, 0.0  ;;  %v6111_v20 = vadd.f32 %v8002_v24, %v10281_v43  ;;  %v7941_v6 = vadd.f32 %v11363_v57, %v4308_v0  ;;  %v11372_v24 = vld [vmem:[#allocation76_spill] sm:$0xff] }
 0x6f7   : > { %6304 = vst.msk [vmem:[%s10298_s29 + $0xf8] sm:$0xff] %vm6272_vm3, %v6175_v63  ;;  %6365 = vst.msk [vmem:[%s10298_s29 + $0x2e0] sm:$0xff] %vm6272_vm3, %v6236_v3  ;;  %v6049_v35 = vadd.f32 %v7940_v34, %v10281_v43  ;;  %v6110_v21 = vadd.f32 %v8003_v27, %v10281_v43  ;;  %v7856_v53 = vpop.f32.mrb[40].mxu1  ;;  %v11373_v34 = vld [vmem:[#allocation104_spill] sm:$0xff]  ;;  %v11374_v27 = vld [vmem:[#allocation83_spill] sm:$0xff] }
 0x6f8   : > { %6303 = vst.msk [vmem:[%s10298_s29 + $0xf0] sm:$0xff] %vm6272_vm3, %v6174_v5  ;;  %v6239_v45 = vmax.f32 %v6111_v20, 0.0  ;;  %v6048_v2 = vadd.f32 %v7941_v6, %v10281_v43  ;;  %v8004_v13 = vadd.f32 %v7856_v53, %v11364_v42  ;;  %v7569_v40 = vpop.f32.mrb[46].mxu0  ;;  %v5722_v36 = vpop.f32.mrb[41].mxu1  ;;  %v11375_v6 = vld [vmem:[#allocation110_spill] sm:$0xff] }
 0x6f9   : > { %v6177_v11 = vmax.f32 %v6049_v35, 0.0  ;;  %v6238_v16 = vmax.f32 %v6110_v21, 0.0  ;;  %v7942_v44 = vadd.f32 %v11365_v33, %v7569_v40  ;;  %v8005_v12 = vadd.f32 %v5722_v36, %v11366_v18  ;;  %v4318_v31 = vpop.f32.mrb[47].mxu0 }
 0x6fa   : > { %6368 = vst.msk [vmem:[%s10298_s29 + $0x2f8] sm:$0xff] %vm6272_vm3, %v6239_v45  ;;  %v6176_v47 = vmax.f32 %v6048_v2, 0.0  ;;  %v6113_v23 = vadd.f32 %v8004_v13, %v10281_v43  ;;  %v7943_v51 = vadd.f32 %v11367_v46, %v4318_v31  ;;  %v11376_v13 = vld [vmem:[#allocation84_spill] sm:$0xff] }
 0x6fb   : > { %6306 = vst.msk [vmem:[%s10298_s29 + $0x108] sm:$0xff] %vm6272_vm3, %v6177_v11  ;;  %6367 = vst.msk [vmem:[%s10298_s29 + $0x2f0] sm:$0xff] %vm6272_vm3, %v6238_v16  ;;  %v6051_v38 = vadd.f32 %v7942_v44, %v10281_v43  ;;  %v6112_v9 = vadd.f32 %v8005_v12, %v10281_v43  ;;  %v7859_v4 = vpop.f32.mrb[42].mxu1  ;;  %v11377_v44 = vld [vmem:[#allocation112_spill] sm:$0xff]  ;;  %v11378_v12 = vld [vmem:[#allocation91_spill] sm:$0xff] }
 0x6fc   : > { %6305 = vst.msk [vmem:[%s10298_s29 + $0x100] sm:$0xff] %vm6272_vm3, %v6176_v47  ;;  %v6241_v8 = vmax.f32 %v6113_v23, 0.0  ;;  %v6050_v29 = vadd.f32 %v7943_v51, %v10281_v43  ;;  %v8006_v14 = vadd.f32 %v7859_v4, %v11368_v15  ;;  %v7572_v49 = vpop.f32.mrb[48].mxu0  ;;  %v5732_v25 = vpop.f32.mrb[43].mxu1  ;;  %v11379_v51 = vld [vmem:[#allocation107_spill] sm:$0xff] }
 0x6fd   : > { %v6179_v17 = vmax.f32 %v6051_v38, 0.0  ;;  %v6240_v41 = vmax.f32 %v6112_v9, 0.0  ;;  %v7944_v30 = vadd.f32 %v11369_v56, %v7572_v49  ;;  %v8007_v19 = vadd.f32 %v5732_v25, %v11370_v22  ;;  %v4328_v26 = vpop.f32.mrb[49].mxu0 }
 0x6fe   : > { %6370 = vst.msk [vmem:[%s10298_s29 + $0x308] sm:$0xff] %vm6272_vm3, %v6241_v8  ;;  %v6178_v39 = vmax.f32 %v6050_v29, 0.0  ;;  %v6115_v28 = vadd.f32 %v8006_v14, %v10281_v43  ;;  %v7945_v54 = vadd.f32 %v11371_v10, %v4328_v26  ;;  %v11380_v14 = vld [vmem:[#allocation92_spill] sm:$0xff] }
 0x6ff   : > { %6308 = vst.msk [vmem:[%s10298_s29 + $0x118] sm:$0xff] %vm6272_vm3, %v6179_v17  ;;  %6369 = vst.msk [vmem:[%s10298_s29 + $0x300] sm:$0xff] %vm6272_vm3, %v6240_v41  ;;  %v6053_v59 = vadd.f32 %v7944_v30, %v10281_v43  ;;  %v6114_v62 = vadd.f32 %v8007_v19, %v10281_v43  ;;  %v7862_v55 = vpop.f32.mrb[44].mxu1  ;;  %v11381_v30 = vld [vmem:[#allocation113_spill] sm:$0xff]  ;;  %v11382_v19 = vld [vmem:[#allocation99_spill] sm:$0xff] }
 0x700   : > { %6307 = vst.msk [vmem:[%s10298_s29 + $0x110] sm:$0xff] %vm6272_vm3, %v6178_v39  ;;  %v6243_v58 = vmax.f32 %v6115_v28, 0.0  ;;  %v6052_v60 = vadd.f32 %v7945_v54, %v10281_v43  ;;  %v8008_v52 = vadd.f32 %v7862_v55, %v11372_v24  ;;  %v7575_v37 = vpop.f32.mrb[50].mxu0  ;;  %v5742_v63 = vpop.f32.mrb[45].mxu1  ;;  %v11383_v54 = vld [vmem:[#allocation170_spill] sm:$0xff] }
 0x701   : > { %v6181_v3 = vmax.f32 %v6053_v59, 0.0  ;;  %v6242_v48 = vmax.f32 %v6114_v62, 0.0  ;;  %v7946_v1 = vadd.f32 %v11373_v34, %v7575_v37  ;;  %v8009_v0 = vadd.f32 %v5742_v63, %v11374_v27  ;;  %v4338_v5 = vpop.f32.mrb[51].mxu0 }
 0x702   : > { %6372 = vst.msk [vmem:[%s10298_s29 + $0x318] sm:$0xff] %vm6272_vm3, %v6243_v58  ;;  %v6180_v20 = vmax.f32 %v6052_v60, 0.0  ;;  %v6117_v57 = vadd.f32 %v8008_v52, %v10281_v43  ;;  %v7947_v35 = vadd.f32 %v11375_v6, %v4338_v5  ;;  %v11384_v52 = vld [vmem:[#allocation100_spill] sm:$0xff] }
 0x703   : > { %6310 = vst.msk [vmem:[%s10298_s29 + $0x128] sm:$0xff] %vm6272_vm3, %v6181_v3  ;;  %6371 = vst.msk [vmem:[%s10298_s29 + $0x310] sm:$0xff] %vm6272_vm3, %v6242_v48  ;;  %v6055_v21 = vadd.f32 %v7946_v1, %v10281_v43  ;;  %v6116_v53 = vadd.f32 %v8009_v0, %v10281_v43  ;;  %v7865_v45 = vpop.f32.mrb[46].mxu1  ;;  %v11385_v1 = vld [vmem:[#allocation176_spill] sm:$0xff] }
 0x704   : > { %6309 = vst.msk [vmem:[%s10298_s29 + $0x120] sm:$0xff] %vm6272_vm3, %v6180_v20  ;;  %v6245_v2 = vmax.f32 %v6117_v57, 0.0  ;;  %v6054_v42 = vadd.f32 %v7947_v35, %v10281_v43  ;;  %v8010_v40 = vadd.f32 %v7865_v45, %v11376_v13  ;;  %v7578_v36 = vpop.f32.mrb[52].mxu0  ;;  %v5752_v11 = vpop.f32.mrb[47].mxu1  ;;  %v11386_v0 = vld [vmem:[#allocation108_spill] sm:$0xff]  ;;  %v11387_v35 = vld [vmem:[#allocation178_spill] sm:$0xff] }
 0x705   : > { %v6183_v16 = vmax.f32 %v6055_v21, 0.0  ;;  %v6244_v33 = vmax.f32 %v6116_v53, 0.0  ;;  %v7948_v18 = vadd.f32 %v11377_v44, %v7578_v36  ;;  %v8011_v31 = vadd.f32 %v5752_v11, %v11378_v12  ;;  %v4348_v47 = vpop.f32.mrb[53].mxu0 }
 0x706   : > { %6374 = vst.msk [vmem:[%s10298_s29 + $0x328] sm:$0xff] %vm6272_vm3, %v6245_v2  ;;  %v6182_v23 = vmax.f32 %v6054_v42, 0.0  ;;  %v6119_v46 = vadd.f32 %v8010_v40, %v10281_v43  ;;  %v7949_v38 = vadd.f32 %v11379_v51, %v4348_v47  ;;  %v11388_v40 = vld [vmem:[#allocation114_spill] sm:$0xff] }
 0x707   : > { %6312 = vst.msk [vmem:[%s10298_s29 + $0x138] sm:$0xff] %vm6272_vm3, %v6183_v16  ;;  %6373 = vst.msk [vmem:[%s10298_s29 + $0x320] sm:$0xff] %vm6272_vm3, %v6244_v33  ;;  %v6057_v9 = vadd.f32 %v7948_v18, %v10281_v43  ;;  %v6118_v4 = vadd.f32 %v8011_v31, %v10281_v43  ;;  %v7868_v8 = vpop.f32.mrb[48].mxu1  ;;  %v11389_v18 = vld [vmem:[#allocation184_spill] sm:$0xff]  ;;  %v11390_v31 = vld [vmem:[#allocation161_spill] sm:$0xff] }
 0x708   : > { %6311 = vst.msk [vmem:[%s10298_s29 + $0x130] sm:$0xff] %vm6272_vm3, %v6182_v23  ;;  %v6247_v29 = vmax.f32 %v6119_v46, 0.0  ;;  %v6056_v15 = vadd.f32 %v7949_v38, %v10281_v43  ;;  %v8012_v49 = vadd.f32 %v7868_v8, %v11380_v14  ;;  %v7581_v25 = vpop.f32.mrb[54].mxu0  ;;  %v5762_v17 = vpop.f32.mrb[49].mxu1  ;;  %v11391_v38 = vld [vmem:[#allocation186_spill] sm:$0xff] }
 0x709   : > { %v6185_v41 = vmax.f32 %v6057_v9, 0.0  ;;  %v6246_v56 = vmax.f32 %v6118_v4, 0.0  ;;  %v7950_v22 = vadd.f32 %v11381_v30, %v7581_v25  ;;  %v8013_v26 = vadd.f32 %v5762_v17, %v11382_v19  ;;  %v4358_v39 = vpop.f32.mrb[55].mxu0  ;;  %v10697_v14 = vld [vmem:[#allocation8] ss:$0 sm:$0xff]  ;;  %v11392_v25 = vld [vmem:[#allocation166_spill] sm:$0xff] }
 0x70a   : > { %6376 = vst.msk [vmem:[%s10298_s29 + $0x338] sm:$0xff] %vm6272_vm3, %v6247_v29  ;;  %v6184_v28 = vmax.f32 %v6056_v15, 0.0  ;;  %v6121_v10 = vadd.f32 %v8012_v49, %v10281_v43  ;;  %v7951_v59 = vadd.f32 %v11383_v54, %v4358_v39  ;;  %v11393_v19 = vld [vmem:[#allocation192_spill] sm:$0xff] }
 0x70b   : > { %6314 = vst.msk [vmem:[%s10298_s29 + $0x148] sm:$0xff] %vm6272_vm3, %v6185_v41  ;;  %6375 = vst.msk [vmem:[%s10298_s29 + $0x330] sm:$0xff] %vm6272_vm3, %v6246_v56  ;;  %v6059_v62 = vadd.f32 %v7950_v22, %v10281_v43  ;;  %v6120_v55 = vadd.f32 %v8013_v26, %v10281_v43  ;;  %v7871_v58 = vpop.f32.mrb[50].mxu1 }
 0x70c   : > { %6313 = vst.msk [vmem:[%s10298_s29 + $0x140] sm:$0xff] %vm6272_vm3, %v6184_v28  ;;  %v6249_v60 = vmax.f32 %v6121_v10, 0.0  ;;  %v6058_v24 = vadd.f32 %v7951_v59, %v10281_v43  ;;  %v8014_v37 = vadd.f32 %v7871_v58, %v11384_v52  ;;  %v7584_v63 = vpop.f32.mrb[56].mxu0  ;;  %v5772_v3 = vpop.f32.mrb[51].mxu1  ;;  %v11395_v59 = vld [vmem:[#allocation194_spill] sm:$0xff] }
 0x70d   : > { %v6187_v48 = vmax.f32 %v6059_v62, 0.0  ;;  %v6248_v34 = vmax.f32 %v6120_v55, 0.0  ;;  %v7952_v27 = vadd.f32 %v11385_v1, %v7584_v63  ;;  %v8015_v5 = vadd.f32 %v5772_v3, %v11386_v0  ;;  %v4368_v20 = vpop.f32.mrb[57].mxu0 }
 0x70e   : > { %6378 = vst.msk [vmem:[%s10298_s29 + $0x348] sm:$0xff] %vm6272_vm3, %v6249_v60  ;;  %v6186_v57 = vmax.f32 %v6058_v24, 0.0  ;;  %v6123_v6 = vadd.f32 %v8014_v37, %v10281_v43  ;;  %v7953_v21 = vadd.f32 %v11387_v35, %v4368_v20  ;;  %v11396_v37 = vld [vmem:[#allocation173_spill] sm:$0xff] }
 0x70f   : > { %6316 = vst.msk [vmem:[%s10298_s29 + $0x158] sm:$0xff] %vm6272_vm3, %v6187_v48  ;;  %6377 = vst.msk [vmem:[%s10298_s29 + $0x340] sm:$0xff] %vm6272_vm3, %v6248_v34  ;;  %v6061_v53 = vadd.f32 %v7952_v27, %v10281_v43  ;;  %v6122_v45 = vadd.f32 %v8015_v5, %v10281_v43  ;;  %v7874_v2 = vpop.f32.mrb[52].mxu1  ;;  %v11397_v27 = vld [vmem:[#allocation189_spill] sm:$0xff]  ;;  %v11398_v5 = vld [vmem:[#allocation174_spill] sm:$0xff] }
 0x710   : > { %6315 = vst.msk [vmem:[%s10298_s29 + $0x150] sm:$0xff] %vm6272_vm3, %v6186_v57  ;;  %v6251_v42 = vmax.f32 %v6123_v6, 0.0  ;;  %v6060_v13 = vadd.f32 %v7953_v21, %v10281_v43  ;;  %v8016_v36 = vadd.f32 %v7874_v2, %v11388_v40  ;;  %v7587_v11 = vpop.f32.mrb[58].mxu0  ;;  %v5782_v16 = vpop.f32.mrb[53].mxu1  ;;  %v11399_v21 = vld [vmem:[#allocation197_spill] sm:$0xff] }
 0x711   : > { %v6189_v33 = vmax.f32 %v6061_v53, 0.0  ;;  %v6250_v44 = vmax.f32 %v6122_v45, 0.0  ;;  %v7954_v12 = vadd.f32 %v11389_v18, %v7587_v11  ;;  %v8017_v47 = vadd.f32 %v5782_v16, %v11390_v31  ;;  %v4378_v23 = vpop.f32.mrb[59].mxu0 }
 0x712   : > { %6380 = vst.msk [vmem:[%s10298_s29 + $0x358] sm:$0xff] %vm6272_vm3, %v6251_v42  ;;  %v6188_v46 = vmax.f32 %v6060_v13, 0.0  ;;  %v6125_v51 = vadd.f32 %v8016_v36, %v10281_v43  ;;  %v7955_v9 = vadd.f32 %v11391_v38, %v4378_v23  ;;  %v11400_v36 = vld [vmem:[#allocation181_spill] sm:$0xff] }
 0x713   : > { %6318 = vst.msk [vmem:[%s10298_s29 + $0x168] sm:$0xff] %vm6272_vm3, %v6189_v33  ;;  %6379 = vst.msk [vmem:[%s10298_s29 + $0x350] sm:$0xff] %vm6272_vm3, %v6250_v44  ;;  %v6063_v4 = vadd.f32 %v7954_v12, %v10281_v43  ;;  %v6124_v8 = vadd.f32 %v8017_v47, %v10281_v43  ;;  %v7877_v29 = vpop.f32.mrb[54].mxu1  ;;  %v11394_v43 = vld [vmem:[#allocation167_spill] sm:$0xff]  ;;  %v11401_v12 = vld [vmem:[#allocation116_spill] sm:$0xff] }
 0x714   : > { %6317 = vst.msk [vmem:[%s10298_s29 + $0x160] sm:$0xff] %vm6272_vm3, %v6188_v46  ;;  %v6253_v15 = vmax.f32 %v6125_v51, 0.0  ;;  %v6062_v49 = vadd.f32 %v10697_v14, %v7955_v9  ;;  %v8018_v17 = vadd.f32 %v7877_v29, %v11392_v25  ;;  %v7590_v41 = vpop.f32.mrb[60].mxu0  ;;  %v5792_v56 = vpop.f32.mrb[55].mxu1  ;;  %v11402_v47 = vld [vmem:[#allocation182_spill] sm:$0xff]  ;;  %v11403_v9 = vld [vmem:[#allocation119_spill] sm:$0xff] }
 0x715   : > { %v6191_v30 = vmax.f32 %v6063_v4, 0.0  ;;  %v6252_v22 = vmax.f32 %v6124_v8, 0.0  ;;  %v7956_v26 = vadd.f32 %v11393_v19, %v7590_v41  ;;  %v8019_v39 = vadd.f32 %v5792_v56, %v11394_v43  ;;  %v4388_v28 = vpop.f32.mrb[61].mxu0 }
 0x716   : > { %6382 = vst.msk [vmem:[%s10298_s29 + $0x368] sm:$0xff] %vm6272_vm3, %v6253_v15  ;;  %v6190_v10 = vmax.f32 %v6062_v49, 0.0  ;;  %v6127_v54 = vadd.f32 %v10697_v14, %v8018_v17  ;;  %v7957_v62 = vadd.f32 %v11395_v59, %v4388_v28  ;;  %v11404_v17 = vld [vmem:[#allocation190_spill] sm:$0xff] }
 0x717   : > { %6320 = vst.msk [vmem:[%s10298_s29 + $0x178] sm:$0xff] %vm6272_vm3, %v6191_v30  ;;  %6381 = vst.msk [vmem:[%s10298_s29 + $0x360] sm:$0xff] %vm6272_vm3, %v6252_v22  ;;  %v6065_v55 = vadd.f32 %v10697_v14, %v7956_v26  ;;  %v6126_v58 = vadd.f32 %v10697_v14, %v8019_v39  ;;  %v7880_v60 = vpop.f32.mrb[56].mxu1  ;;  %v11405_v26 = vld [vmem:[#allocation120_spill] sm:$0xff]  ;;  %v11406_v39 = vld [vmem:[#allocation198_spill] sm:$0xff] }
 0x718   : > { %6319 = vst.msk [vmem:[%s10298_s29 + $0x170] sm:$0xff] %vm6272_vm3, %v6190_v10  ;;  %v6255_v24 = vmax.f32 %v6127_v54, 0.0  ;;  %v6064_v52 = vadd.f32 %v10697_v14, %v7957_v62  ;;  %v8020_v63 = vadd.f32 %v7880_v60, %v11396_v37  ;;  %v7593_v3 = vpop.f32.mrb[62].mxu0  ;;  %v5802_v48 = vpop.f32.mrb[57].mxu1  ;;  %v11407_v62 = vld [vmem:[#allocation125_spill] sm:$0xff] }
 0x719   : > { %v6193_v34 = vmax.f32 %v6065_v55, 0.0  ;;  %v6254_v1 = vmax.f32 %v6126_v58, 0.0  ;;  %v7958_v0 = vadd.f32 %v11397_v27, %v7593_v3  ;;  %v8021_v20 = vadd.f32 %v5802_v48, %v11398_v5  ;;  %v4398_v57 = vpop.f32.mrb[63].mxu0  ;;  %v11409_v27 = vld [vmem:[#allocation121_spill] sm:$0xff] }
 0x71a   : > { %6384 = vst.msk [vmem:[%s10298_s29 + $0x378] sm:$0xff] %vm6272_vm3, %v6255_v24  ;;  %v6192_v6 = vmax.f32 %v6064_v52, 0.0  ;;  %v6129_v35 = vadd.f32 %v10697_v14, %v8020_v63  ;;  %v7959_v53 = vadd.f32 %v11399_v21, %v4398_v57  ;;  %v11408_v63 = vld [vmem:[#allocation118_spill] sm:$0xff] }
 0x71b   : > { %6322 = vst.msk [vmem:[%s10298_s29 + $0x188] sm:$0xff] %vm6272_vm3, %v6193_v34  ;;  %6383 = vst.msk [vmem:[%s10298_s29 + $0x370] sm:$0xff] %vm6272_vm3, %v6254_v1  ;;  %v6067_v45 = vadd.f32 %v10697_v14, %v7958_v0  ;;  %v6128_v2 = vadd.f32 %v10697_v14, %v8021_v20  ;;  %v7883_v42 = vpop.f32.mrb[58].mxu1  ;;  %v11410_v21 = vld [vmem:[#allocation122_spill] sm:$0xff] }
 0x71c   : > { %6321 = vst.msk [vmem:[%s10298_s29 + $0x180] sm:$0xff] %vm6272_vm3, %v6192_v6  ;;  %v6257_v13 = vmax.f32 %v6129_v35, 0.0  ;;  %v6066_v40 = vadd.f32 %v10697_v14, %v7959_v53  ;;  %v8022_v11 = vadd.f32 %v7883_v42, %v11400_v36  ;;  %v7596_v16 = vpop.f32.mrb[64].mxu0  ;;  %v5812_v33 = vpop.f32.mrb[59].mxu1  ;;  %v11411_v42 = vld [vmem:[#allocation17_spill] sm:$0xff] }
 0x71d   : > { %v6195_v44 = vmax.f32 %v6067_v45, 0.0  ;;  %v6256_v18 = vmax.f32 %v6128_v2, 0.0  ;;  %v7960_v31 = vadd.f32 %v11401_v12, %v7596_v16  ;;  %v8023_v23 = vadd.f32 %v5812_v33, %v11402_v47  ;;  %v4408_v46 = vpop.f32.mrb[65].mxu0  ;;  %v11412_v33 = vld [vmem:[#allocation126_spill] sm:$0xff] }
 0x71e   : > { %6386 = vst.msk [vmem:[%s10298_s29 + $0x388] sm:$0xff] %vm6272_vm3, %v6257_v13  ;;  %v6194_v51 = vmax.f32 %v6066_v40, 0.0  ;;  %v6131_v38 = vadd.f32 %v10697_v14, %v8022_v11  ;;  %v7961_v4 = vadd.f32 %v11403_v9, %v4408_v46 }
 0x71f   : > { %6324 = vst.msk [vmem:[%s10298_s29 + $0x198] sm:$0xff] %vm6272_vm3, %v6195_v44  ;;  %6385 = vst.msk [vmem:[%s10298_s29 + $0x380] sm:$0xff] %vm6272_vm3, %v6256_v18  ;;  %v6069_v8 = vadd.f32 %v10697_v14, %v7960_v31  ;;  %v6130_v29 = vadd.f32 %v10697_v14, %v8023_v23  ;;  %v7886_v15 = vpop.f32.mrb[60].mxu1 }
 0x720   : > { %6323 = vst.msk [vmem:[%s10298_s29 + $0x190] sm:$0xff] %vm6272_vm3, %v6194_v51  ;;  %v6259_v49 = vmax.f32 %v6131_v38, 0.0  ;;  %v6068_v25 = vadd.f32 %v10697_v14, %v7961_v4  ;;  %v8024_v41 = vadd.f32 %v7886_v15, %v11404_v17  ;;  %v7599_v56 = vpop.f32.mrb[66].mxu0  ;;  %v5822_v30 = vpop.f32.mrb[61].mxu1 }
 0x721   : > { %v6197_v22 = vmax.f32 %v6069_v8, 0.0  ;;  %v6258_v19 = vmax.f32 %v6130_v29, 0.0  ;;  %v7962_v43 = vadd.f32 %v11405_v26, %v7599_v56  ;;  %v8025_v28 = vadd.f32 %v5822_v30, %v11406_v39  ;;  %v4418_v10 = vpop.f32.mrb[67].mxu0 }
 0x722   : > { %6388 = vst.msk [vmem:[%s10298_s29 + $0x398] sm:$0xff] %vm6272_vm3, %v6259_v49  ;;  %v6196_v54 = vmax.f32 %v6068_v25, 0.0  ;;  %v6133_v59 = vadd.f32 %v10697_v14, %v8024_v41  ;;  %v7963_v55 = vadd.f32 %v11407_v62, %v4418_v10  ;;  %v11413_v41 = vld [vmem:[#allocation18_spill] sm:$0xff] }
 0x723   : > { %6326 = vst.msk [vmem:[%s10298_s29 + $0x1a8] sm:$0xff] %vm6272_vm3, %v6197_v22  ;;  %6387 = vst.msk [vmem:[%s10298_s29 + $0x390] sm:$0xff] %vm6272_vm3, %v6258_v19  ;;  %v6071_v58 = vadd.f32 %v10697_v14, %v7962_v43  ;;  %v6132_v60 = vadd.f32 %v10697_v14, %v8025_v28  ;;  %v7889_v24 = vpop.f32.mrb[62].mxu1 }
 0x724   : > { %6325 = vst.msk [vmem:[%s10298_s29 + $0x1a0] sm:$0xff] %vm6272_vm3, %v6196_v54  ;;  %v6261_v52 = vmax.f32 %v6133_v59, 0.0  ;;  %v6070_v37 = vadd.f32 %v10697_v14, %v7963_v55  ;;  %v8026_v3 = vadd.f32 %v7889_v24, %v11408_v63  ;;  %v5832_v48 = vpop.f32.mrb[63].mxu1 }
 0x725   : > { %v6199_v34 = vmax.f32 %v6071_v58, 0.0  ;;  %v6260_v1 = vmax.f32 %v6132_v60, 0.0  ;;  %v8027_v0 = vadd.f32 %v5832_v48, %v11409_v27 }
 0x726   : > { %6390 = vst.msk [vmem:[%s10298_s29 + $0x3a8] sm:$0xff] %vm6272_vm3, %v6261_v52  ;;  %v6198_v5 = vmax.f32 %v6070_v37, 0.0  ;;  %v6135_v20 = vadd.f32 %v10697_v14, %v8026_v3 }
 0x727   : > { %6328 = vst.msk [vmem:[%s10298_s29 + $0x1b8] sm:$0xff] %vm6272_vm3, %v6199_v34  ;;  %6389 = vst.msk [vmem:[%s10298_s29 + $0x3a0] sm:$0xff] %vm6272_vm3, %v6260_v1  ;;  %v6134_v57 = vadd.f32 %v10697_v14, %v8027_v0  ;;  %v7892_v6 = vpop.f32.mrb[64].mxu1 }
 0x728   : > { %6327 = vst.msk [vmem:[%s10298_s29 + $0x1b0] sm:$0xff] %vm6272_vm3, %v6198_v5  ;;  %v6263_v35 = vmax.f32 %v6135_v20, 0.0  ;;  %v8028_v53 = vadd.f32 %v7892_v6, %v11410_v21  ;;  %v5842_v45 = vpop.f32.mrb[65].mxu1 }
 0x729   : > { %v6262_v2 = vmax.f32 %v6134_v57, 0.0  ;;  %v8029_v13 = vadd.f32 %v5842_v45, %v11411_v42 }
 0x72a   : > { %6392 = vst.msk [vmem:[%s10298_s29 + $0x3b8] sm:$0xff] %vm6272_vm3, %v6263_v35  ;;  %v6137_v40 = vadd.f32 %v10697_v14, %v8028_v53 }
 0x72b   : > { %6391 = vst.msk [vmem:[%s10298_s29 + $0x3b0] sm:$0xff] %vm6272_vm3, %v6262_v2  ;;  %v6136_v36 = vadd.f32 %v10697_v14, %v8029_v13  ;;  %v7895_v11 = vpop.f32.mrb[66].mxu1 }
 0x72c   : > { %v6265_v16 = vmax.f32 %v6137_v40, 0.0  ;;  %v8030_v44 = vadd.f32 %v7895_v11, %v11412_v33  ;;  %v5852_v18 = vpop.f32.mrb[67].mxu1 }
 0x72d   : > { %v6264_v12 = vmax.f32 %v6136_v36, 0.0  ;;  %v8031_v31 = vadd.f32 %v5852_v18, %v10288_v7 }
 0x72e   : > { %6394 = vst.msk [vmem:[%s10298_s29 + $0x3c8] sm:$0xff] %vm6272_vm3, %v6265_v16  ;;  %v6139_v47 = vadd.f32 %v10697_v14, %v8030_v44 }
 0x72f   : > { %6393 = vst.msk [vmem:[%s10298_s29 + $0x3c0] sm:$0xff] %vm6272_vm3, %v6264_v12  ;;  %v6138_v23 = vadd.f32 %v10697_v14, %v8031_v31  ;;  %v7898_v46 = vpop.f32.mrb[68].mxu1 }
 0x730   : > { %v6267_v51 = vmax.f32 %v6139_v47, 0.0  ;;  %v8032_v38 = vadd.f32 %v7898_v46, %v10293_v61  ;;  %v5862_v9 = vpop.f32.mrb[69].mxu1 }
 0x731   : > { %v6266_v4 = vmax.f32 %v6138_v23, 0.0  ;;  %v8033_v7 = vadd.f32 %v5862_v9, %v10296_v50 }
 0x732   : > { %6396 = vst.msk [vmem:[%s10298_s29 + $0x3d8] sm:$0xff] %vm6272_vm3, %v6267_v51  ;;  %v6141_v8 = vadd.f32 %v10697_v14, %v8032_v38 }
 0x733   : > { %6395 = vst.msk [vmem:[%s10298_s29 + $0x3d0] sm:$0xff] %vm6272_vm3, %v6266_v4  ;;  %v6140_v29 = vadd.f32 %v10697_v14, %v8033_v7  ;;  %v7901_v15 = vpop.f32.mrb[70].mxu1 }
 0x734   : > { %v6269_v49 = vmax.f32 %v6141_v8, 0.0  ;;  %v8034_v61 = vadd.f32 %v7901_v15, %v10307_v32  ;;  %v5872_v25 = vpop.f32.mrb[71].mxu1 }
 0x735   : > { %v6268_v17 = vmax.f32 %v6140_v29, 0.0  ;;  %v8035_v56 = vadd.f32 %v5872_v25, %v11413_v41 }
 0x736   : > { %6398 = vst.msk [vmem:[%s10298_s29 + $0x3e8] sm:$0xff] %vm6272_vm3, %v6269_v49  ;;  %v6143_v50 = vadd.f32 %v10697_v14, %v8034_v61 }
 0x737   : > { %6397 = vst.msk [vmem:[%s10298_s29 + $0x3e0] sm:$0xff] %vm6272_vm3, %v6268_v17  ;;  %v6142_v30 = vadd.f32 %v10697_v14, %v8035_v56 }
 0x738   : > { %v6271_v22 = vmax.f32 %v6143_v50, 0.0 }
 0x739   : > { %v6270_v32 = vmax.f32 %v6142_v30, 0.0 }
 0x73a   : > { %6400 = vst.msk [vmem:[%s10298_s29 + $0x3f8] sm:$0xff] %vm6272_vm3, %v6271_v22 }
 0x73b   : > { %6399 = vst.msk [vmem:[%s10298_s29 + $0x3f0] sm:$0xff] %vm6272_vm3, %v6270_v32 }
 0x73c   : > { %8379 = shalt.err (!%p8376_p12)
}
 0x73d   : > { %s8380_s7 = scalar_lea.hbm %s10813_s25, 16384  ;;  %s8384_s14 = scalar_lea.hbm %s10867_s4, 32768 }
 0x73e   : > { %p8381_p4 = scmp.ne.s32.totalorder %s10813_s25, %s8380_s7  ;;  %p8385_p2 = scmp.lt.u32.totalorder %s10813_s25, %s10867_s4 }
 0x73f   : > { %p8386_p3 = scmp.lt.u32.totalorder %s8384_s14, %s8380_s7  ;;  %p8388_p10 = scmp.lt.u32.totalorder %s8380_s7, %s10813_s25 }
 0x740   : > { %p8382_p6 = pnand %p8381_p4, %p11414_p1 }
 0x741   : > { %p8387_p9 = por %p8386_p3, %p8385_p2 }
 0x742   : > { %p8383_p13 = pneg %p8382_p6 }
 0x743   : > { %p8389_p0 = por %p8388_p10, %p8387_p9 }
 0x745   : > { %p8390_p7 = pnand %p8389_p0, %p8383_p13 }
 0x747   : > { %8393 = shalt.err (!%p8390_p7)
}
 0x748   : > { %s8455_s20 = smov 128   ;;  %s8456_s5 = smov 8  }
 0x749   : > { %8178 = dma.vmem_to_hbm [thread:$0]  (%p11414_p1), %s10815_s12, 16384, %s10813_s25, %s6402_s19, %s8455_s20, %s8455_s20, %s8456_s5  }
 0x74a PF: > { %s6430_s26 = sand.u32 1, %s8428_s15   ;;  %p11415_p8 = scmp.ne.s32.totalorder %s10881_s28, 0 }
 0x74b   : > { %p11416_p5 = scmp.ge.s32.totalorder %s8440_s18, 2  ;;  %s6431_s29 = scalar_lea.sflag [#allocation4], %s6430_s26 }
 0x74d   : > { %p8195_p11 = pnand %p11416_p5, %p11415_p8 }
 0x74f   : > { %8423 = dma.done.wait (!%p8195_p11), %s6431_s29, 16384  }
 0x750   : > { %8425 = vsyncadd (!%p8195_p11), %s6431_s29, 4294950912  ;;  %s11417_s18 = sld [smem:[#allocation15_spill]]  ;;  %s11418_s11 = sld [smem:[#allocation16_spill]] }
 0x751   : > { %s11419_s15 = smov %s8432_s16  ;;  %s11420_s16 = smov %s8436_s17 }
 0x756   : > { %p19_p12 = scmp.ge.s32.totalorder %s11417_s18, 4   ;;  %s11421_s17 = smov %s11418_s11 }
 0x758   :  { %21 = sbr.rel (!%p19_p12) target bundleno = 9 (0x9), region = 95 }
 0x75f   :  { %6436 = vsyncpa [#allocation3], 1 }
 0x760   :  { %6438 = vsyncpa [#allocation3 + $0x1], 1 }
 0x761   :  { %6439 = vsyncpa [#allocation6], 1 }
 0x762   :  { %6440 = vsyncpa [#allocation9], 1 }
 0x763   :  { %6441 = vsyncpa [#allocation4], 1 }
 0x764   :  { %6443 = vsyncpa [#allocation4 + $0x1], 1 }

</bundles_post_ra>
